<compile_context>
chip_gen: v7x
topology: tpu7x:2x2x1
jax: 0.10.0
libtpu: 0.0.40
codegen_flags: <defaults>
</compile_context>

<pallas_src>
import functools

import jax
import jax.numpy as jnp
from jax import lax
from jax.experimental import pallas as pl
from jax.experimental.pallas import tpu as pltpu

REG_MAX = 16
EPS = 1e-7


def _rotated_bbox_loss_kernel(feat_ref, pd_ref, iou_out, dfl_out, iou_acc, dfl_acc,
                              *, r_tile, half, r_valid):
    core = pl.program_id(0)          # 2-way core split ("parallel")
    step = pl.program_id(1)          # anchor-tile step ("arbitrary" / reduction)

    @pl.when(step == 0)
    def _():
        iou_acc[...] = jnp.zeros_like(iou_acc)
        dfl_acc[...] = jnp.zeros_like(dfl_acc)

    # Intended (unclamped) block index -> drives the validity mask.  The
    # BlockSpec index_map clamps the actual DMA block so it never goes OOB;
    # any clamped / padded rows are zeroed here.
    base_row = (core * half + step) * r_tile
    sub_iota = lax.broadcasted_iota(jnp.int32, (8, 128), 0)

    @pl.loop(0, r_tile // 8)
    def _(rchunk):
        row0 = pl.multiple_of(rchunk * 8, 8)
        rows = pl.ds(row0, 8)
        row_ok = (base_row + rchunk * 8 + sub_iota) < r_valid          # (8,128)

        px, py = feat_ref[0, rows, :], feat_ref[1, rows, :]            # pred center
        pw, ph = feat_ref[2, rows, :], feat_ref[3, rows, :]            # pred w, h
        pcos, psin = feat_ref[4, rows, :], feat_ref[5, rows, :]        # cos/sin(pred angle)
        tx, ty = feat_ref[6, rows, :], feat_ref[7, rows, :]            # target center
        tw, th = feat_ref[8, rows, :], feat_ref[9, rows, :]            # target w, h
        tcos, tsin = feat_ref[10, rows, :], feat_ref[11, rows, :]      # cos/sin(target angle)
        ax, ay = feat_ref[12, rows, :], feat_ref[13, rows, :]          # anchor points
        w = feat_ref[14, rows, :]                                      # scores.sum(-1)*fg

        valid = jnp.logical_and(row_ok, w > 0.0)

        # ---- probiou (rotated IoU) ----
        ga1 = pw * pw * (1.0 / 12.0)
        gb1 = ph * ph * (1.0 / 12.0)
        ga2 = tw * tw * (1.0 / 12.0)
        gb2 = th * th * (1.0 / 12.0)
        pc2, ps2 = pcos * pcos, psin * psin
        tc2, ts2 = tcos * tcos, tsin * tsin
        a1 = ga1 * pc2 + gb1 * ps2
        b1 = ga1 * ps2 + gb1 * pc2
        c1 = (ga1 - gb1) * pcos * psin
        a2 = ga2 * tc2 + gb2 * ts2
        b2 = ga2 * ts2 + gb2 * tc2
        c2 = (ga2 - gb2) * tcos * tsin

        ab = a1 + a2
        bb = b1 + b2
        cb = c1 + c2
        dx = px - tx
        dy = py - ty
        det_sum = ab * bb - cb * cb
        inv_den = pl.reciprocal(det_sum + EPS, approx=True)
        t1v = (ab * dy * dy + bb * dx * dx) * inv_den * 0.25
        t2v = (cb * (-dx) * dy) * inv_den * 0.5
        det1 = jnp.maximum(a1 * b1 - c1 * c1, 0.0)
        det2 = jnp.maximum(a2 * b2 - c2 * c2, 0.0)
        t3v = 0.5 * jnp.log(det_sum * pl.reciprocal(4.0 * jnp.sqrt(det1 * det2) + EPS,
                                                    approx=True) + EPS)
        bd = jnp.clip(t1v + t2v + t3v, EPS, 100.0)
        hd = jnp.sqrt(1.0 - jnp.exp(-bd) + EPS)
        # iou = 1 - hd  =>  (1 - iou) = hd
        iou_acc[...] += jnp.where(valid, hd * w, 0.0)

        # ---- DFL ----
        # target_ltrb = bbox2dist(anchors, xywh2xyxy(target[..., :4]), reg_max-1)
        hw_, hh_ = tw * 0.5, th * 0.5
        x1t, y1t = tx - hw_, ty - hh_
        x2t, y2t = tx + hw_, ty + hh_
        tmax = REG_MAX - 1 - 0.01
        d_l = jnp.clip(ax - x1t, 0.0, tmax)
        d_t = jnp.clip(ay - y1t, 0.0, tmax)
        d_r = jnp.clip(x2t - ax, 0.0, tmax)
        d_b = jnp.clip(y2t - ay, 0.0, tmax)
        tgt = jnp.stack([d_l, d_t, d_r, d_b], axis=0)                  # (4, 8, 128)

        # logits layout: pd_ref[k, c] -> (r_tile, 128) logits for bin k, coord c
        m = pd_ref[0, :, rows, :]                                      # (4, 8, 128)
        for k in range(1, REG_MAX):
            m = jnp.maximum(m, pd_ref[k, :, rows, :])
        ssum = jnp.zeros_like(m)
        interp = jnp.zeros_like(m)
        for k in range(REG_MAX):
            lk = pd_ref[k, :, rows, :]
            ssum = ssum + jnp.exp(lk - m)
            # triangular weights == {wl at tl, wr at tl+1, 0 elsewhere}
            interp = interp + lk * jnp.maximum(1.0 - jnp.abs(tgt - float(k)), 0.0)
        lse = jnp.log(ssum) + m
        dfl4 = lse - interp                                            # (4, 8, 128)
        dfl = (dfl4[0] + dfl4[1] + dfl4[2] + dfl4[3]) * 0.25
        dfl_acc[...] += jnp.where(valid, dfl * w, 0.0)

    # Per-core partial sums; the HBM writeback only happens when the output
    # block (indexed by `core`) changes / the grid ends.
    iou_out[0] = iou_acc[...]
    dfl_out[0] = dfl_acc[...]


def rotated_bbox_loss_pallas(pred_dist, pred_bboxes, anchor_points, target_bboxes,
                             target_scores, target_scores_sum, fg_mask, tile=8192):
    """pred_bboxes / target_bboxes: (B, N, 5) xywhr; pred_dist: (B, N, 4*REG_MAX)."""
    B, N, _ = pred_bboxes.shape
    A = B * N
    assert tile % 1024 == 0          # whole (8,128) anchor chunks per block
    r_tile = tile // 128
    f32 = jnp.float32

    A128 = ((A + 127) // 128) * 128          # pad anchors to lane granularity only
    r_valid = A128 // 128                    # number of valid 128-anchor rows
    n_tiles = -(-r_valid // r_tile)          # cdiv: blocks actually containing data
    half = -(-n_tiles // 2)                  # steps per core (2-way split)

    pb = pred_bboxes.reshape(A, 5).astype(f32)
    tb = target_bboxes.reshape(A, 5).astype(f32)
    ap = jnp.broadcast_to(anchor_points[None].astype(f32), (B, N, 2)).reshape(A, 2)
    weight = (target_scores.astype(f32).sum(-1) * fg_mask.astype(f32)).reshape(A)

    # TODO(synk): sin/cos of the box angle are computed in glue (trig lowering
    # in Mosaic not relied upon); everything else stays in-kernel.
    rows = [
        pb[:, 0], pb[:, 1], pb[:, 2], pb[:, 3], jnp.cos(pb[:, 4]), jnp.sin(pb[:, 4]),
        tb[:, 0], tb[:, 1], tb[:, 2], tb[:, 3], jnp.cos(tb[:, 4]), jnp.sin(tb[:, 4]),
        ap[:, 0], ap[:, 1], weight,
    ]
    feat = jnp.stack(rows, axis=0)                         # (15, A) feature-major
    feat = jnp.pad(feat, ((0, 0), (0, A128 - A)))          # pad weight rows are 0
    feat = feat.reshape(15, r_valid, 128)

    pd = pred_dist.reshape(A, 4, REG_MAX).astype(f32)
    pd = jnp.pad(pd, ((0, A128 - A), (0, 0), (0, 0)))
    pd = jnp.transpose(pd, (2, 1, 0)).reshape(REG_MAX, 4, r_valid, 128)

    def blk(c, s):
        # clamp so the DMA never walks past the array; masked in-kernel.
        return jnp.minimum(c * half + s, n_tiles - 1)

    kernel = functools.partial(_rotated_bbox_loss_kernel,
                               r_tile=r_tile, half=half, r_valid=r_valid)

    iou_part, dfl_part = pl.pallas_call(
        kernel,
        out_shape=(jax.ShapeDtypeStruct((2, 8, 128), f32),
                   jax.ShapeDtypeStruct((2, 8, 128), f32)),
        grid_spec=pltpu.PrefetchScalarGridSpec(
            num_scalar_prefetch=0,
            grid=(2, half),
            in_specs=[
                pl.BlockSpec((15, r_tile, 128), lambda c, s: (0, blk(c, s), 0)),
                pl.BlockSpec((REG_MAX, 4, r_tile, 128), lambda c, s: (0, 0, blk(c, s), 0)),
            ],
            out_specs=(pl.BlockSpec((1, 8, 128), lambda c, s: (c, 0, 0)),
                       pl.BlockSpec((1, 8, 128), lambda c, s: (c, 0, 0))),
            scratch_shapes=[pltpu.VMEM((8, 128), f32),
                            pltpu.VMEM((8, 128), f32)]),
        compiler_params=pltpu.CompilerParams(
            dimension_semantics=("parallel", "arbitrary")),
    )(feat, pd)

    loss_iou = jnp.sum(iou_part) / target_scores_sum
    loss_dfl = jnp.sum(dfl_part) / target_scores_sum
    return loss_iou, loss_dfl


# ----------------------------- pure-JAX reference -----------------------------

def _probiou_ref(obb1, obb2, eps=EPS):
    x1, y1 = obb1[..., 0], obb1[..., 1]
    x2, y2 = obb2[..., 0], obb2[..., 1]
    w1, h1, r1 = obb1[..., 2], obb1[..., 3], obb1[..., 4]
    w2, h2, r2 = obb2[..., 2], obb2[..., 3], obb2[..., 4]
    ga1, gb1 = w1 ** 2 / 12.0, h1 ** 2 / 12.0
    ga2, gb2 = w2 ** 2 / 12.0, h2 ** 2 / 12.0
    c1c, s1c = jnp.cos(r1), jnp.sin(r1)
    c2c, s2c = jnp.cos(r2), jnp.sin(r2)
    a1 = ga1 * c1c ** 2 + gb1 * s1c ** 2
    b1 = ga1 * s1c ** 2 + gb1 * c1c ** 2
    c1 = (ga1 - gb1) * c1c * s1c
    a2 = ga2 * c2c ** 2 + gb2 * s2c ** 2
    b2 = ga2 * s2c ** 2 + gb2 * c2c ** 2
    c2 = (ga2 - gb2) * c2c * s2c
    den = (a1 + a2) * (b1 + b2) - (c1 + c2) ** 2
    t1 = ((a1 + a2) * (y1 - y2) ** 2 + (b1 + b2) * (x1 - x2) ** 2) / (den + eps) * 0.25
    t2 = ((c1 + c2) * (x2 - x1) * (y1 - y2)) / (den + eps) * 0.5
    t3 = jnp.log(den / (4.0 * jnp.sqrt(jnp.maximum(a1 * b1 - c1 ** 2, 0.0) *
                                       jnp.maximum(a2 * b2 - c2 ** 2, 0.0)) + eps) + eps) * 0.5
    bd = jnp.clip(t1 + t2 + t3, eps, 100.0)
    hd = jnp.sqrt(1.0 - jnp.exp(-bd) + eps)
    return 1.0 - hd


def rotated_bbox_loss_ref(pred_dist, pred_bboxes, anchor_points, target_bboxes,
                          target_scores, target_scores_sum, fg_mask):
    B, N, _ = pred_bboxes.shape
    fg = fg_mask.astype(jnp.float32)
    weight = target_scores.sum(-1) * fg

    iou = _probiou_ref(pred_bboxes, target_bboxes)                      # (B, N)
    loss_iou = jnp.sum((1.0 - iou) * weight) / target_scores_sum

    ap = anchor_points[None]
    cxy, wh = target_bboxes[..., :2], target_bboxes[..., 2:4]
    xy1, xy2 = cxy - wh / 2.0, cxy + wh / 2.0
    tgt = jnp.clip(jnp.concatenate([ap - xy1, xy2 - ap], -1),
                   0.0, REG_MAX - 1 - 0.01)                             # (B, N, 4)
    tl = jnp.floor(tgt)
    wl = tl + 1.0 - tgt
    wr = 1.0 - wl
    logits = pred_dist.reshape(B, N, 4, REG_MAX)
    lsm = jax.nn.log_softmax(logits, axis=-1)
    tl_i = tl.astype(jnp.int32)
    ce_l = -jnp.take_along_axis(lsm, tl_i[..., None], -1)[..., 0]
    ce_r = -jnp.take_along_axis(lsm, (tl_i + 1)[..., None], -1)[..., 0]
    dfl = (ce_l * wl + ce_r * wr).mean(-1) * weight
    loss_dfl = jnp.sum(dfl) / target_scores_sum
    return loss_iou, loss_dfl


if __name__ == "__main__":
    # Shapes chosen so the default tile=8192 exercises every tiling path:
    # A = 18432 anchors -> 144 lane-rows -> 3 blocks of 64 rows (last partial),
    # grid (2, 2): core0 gets two full blocks, core1 gets one partial block and
    # one fully-masked overhang step.
    B, H, W, C = 2, 96, 96, 4
    N = H * W

    key = jax.random.PRNGKey(0)
    keys = jax.random.split(key, 8)

    gy, gx = jnp.meshgrid(jnp.arange(H, dtype=jnp.float32),
                          jnp.arange(W, dtype=jnp.float32), indexing="ij")
    anchor_points = jnp.stack([gx.reshape(-1), gy.reshape(-1)], -1) + 0.5   # (N, 2)
    ap_b = jnp.broadcast_to(anchor_points[None], (B, N, 2))

    wh_t = jax.random.uniform(keys[0], (B, N, 2), minval=2.0, maxval=8.0)
    ctr_t = ap_b + jax.random.uniform(keys[1], (B, N, 2), minval=-1.0, maxval=1.0)
    ang_t = jax.random.uniform(keys[2], (B, N, 1), minval=-0.6, maxval=0.6)
    target_bboxes = jnp.concatenate([ctr_t, wh_t, ang_t], -1)               # (B, N, 5)

    wh_p = jnp.clip(wh_t + jax.random.uniform(keys[3], (B, N, 2), minval=-0.8, maxval=0.8),
                    0.5, None)
    ctr_p = ctr_t + jax.random.uniform(keys[4], (B, N, 2), minval=-0.8, maxval=0.8)
    ang_p = ang_t + jax.random.uniform(keys[5], (B, N, 1), minval=-0.3, maxval=0.3)
    pred_bboxes = jnp.concatenate([ctr_p, wh_p, ang_p], -1)                 # (B, N, 5)

    pred_dist = jax.random.normal(keys[6], (B, N, 4 * REG_MAX), dtype=jnp.float32)
    target_scores = jax.random.uniform(keys[7], (B, N, C), dtype=jnp.float32)
    fg_mask = jax.random.uniform(jax.random.PRNGKey(1), (B, N)) > 0.4
    target_scores_sum = jnp.maximum(target_scores.sum(), 1.0)

    loss_iou, loss_dfl = jax.jit(rotated_bbox_loss_pallas)(
        pred_dist, pred_bboxes, anchor_points, target_bboxes,
        target_scores, target_scores_sum, fg_mask)
    jax.block_until_ready((loss_iou, loss_dfl))

    ref_iou, ref_dfl = rotated_bbox_loss_ref(
        pred_dist, pred_bboxes, anchor_points, target_bboxes,
        target_scores, target_scores_sum, fg_mask)

    # slightly widened tolerance to cover pl.reciprocal(approx=True)
    assert jnp.allclose(loss_iou, ref_iou, rtol=4e-3, atol=4e-3), (loss_iou, ref_iou)
    assert jnp.allclose(loss_dfl, ref_dfl, rtol=4e-3, atol=4e-3), (loss_dfl, ref_dfl)

    print("KERNEL_OK")
</pallas_src>

<mosaic_0001>
module attributes {stable_mosaic.version = 11 : i64} {
  func.func @_rotated_bbox_loss_kernel(%arg0: i32, %arg1: i32, %arg2: memref<15x64x128xf32, #tpu.memory_space<vmem>>, %arg3: memref<16x4x64x128xf32, #tpu.memory_space<vmem>>, %arg4: memref<1x8x128xf32, #tpu.memory_space<vmem>>, %arg5: memref<1x8x128xf32, #tpu.memory_space<vmem>>, %arg6: memref<8x128xf32, #tpu.memory_space<vmem>>, %arg7: memref<8x128xf32, #tpu.memory_space<vmem>>) attributes {dimension_semantics = [#tpu.dimension_semantics<parallel>, #tpu.dimension_semantics<arbitrary>], iteration_bounds = array<i64: 2, 2>, scalar_prefetch = 0 : i64, scratch_operands = 2 : i64, tpu.core_type = #tpu.core_type<tc>, window_params = [{transform_indices = @transform_0, window_bounds = array<i64: 15, 64, 128>}, {transform_indices = @transform_1, window_bounds = array<i64: 16, 4, 64, 128>}, {transform_indices = @transform_2, window_bounds = array<i64: 1, 8, 128>}, {transform_indices = @transform_3, window_bounds = array<i64: 1, 8, 128>}]} {
    %c0_i32 = arith.constant 0 : i32
    %0 = arith.cmpi eq, %arg1, %c0_i32 : i32
    %1 = arith.extui %0 : i1 to i32
    %c0_i32_0 = arith.constant 0 : i32
    %2 = arith.cmpi ne, %1, %c0_i32_0 : i32
    scf.if %2 {
      %cst = arith.constant 0.000000e+00 : f32
      %16 = vector.broadcast %cst : f32 to vector<8x128xf32>
      %c0_12 = arith.constant 0 : index
      %c0_13 = arith.constant 0 : index
      %17 = vector.load %arg6[%c0_12, %c0_13] : memref<8x128xf32, #tpu.memory_space<vmem>>, vector<8x128xf32>
      tpu.vector_store %arg6[%c0_12, %c0_13], %16 {strides = array<i32>} : memref<8x128xf32, #tpu.memory_space<vmem>>, vector<8x128xf32>,
      %cst_14 = arith.constant 0.000000e+00 : f32
      %18 = vector.broadcast %cst_14 : f32 to vector<8x128xf32>
      %c0_15 = arith.constant 0 : index
      %c0_16 = arith.constant 0 : index
      %19 = vector.load %arg7[%c0_15, %c0_16] : memref<8x128xf32, #tpu.memory_space<vmem>>, vector<8x128xf32>
      tpu.vector_store %arg7[%c0_15, %c0_16], %18 {strides = array<i32>} : memref<8x128xf32, #tpu.memory_space<vmem>>, vector<8x128xf32>,
    } else {
    }
    %c2_i32 = arith.constant 2 : i32
    %3 = arith.muli %arg0, %c2_i32 : i32
    %4 = arith.addi %3, %arg1 : i32
    %c64_i32 = arith.constant 64 : i32
    %5 = arith.muli %4, %c64_i32 : i32
    %6 = tpu.iota {dimensions = array<i32: 0>} : vector<8x128xi32>
    %c0_i32_1 = arith.constant 0 : i32
    %c8_i32 = arith.constant 8 : i32
    %7 = arith.addi %c0_i32_1, %c8_i32 : i32
    %c1_i32 = arith.constant 1 : i32
    scf.for %arg8 = %c0_i32_1 to %7 step %c1_i32  : i32 {
      %c1_i32_12 = arith.constant 1 : i32
      %16 = arith.muli %arg8, %c1_i32_12 : i32
      %c0_i32_13 = arith.constant 0 : i32
      %17 = arith.addi %c0_i32_13, %16 : i32
      %c8_i32_14 = arith.constant 8 : i32
      %18 = arith.muli %17, %c8_i32_14 : i32
      %19 = tpu.assume_multiple %18, 8 : i32
      %c8_i32_15 = arith.constant 8 : i32
      %20 = arith.muli %17, %c8_i32_15 : i32
      %21 = arith.addi %5, %20 : i32
      %22 = vector.broadcast %21 : i32 to vector<8x128xi32>
      %23 = arith.addi %22, %6 : vector<8x128xi32>
      %c144_i32 = arith.constant 144 : i32
      %24 = vector.broadcast %c144_i32 : i32 to vector<8x128xi32>
      %25 = arith.cmpi slt, %23, %24 : vector<8x128xi32>
      %c0_16 = arith.constant 0 : index
      %26 = arith.index_cast %19 : i32 to index
      %c0_17 = arith.constant 0 : index
      %27 = vector.load %arg2[%c0_16, %26, %c0_17] : memref<15x64x128xf32, #tpu.memory_space<vmem>>, vector<1x8x128xf32>
      %28 = vector.shape_cast %27 : vector<1x8x128xf32> to vector<8x128xf32>
      %c1 = arith.constant 1 : index
      %29 = arith.index_cast %19 : i32 to index
      %c0_18 = arith.constant 0 : index
      %30 = vector.load %arg2[%c1, %29, %c0_18] : memref<15x64x128xf32, #tpu.memory_space<vmem>>, vector<1x8x128xf32>
      %31 = vector.shape_cast %30 : vector<1x8x128xf32> to vector<8x128xf32>
      %c2 = arith.constant 2 : index
      %32 = arith.index_cast %19 : i32 to index
      %c0_19 = arith.constant 0 : index
      %33 = vector.load %arg2[%c2, %32, %c0_19] : memref<15x64x128xf32, #tpu.memory_space<vmem>>, vector<1x8x128xf32>
      %34 = vector.shape_cast %33 : vector<1x8x128xf32> to vector<8x128xf32>
      %c3 = arith.constant 3 : index
      %35 = arith.index_cast %19 : i32 to index
      %c0_20 = arith.constant 0 : index
      %36 = vector.load %arg2[%c3, %35, %c0_20] : memref<15x64x128xf32, #tpu.memory_space<vmem>>, vector<1x8x128xf32>
      %37 = vector.shape_cast %36 : vector<1x8x128xf32> to vector<8x128xf32>
      %c4 = arith.constant 4 : index
      %38 = arith.index_cast %19 : i32 to index
      %c0_21 = arith.constant 0 : index
      %39 = vector.load %arg2[%c4, %38, %c0_21] : memref<15x64x128xf32, #tpu.memory_space<vmem>>, vector<1x8x128xf32>
      %40 = vector.shape_cast %39 : vector<1x8x128xf32> to vector<8x128xf32>
      %c5 = arith.constant 5 : index
      %41 = arith.index_cast %19 : i32 to index
      %c0_22 = arith.constant 0 : index
      %42 = vector.load %arg2[%c5, %41, %c0_22] : memref<15x64x128xf32, #tpu.memory_space<vmem>>, vector<1x8x128xf32>
      %43 = vector.shape_cast %42 : vector<1x8x128xf32> to vector<8x128xf32>
      %c6 = arith.constant 6 : index
      %44 = arith.index_cast %19 : i32 to index
      %c0_23 = arith.constant 0 : index
      %45 = vector.load %arg2[%c6, %44, %c0_23] : memref<15x64x128xf32, #tpu.memory_space<vmem>>, vector<1x8x128xf32>
      %46 = vector.shape_cast %45 : vector<1x8x128xf32> to vector<8x128xf32>
      %c7 = arith.constant 7 : index
      %47 = arith.index_cast %19 : i32 to index
      %c0_24 = arith.constant 0 : index
      %48 = vector.load %arg2[%c7, %47, %c0_24] : memref<15x64x128xf32, #tpu.memory_space<vmem>>, vector<1x8x128xf32>
      %49 = vector.shape_cast %48 : vector<1x8x128xf32> to vector<8x128xf32>
      %c8 = arith.constant 8 : index
      %50 = arith.index_cast %19 : i32 to index
      %c0_25 = arith.constant 0 : index
      %51 = vector.load %arg2[%c8, %50, %c0_25] : memref<15x64x128xf32, #tpu.memory_space<vmem>>, vector<1x8x128xf32>
      %52 = vector.shape_cast %51 : vector<1x8x128xf32> to vector<8x128xf32>
      %c9 = arith.constant 9 : index
      %53 = arith.index_cast %19 : i32 to index
      %c0_26 = arith.constant 0 : index
      %54 = vector.load %arg2[%c9, %53, %c0_26] : memref<15x64x128xf32, #tpu.memory_space<vmem>>, vector<1x8x128xf32>
      %55 = vector.shape_cast %54 : vector<1x8x128xf32> to vector<8x128xf32>
      %c10 = arith.constant 10 : index
      %56 = arith.index_cast %19 : i32 to index
      %c0_27 = arith.constant 0 : index
      %57 = vector.load %arg2[%c10, %56, %c0_27] : memref<15x64x128xf32, #tpu.memory_space<vmem>>, vector<1x8x128xf32>
      %58 = vector.shape_cast %57 : vector<1x8x128xf32> to vector<8x128xf32>
      %c11 = arith.constant 11 : index
      %59 = arith.index_cast %19 : i32 to index
      %c0_28 = arith.constant 0 : index
      %60 = vector.load %arg2[%c11, %59, %c0_28] : memref<15x64x128xf32, #tpu.memory_space<vmem>>, vector<1x8x128xf32>
      %61 = vector.shape_cast %60 : vector<1x8x128xf32> to vector<8x128xf32>
      %c12 = arith.constant 12 : index
      %62 = arith.index_cast %19 : i32 to index
      %c0_29 = arith.constant 0 : index
      %63 = vector.load %arg2[%c12, %62, %c0_29] : memref<15x64x128xf32, #tpu.memory_space<vmem>>, vector<1x8x128xf32>
      %64 = vector.shape_cast %63 : vector<1x8x128xf32> to vector<8x128xf32>
      %c13 = arith.constant 13 : index
      %65 = arith.index_cast %19 : i32 to index
      %c0_30 = arith.constant 0 : index
      %66 = vector.load %arg2[%c13, %65, %c0_30] : memref<15x64x128xf32, #tpu.memory_space<vmem>>, vector<1x8x128xf32>
      %67 = vector.shape_cast %66 : vector<1x8x128xf32> to vector<8x128xf32>
      %c14 = arith.constant 14 : index
      %68 = arith.index_cast %19 : i32 to index
      %c0_31 = arith.constant 0 : index
      %69 = vector.load %arg2[%c14, %68, %c0_31] : memref<15x64x128xf32, #tpu.memory_space<vmem>>, vector<1x8x128xf32>
      %70 = vector.shape_cast %69 : vector<1x8x128xf32> to vector<8x128xf32>
      %cst = arith.constant 0.000000e+00 : f32
      %71 = vector.broadcast %cst : f32 to vector<8x128xf32>
      %72 = arith.cmpf ogt, %70, %71 : vector<8x128xf32>
      %73 = arith.andi %25, %72 : vector<8x128xi1>
      %74 = arith.mulf %34, %34 : vector<8x128xf32>
      %cst_32 = arith.constant 0.0833333358 : f32
      %75 = vector.broadcast %cst_32 : f32 to vector<8x128xf32>
      %76 = arith.mulf %74, %75 : vector<8x128xf32>
      %77 = arith.mulf %37, %37 : vector<8x128xf32>
      %cst_33 = arith.constant 0.0833333358 : f32
      %78 = vector.broadcast %cst_33 : f32 to vector<8x128xf32>
      %79 = arith.mulf %77, %78 : vector<8x128xf32>
      %80 = arith.mulf %52, %52 : vector<8x128xf32>
      %cst_34 = arith.constant 0.0833333358 : f32
      %81 = vector.broadcast %cst_34 : f32 to vector<8x128xf32>
      %82 = arith.mulf %80, %81 : vector<8x128xf32>
      %83 = arith.mulf %55, %55 : vector<8x128xf32>
      %cst_35 = arith.constant 0.0833333358 : f32
      %84 = vector.broadcast %cst_35 : f32 to vector<8x128xf32>
      %85 = arith.mulf %83, %84 : vector<8x128xf32>
      %86 = arith.mulf %40, %40 : vector<8x128xf32>
      %87 = arith.mulf %43, %43 : vector<8x128xf32>
      %88 = arith.mulf %58, %58 : vector<8x128xf32>
      %89 = arith.mulf %61, %61 : vector<8x128xf32>
      %90 = arith.mulf %76, %86 : vector<8x128xf32>
      %91 = arith.mulf %79, %87 : vector<8x128xf32>
      %92 = arith.addf %90, %91 : vector<8x128xf32>
      %93 = arith.mulf %76, %87 : vector<8x128xf32>
      %94 = arith.mulf %79, %86 : vector<8x128xf32>
      %95 = arith.addf %93, %94 : vector<8x128xf32>
      %96 = arith.subf %76, %79 : vector<8x128xf32>
      %97 = arith.mulf %96, %40 : vector<8x128xf32>
      %98 = arith.mulf %97, %43 : vector<8x128xf32>
      %99 = arith.mulf %82, %88 : vector<8x128xf32>
      %100 = arith.mulf %85, %89 : vector<8x128xf32>
      %101 = arith.addf %99, %100 : vector<8x128xf32>
      %102 = arith.mulf %82, %89 : vector<8x128xf32>
      %103 = arith.mulf %85, %88 : vector<8x128xf32>
      %104 = arith.addf %102, %103 : vector<8x128xf32>
      %105 = arith.subf %82, %85 : vector<8x128xf32>
      %106 = arith.mulf %105, %58 : vector<8x128xf32>
      %107 = arith.mulf %106, %61 : vector<8x128xf32>
      %108 = arith.addf %92, %101 : vector<8x128xf32>
      %109 = arith.addf %95, %104 : vector<8x128xf32>
      %110 = arith.addf %98, %107 : vector<8x128xf32>
      %111 = arith.subf %28, %46 : vector<8x128xf32>
      %112 = arith.subf %31, %49 : vector<8x128xf32>
      %113 = arith.mulf %108, %109 : vector<8x128xf32>
      %114 = arith.mulf %110, %110 : vector<8x128xf32>
      %115 = arith.subf %113, %114 : vector<8x128xf32>
      %cst_36 = arith.constant 1.000000e-07 : f32
      %116 = vector.broadcast %cst_36 : f32 to vector<8x128xf32>
      %117 = arith.addf %115, %116 : vector<8x128xf32>
      %118 = tpu.reciprocal %117 {approx = true} : vector<8x128xf32> -> vector<8x128xf32>
      %119 = arith.mulf %108, %112 : vector<8x128xf32>
      %120 = arith.mulf %119, %112 : vector<8x128xf32>
      %121 = arith.mulf %109, %111 : vector<8x128xf32>
      %122 = arith.mulf %121, %111 : vector<8x128xf32>
      %123 = arith.addf %120, %122 : vector<8x128xf32>
      %124 = arith.mulf %123, %118 : vector<8x128xf32>
      %cst_37 = arith.constant 2.500000e-01 : f32
      %125 = vector.broadcast %cst_37 : f32 to vector<8x128xf32>
      %126 = arith.mulf %124, %125 : vector<8x128xf32>
      %cst_38 = arith.constant 0.000000e+00 : f32
      %127 = vector.broadcast %cst_38 : f32 to vector<8x128xf32>
      %128 = arith.subf %127, %111 : vector<8x128xf32>
      %129 = arith.mulf %110, %128 : vector<8x128xf32>
      %130 = arith.mulf %129, %112 : vector<8x128xf32>
      %131 = arith.mulf %130, %118 : vector<8x128xf32>
      %cst_39 = arith.constant 5.000000e-01 : f32
      %132 = vector.broadcast %cst_39 : f32 to vector<8x128xf32>
      %133 = arith.mulf %131, %132 : vector<8x128xf32>
      %134 = arith.mulf %92, %95 : vector<8x128xf32>
      %135 = arith.mulf %98, %98 : vector<8x128xf32>
      %136 = arith.subf %134, %135 : vector<8x128xf32>
      %cst_40 = arith.constant 0.000000e+00 : f32
      %137 = vector.broadcast %cst_40 : f32 to vector<8x128xf32>
      %138 = arith.maximumf %136, %137 : vector<8x128xf32>
      %139 = arith.mulf %101, %104 : vector<8x128xf32>
      %140 = arith.mulf %107, %107 : vector<8x128xf32>
      %141 = arith.subf %139, %140 : vector<8x128xf32>
      %cst_41 = arith.constant 0.000000e+00 : f32
      %142 = vector.broadcast %cst_41 : f32 to vector<8x128xf32>
      %143 = arith.maximumf %141, %142 : vector<8x128xf32>
      %144 = arith.mulf %138, %143 : vector<8x128xf32>
      %145 = math.sqrt %144 : vector<8x128xf32>
      %cst_42 = arith.constant 4.000000e+00 : f32
      %146 = vector.broadcast %cst_42 : f32 to vector<8x128xf32>
      %147 = arith.mulf %146, %145 : vector<8x128xf32>
      %cst_43 = arith.constant 1.000000e-07 : f32
      %148 = vector.broadcast %cst_43 : f32 to vector<8x128xf32>
      %149 = arith.addf %147, %148 : vector<8x128xf32>
      %150 = tpu.reciprocal %149 {approx = true} : vector<8x128xf32> -> vector<8x128xf32>
      %151 = arith.mulf %115, %150 : vector<8x128xf32>
      %cst_44 = arith.constant 1.000000e-07 : f32
      %152 = vector.broadcast %cst_44 : f32 to vector<8x128xf32>
      %153 = arith.addf %151, %152 : vector<8x128xf32>
      %154 = math.log %153 : vector<8x128xf32>
      %cst_45 = arith.constant 5.000000e-01 : f32
      %155 = vector.broadcast %cst_45 : f32 to vector<8x128xf32>
      %156 = arith.mulf %155, %154 : vector<8x128xf32>
      %157 = arith.addf %126, %133 : vector<8x128xf32>
      %158 = arith.addf %157, %156 : vector<8x128xf32>
      %cst_46 = arith.constant 1.000000e-07 : f32
      %cst_47 = arith.constant 1.000000e+02 : f32
      %159 = vector.broadcast %cst_46 : f32 to vector<8x128xf32>
      %160 = arith.maximumf %159, %158 : vector<8x128xf32>
      %161 = vector.broadcast %cst_47 : f32 to vector<8x128xf32>
      %162 = arith.minimumf %161, %160 : vector<8x128xf32>
      %cst_48 = arith.constant 0.000000e+00 : f32
      %163 = vector.broadcast %cst_48 : f32 to vector<8x128xf32>
      %164 = arith.subf %163, %162 : vector<8x128xf32>
      %165 = math.exp %164 : vector<8x128xf32>
      %cst_49 = arith.constant 1.000000e+00 : f32
      %166 = vector.broadcast %cst_49 : f32 to vector<8x128xf32>
      %167 = arith.subf %166, %165 : vector<8x128xf32>
      %cst_50 = arith.constant 1.000000e-07 : f32
      %168 = vector.broadcast %cst_50 : f32 to vector<8x128xf32>
      %169 = arith.addf %167, %168 : vector<8x128xf32>
      %170 = math.sqrt %169 : vector<8x128xf32>
      %c0_51 = arith.constant 0 : index
      %c0_52 = arith.constant 0 : index
      %171 = vector.load %arg6[%c0_51, %c0_52] : memref<8x128xf32, #tpu.memory_space<vmem>>, vector<8x128xf32>
      %172 = arith.mulf %170, %70 : vector<8x128xf32>
      %cst_53 = arith.constant 0.000000e+00 : f32
      %173 = vector.broadcast %cst_53 : f32 to vector<8x128xf32>
      %174 = arith.select %73, %172, %173 : vector<8x128xi1>, vector<8x128xf32>
      %175 = arith.addf %171, %174 : vector<8x128xf32>
      %c0_54 = arith.constant 0 : index
      %c0_55 = arith.constant 0 : index
      %176 = vector.load %arg6[%c0_54, %c0_55] : memref<8x128xf32, #tpu.memory_space<vmem>>, vector<8x128xf32>
      tpu.vector_store %arg6[%c0_54, %c0_55], %175 {strides = array<i32>} : memref<8x128xf32, #tpu.memory_space<vmem>>, vector<8x128xf32>,
      %cst_56 = arith.constant 5.000000e-01 : f32
      %177 = vector.broadcast %cst_56 : f32 to vector<8x128xf32>
      %178 = arith.mulf %52, %177 : vector<8x128xf32>
      %cst_57 = arith.constant 5.000000e-01 : f32
      %179 = vector.broadcast %cst_57 : f32 to vector<8x128xf32>
      %180 = arith.mulf %55, %179 : vector<8x128xf32>
      %181 = arith.subf %46, %178 : vector<8x128xf32>
      %182 = arith.subf %49, %180 : vector<8x128xf32>
      %183 = arith.addf %46, %178 : vector<8x128xf32>
      %184 = arith.addf %49, %180 : vector<8x128xf32>
      %185 = arith.subf %64, %181 : vector<8x128xf32>
      %cst_58 = arith.constant 0.000000e+00 : f32
      %cst_59 = arith.constant 1.499000e+01 : f32
      %186 = vector.broadcast %cst_58 : f32 to vector<8x128xf32>
      %187 = arith.maximumf %186, %185 : vector<8x128xf32>
      %188 = vector.broadcast %cst_59 : f32 to vector<8x128xf32>
      %189 = arith.minimumf %188, %187 : vector<8x128xf32>
      %190 = arith.subf %67, %182 : vector<8x128xf32>
      %cst_60 = arith.constant 0.000000e+00 : f32
      %cst_61 = arith.constant 1.499000e+01 : f32
      %191 = vector.broadcast %cst_60 : f32 to vector<8x128xf32>
      %192 = arith.maximumf %191, %190 : vector<8x128xf32>
      %193 = vector.broadcast %cst_61 : f32 to vector<8x128xf32>
      %194 = arith.minimumf %193, %192 : vector<8x128xf32>
      %195 = arith.subf %183, %64 : vector<8x128xf32>
      %cst_62 = arith.constant 0.000000e+00 : f32
      %cst_63 = arith.constant 1.499000e+01 : f32
      %196 = vector.broadcast %cst_62 : f32 to vector<8x128xf32>
      %197 = arith.maximumf %196, %195 : vector<8x128xf32>
      %198 = vector.broadcast %cst_63 : f32 to vector<8x128xf32>
      %199 = arith.minimumf %198, %197 : vector<8x128xf32>
      %200 = arith.subf %184, %67 : vector<8x128xf32>
      %cst_64 = arith.constant 0.000000e+00 : f32
      %cst_65 = arith.constant 1.499000e+01 : f32
      %201 = vector.broadcast %cst_64 : f32 to vector<8x128xf32>
      %202 = arith.maximumf %201, %200 : vector<8x128xf32>
      %203 = vector.broadcast %cst_65 : f32 to vector<8x128xf32>
      %204 = arith.minimumf %203, %202 : vector<8x128xf32>
      %205 = vector.shape_cast %189 : vector<8x128xf32> to vector<1x8x128xf32>
      %206 = vector.shape_cast %194 : vector<8x128xf32> to vector<1x8x128xf32>
      %207 = vector.shape_cast %199 : vector<8x128xf32> to vector<1x8x128xf32>
      %208 = vector.shape_cast %204 : vector<8x128xf32> to vector<1x8x128xf32>
      %209 = tpu.concatenate %205, %206, %207, %208 in 0 : vector<1x8x128xf32>, vector<1x8x128xf32>, vector<1x8x128xf32>, vector<1x8x128xf32> -> vector<4x8x128xf32>
      %c0_66 = arith.constant 0 : index
      %c0_67 = arith.constant 0 : index
      %210 = arith.index_cast %19 : i32 to index
      %c0_68 = arith.constant 0 : index
      %211 = vector.load %arg3[%c0_66, %c0_67, %210, %c0_68] : memref<16x4x64x128xf32, #tpu.memory_space<vmem>>, vector<1x4x8x128xf32>
      %212 = vector.shape_cast %211 : vector<1x4x8x128xf32> to vector<4x8x128xf32>
      %c1_69 = arith.constant 1 : index
      %c0_70 = arith.constant 0 : index
      %213 = arith.index_cast %19 : i32 to index
      %c0_71 = arith.constant 0 : index
      %214 = vector.load %arg3[%c1_69, %c0_70, %213, %c0_71] : memref<16x4x64x128xf32, #tpu.memory_space<vmem>>, vector<1x4x8x128xf32>
      %215 = vector.shape_cast %214 : vector<1x4x8x128xf32> to vector<4x8x128xf32>
      %216 = arith.maximumf %212, %215 : vector<4x8x128xf32>
      %c2_72 = arith.constant 2 : index
      %c0_73 = arith.constant 0 : index
      %217 = arith.index_cast %19 : i32 to index
      %c0_74 = arith.constant 0 : index
      %218 = vector.load %arg3[%c2_72, %c0_73, %217, %c0_74] : memref<16x4x64x128xf32, #tpu.memory_space<vmem>>, vector<1x4x8x128xf32>
      %219 = vector.shape_cast %218 : vector<1x4x8x128xf32> to vector<4x8x128xf32>
      %220 = arith.maximumf %216, %219 : vector<4x8x128xf32>
      %c3_75 = arith.constant 3 : index
      %c0_76 = arith.constant 0 : index
      %221 = arith.index_cast %19 : i32 to index
      %c0_77 = arith.constant 0 : index
      %222 = vector.load %arg3[%c3_75, %c0_76, %221, %c0_77] : memref<16x4x64x128xf32, #tpu.memory_space<vmem>>, vector<1x4x8x128xf32>
      %223 = vector.shape_cast %222 : vector<1x4x8x128xf32> to vector<4x8x128xf32>
      %224 = arith.maximumf %220, %223 : vector<4x8x128xf32>
      %c4_78 = arith.constant 4 : index
      %c0_79 = arith.constant 0 : index
      %225 = arith.index_cast %19 : i32 to index
      %c0_80 = arith.constant 0 : index
      %226 = vector.load %arg3[%c4_78, %c0_79, %225, %c0_80] : memref<16x4x64x128xf32, #tpu.memory_space<vmem>>, vector<1x4x8x128xf32>
      %227 = vector.shape_cast %226 : vector<1x4x8x128xf32> to vector<4x8x128xf32>
      %228 = arith.maximumf %224, %227 : vector<4x8x128xf32>
      %c5_81 = arith.constant 5 : index
      %c0_82 = arith.constant 0 : index
      %229 = arith.index_cast %19 : i32 to index
      %c0_83 = arith.constant 0 : index
      %230 = vector.load %arg3[%c5_81, %c0_82, %229, %c0_83] : memref<16x4x64x128xf32, #tpu.memory_space<vmem>>, vector<1x4x8x128xf32>
      %231 = vector.shape_cast %230 : vector<1x4x8x128xf32> to vector<4x8x128xf32>
      %232 = arith.maximumf %228, %231 : vector<4x8x128xf32>
      %c6_84 = arith.constant 6 : index
      %c0_85 = arith.constant 0 : index
      %233 = arith.index_cast %19 : i32 to index
      %c0_86 = arith.constant 0 : index
      %234 = vector.load %arg3[%c6_84, %c0_85, %233, %c0_86] : memref<16x4x64x128xf32, #tpu.memory_space<vmem>>, vector<1x4x8x128xf32>
      %235 = vector.shape_cast %234 : vector<1x4x8x128xf32> to vector<4x8x128xf32>
      %236 = arith.maximumf %232, %235 : vector<4x8x128xf32>
      %c7_87 = arith.constant 7 : index
      %c0_88 = arith.constant 0 : index
      %237 = arith.index_cast %19 : i32 to index
      %c0_89 = arith.constant 0 : index
      %238 = vector.load %arg3[%c7_87, %c0_88, %237, %c0_89] : memref<16x4x64x128xf32, #tpu.memory_space<vmem>>, vector<1x4x8x128xf32>
      %239 = vector.shape_cast %238 : vector<1x4x8x128xf32> to vector<4x8x128xf32>
      %240 = arith.maximumf %236, %239 : vector<4x8x128xf32>
      %c8_90 = arith.constant 8 : index
      %c0_91 = arith.constant 0 : index
      %241 = arith.index_cast %19 : i32 to index
      %c0_92 = arith.constant 0 : index
      %242 = vector.load %arg3[%c8_90, %c0_91, %241, %c0_92] : memref<16x4x64x128xf32, #tpu.memory_space<vmem>>, vector<1x4x8x128xf32>
      %243 = vector.shape_cast %242 : vector<1x4x8x128xf32> to vector<4x8x128xf32>
      %244 = arith.maximumf %240, %243 : vector<4x8x128xf32>
      %c9_93 = arith.constant 9 : index
      %c0_94 = arith.constant 0 : index
      %245 = arith.index_cast %19 : i32 to index
      %c0_95 = arith.constant 0 : index
      %246 = vector.load %arg3[%c9_93, %c0_94, %245, %c0_95] : memref<16x4x64x128xf32, #tpu.memory_space<vmem>>, vector<1x4x8x128xf32>
      %247 = vector.shape_cast %246 : vector<1x4x8x128xf32> to vector<4x8x128xf32>
      %248 = arith.maximumf %244, %247 : vector<4x8x128xf32>
      %c10_96 = arith.constant 10 : index
      %c0_97 = arith.constant 0 : index
      %249 = arith.index_cast %19 : i32 to index
      %c0_98 = arith.constant 0 : index
      %250 = vector.load %arg3[%c10_96, %c0_97, %249, %c0_98] : memref<16x4x64x128xf32, #tpu.memory_space<vmem>>, vector<1x4x8x128xf32>
      %251 = vector.shape_cast %250 : vector<1x4x8x128xf32> to vector<4x8x128xf32>
      %252 = arith.maximumf %248, %251 : vector<4x8x128xf32>
      %c11_99 = arith.constant 11 : index
      %c0_100 = arith.constant 0 : index
      %253 = arith.index_cast %19 : i32 to index
      %c0_101 = arith.constant 0 : index
      %254 = vector.load %arg3[%c11_99, %c0_100, %253, %c0_101] : memref<16x4x64x128xf32, #tpu.memory_space<vmem>>, vector<1x4x8x128xf32>
      %255 = vector.shape_cast %254 : vector<1x4x8x128xf32> to vector<4x8x128xf32>
      %256 = arith.maximumf %252, %255 : vector<4x8x128xf32>
      %c12_102 = arith.constant 12 : index
      %c0_103 = arith.constant 0 : index
      %257 = arith.index_cast %19 : i32 to index
      %c0_104 = arith.constant 0 : index
      %258 = vector.load %arg3[%c12_102, %c0_103, %257, %c0_104] : memref<16x4x64x128xf32, #tpu.memory_space<vmem>>, vector<1x4x8x128xf32>
      %259 = vector.shape_cast %258 : vector<1x4x8x128xf32> to vector<4x8x128xf32>
      %260 = arith.maximumf %256, %259 : vector<4x8x128xf32>
      %c13_105 = arith.constant 13 : index
      %c0_106 = arith.constant 0 : index
      %261 = arith.index_cast %19 : i32 to index
      %c0_107 = arith.constant 0 : index
      %262 = vector.load %arg3[%c13_105, %c0_106, %261, %c0_107] : memref<16x4x64x128xf32, #tpu.memory_space<vmem>>, vector<1x4x8x128xf32>
      %263 = vector.shape_cast %262 : vector<1x4x8x128xf32> to vector<4x8x128xf32>
      %264 = arith.maximumf %260, %263 : vector<4x8x128xf32>
      %c14_108 = arith.constant 14 : index
      %c0_109 = arith.constant 0 : index
      %265 = arith.index_cast %19 : i32 to index
      %c0_110 = arith.constant 0 : index
      %266 = vector.load %arg3[%c14_108, %c0_109, %265, %c0_110] : memref<16x4x64x128xf32, #tpu.memory_space<vmem>>, vector<1x4x8x128xf32>
      %267 = vector.shape_cast %266 : vector<1x4x8x128xf32> to vector<4x8x128xf32>
      %268 = arith.maximumf %264, %267 : vector<4x8x128xf32>
      %c15 = arith.constant 15 : index
      %c0_111 = arith.constant 0 : index
      %269 = arith.index_cast %19 : i32 to index
      %c0_112 = arith.constant 0 : index
      %270 = vector.load %arg3[%c15, %c0_111, %269, %c0_112] : memref<16x4x64x128xf32, #tpu.memory_space<vmem>>, vector<1x4x8x128xf32>
      %271 = vector.shape_cast %270 : vector<1x4x8x128xf32> to vector<4x8x128xf32>
      %272 = arith.maximumf %268, %271 : vector<4x8x128xf32>
      %cst_113 = arith.constant 0.000000e+00 : f32
      %273 = vector.broadcast %cst_113 : f32 to vector<4x8x128xf32>
      %cst_114 = arith.constant 0.000000e+00 : f32
      %274 = vector.broadcast %cst_114 : f32 to vector<4x8x128xf32>
      %c0_115 = arith.constant 0 : index
      %c0_116 = arith.constant 0 : index
      %275 = arith.index_cast %19 : i32 to index
      %c0_117 = arith.constant 0 : index
      %276 = vector.load %arg3[%c0_115, %c0_116, %275, %c0_117] : memref<16x4x64x128xf32, #tpu.memory_space<vmem>>, vector<1x4x8x128xf32>
      %277 = vector.shape_cast %276 : vector<1x4x8x128xf32> to vector<4x8x128xf32>
      %278 = arith.subf %277, %272 : vector<4x8x128xf32>
      %279 = math.exp %278 : vector<4x8x128xf32>
      %280 = arith.addf %273, %279 : vector<4x8x128xf32>
      %cst_118 = arith.constant 0.000000e+00 : f32
      %281 = vector.broadcast %cst_118 : f32 to vector<4x8x128xf32>
      %282 = arith.subf %209, %281 : vector<4x8x128xf32>
      %283 = math.absf %282 : vector<4x8x128xf32>
      %cst_119 = arith.constant 1.000000e+00 : f32
      %284 = vector.broadcast %cst_119 : f32 to vector<4x8x128xf32>
      %285 = arith.subf %284, %283 : vector<4x8x128xf32>
      %cst_120 = arith.constant 0.000000e+00 : f32
      %286 = vector.broadcast %cst_120 : f32 to vector<4x8x128xf32>
      %287 = arith.maximumf %285, %286 : vector<4x8x128xf32>
      %288 = arith.mulf %277, %287 : vector<4x8x128xf32>
      %289 = arith.addf %274, %288 : vector<4x8x128xf32>
      %c1_121 = arith.constant 1 : index
      %c0_122 = arith.constant 0 : index
      %290 = arith.index_cast %19 : i32 to index
      %c0_123 = arith.constant 0 : index
      %291 = vector.load %arg3[%c1_121, %c0_122, %290, %c0_123] : memref<16x4x64x128xf32, #tpu.memory_space<vmem>>, vector<1x4x8x128xf32>
      %292 = vector.shape_cast %291 : vector<1x4x8x128xf32> to vector<4x8x128xf32>
      %293 = arith.subf %292, %272 : vector<4x8x128xf32>
      %294 = math.exp %293 : vector<4x8x128xf32>
      %295 = arith.addf %280, %294 : vector<4x8x128xf32>
      %cst_124 = arith.constant 1.000000e+00 : f32
      %296 = vector.broadcast %cst_124 : f32 to vector<4x8x128xf32>
      %297 = arith.subf %209, %296 : vector<4x8x128xf32>
      %298 = math.absf %297 : vector<4x8x128xf32>
      %cst_125 = arith.constant 1.000000e+00 : f32
      %299 = vector.broadcast %cst_125 : f32 to vector<4x8x128xf32>
      %300 = arith.subf %299, %298 : vector<4x8x128xf32>
      %cst_126 = arith.constant 0.000000e+00 : f32
      %301 = vector.broadcast %cst_126 : f32 to vector<4x8x128xf32>
      %302 = arith.maximumf %300, %301 : vector<4x8x128xf32>
      %303 = arith.mulf %292, %302 : vector<4x8x128xf32>
      %304 = arith.addf %289, %303 : vector<4x8x128xf32>
      %c2_127 = arith.constant 2 : index
      %c0_128 = arith.constant 0 : index
      %305 = arith.index_cast %19 : i32 to index
      %c0_129 = arith.constant 0 : index
      %306 = vector.load %arg3[%c2_127, %c0_128, %305, %c0_129] : memref<16x4x64x128xf32, #tpu.memory_space<vmem>>, vector<1x4x8x128xf32>
      %307 = vector.shape_cast %306 : vector<1x4x8x128xf32> to vector<4x8x128xf32>
      %308 = arith.subf %307, %272 : vector<4x8x128xf32>
      %309 = math.exp %308 : vector<4x8x128xf32>
      %310 = arith.addf %295, %309 : vector<4x8x128xf32>
      %cst_130 = arith.constant 2.000000e+00 : f32
      %311 = vector.broadcast %cst_130 : f32 to vector<4x8x128xf32>
      %312 = arith.subf %209, %311 : vector<4x8x128xf32>
      %313 = math.absf %312 : vector<4x8x128xf32>
      %cst_131 = arith.constant 1.000000e+00 : f32
      %314 = vector.broadcast %cst_131 : f32 to vector<4x8x128xf32>
      %315 = arith.subf %314, %313 : vector<4x8x128xf32>
      %cst_132 = arith.constant 0.000000e+00 : f32
      %316 = vector.broadcast %cst_132 : f32 to vector<4x8x128xf32>
      %317 = arith.maximumf %315, %316 : vector<4x8x128xf32>
      %318 = arith.mulf %307, %317 : vector<4x8x128xf32>
      %319 = arith.addf %304, %318 : vector<4x8x128xf32>
      %c3_133 = arith.constant 3 : index
      %c0_134 = arith.constant 0 : index
      %320 = arith.index_cast %19 : i32 to index
      %c0_135 = arith.constant 0 : index
      %321 = vector.load %arg3[%c3_133, %c0_134, %320, %c0_135] : memref<16x4x64x128xf32, #tpu.memory_space<vmem>>, vector<1x4x8x128xf32>
      %322 = vector.shape_cast %321 : vector<1x4x8x128xf32> to vector<4x8x128xf32>
      %323 = arith.subf %322, %272 : vector<4x8x128xf32>
      %324 = math.exp %323 : vector<4x8x128xf32>
      %325 = arith.addf %310, %324 : vector<4x8x128xf32>
      %cst_136 = arith.constant 3.000000e+00 : f32
      %326 = vector.broadcast %cst_136 : f32 to vector<4x8x128xf32>
      %327 = arith.subf %209, %326 : vector<4x8x128xf32>
      %328 = math.absf %327 : vector<4x8x128xf32>
      %cst_137 = arith.constant 1.000000e+00 : f32
      %329 = vector.broadcast %cst_137 : f32 to vector<4x8x128xf32>
      %330 = arith.subf %329, %328 : vector<4x8x128xf32>
      %cst_138 = arith.constant 0.000000e+00 : f32
      %331 = vector.broadcast %cst_138 : f32 to vector<4x8x128xf32>
      %332 = arith.maximumf %330, %331 : vector<4x8x128xf32>
      %333 = arith.mulf %322, %332 : vector<4x8x128xf32>
      %334 = arith.addf %319, %333 : vector<4x8x128xf32>
      %c4_139 = arith.constant 4 : index
      %c0_140 = arith.constant 0 : index
      %335 = arith.index_cast %19 : i32 to index
      %c0_141 = arith.constant 0 : index
      %336 = vector.load %arg3[%c4_139, %c0_140, %335, %c0_141] : memref<16x4x64x128xf32, #tpu.memory_space<vmem>>, vector<1x4x8x128xf32>
      %337 = vector.shape_cast %336 : vector<1x4x8x128xf32> to vector<4x8x128xf32>
      %338 = arith.subf %337, %272 : vector<4x8x128xf32>
      %339 = math.exp %338 : vector<4x8x128xf32>
      %340 = arith.addf %325, %339 : vector<4x8x128xf32>
      %cst_142 = arith.constant 4.000000e+00 : f32
      %341 = vector.broadcast %cst_142 : f32 to vector<4x8x128xf32>
      %342 = arith.subf %209, %341 : vector<4x8x128xf32>
      %343 = math.absf %342 : vector<4x8x128xf32>
      %cst_143 = arith.constant 1.000000e+00 : f32
      %344 = vector.broadcast %cst_143 : f32 to vector<4x8x128xf32>
      %345 = arith.subf %344, %343 : vector<4x8x128xf32>
      %cst_144 = arith.constant 0.000000e+00 : f32
      %346 = vector.broadcast %cst_144 : f32 to vector<4x8x128xf32>
      %347 = arith.maximumf %345, %346 : vector<4x8x128xf32>
      %348 = arith.mulf %337, %347 : vector<4x8x128xf32>
      %349 = arith.addf %334, %348 : vector<4x8x128xf32>
      %c5_145 = arith.constant 5 : index
      %c0_146 = arith.constant 0 : index
      %350 = arith.index_cast %19 : i32 to index
      %c0_147 = arith.constant 0 : index
      %351 = vector.load %arg3[%c5_145, %c0_146, %350, %c0_147] : memref<16x4x64x128xf32, #tpu.memory_space<vmem>>, vector<1x4x8x128xf32>
      %352 = vector.shape_cast %351 : vector<1x4x8x128xf32> to vector<4x8x128xf32>
      %353 = arith.subf %352, %272 : vector<4x8x128xf32>
      %354 = math.exp %353 : vector<4x8x128xf32>
      %355 = arith.addf %340, %354 : vector<4x8x128xf32>
      %cst_148 = arith.constant 5.000000e+00 : f32
      %356 = vector.broadcast %cst_148 : f32 to vector<4x8x128xf32>
      %357 = arith.subf %209, %356 : vector<4x8x128xf32>
      %358 = math.absf %357 : vector<4x8x128xf32>
      %cst_149 = arith.constant 1.000000e+00 : f32
      %359 = vector.broadcast %cst_149 : f32 to vector<4x8x128xf32>
      %360 = arith.subf %359, %358 : vector<4x8x128xf32>
      %cst_150 = arith.constant 0.000000e+00 : f32
      %361 = vector.broadcast %cst_150 : f32 to vector<4x8x128xf32>
      %362 = arith.maximumf %360, %361 : vector<4x8x128xf32>
      %363 = arith.mulf %352, %362 : vector<4x8x128xf32>
      %364 = arith.addf %349, %363 : vector<4x8x128xf32>
      %c6_151 = arith.constant 6 : index
      %c0_152 = arith.constant 0 : index
      %365 = arith.index_cast %19 : i32 to index
      %c0_153 = arith.constant 0 : index
      %366 = vector.load %arg3[%c6_151, %c0_152, %365, %c0_153] : memref<16x4x64x128xf32, #tpu.memory_space<vmem>>, vector<1x4x8x128xf32>
      %367 = vector.shape_cast %366 : vector<1x4x8x128xf32> to vector<4x8x128xf32>
      %368 = arith.subf %367, %272 : vector<4x8x128xf32>
      %369 = math.exp %368 : vector<4x8x128xf32>
      %370 = arith.addf %355, %369 : vector<4x8x128xf32>
      %cst_154 = arith.constant 6.000000e+00 : f32
      %371 = vector.broadcast %cst_154 : f32 to vector<4x8x128xf32>
      %372 = arith.subf %209, %371 : vector<4x8x128xf32>
      %373 = math.absf %372 : vector<4x8x128xf32>
      %cst_155 = arith.constant 1.000000e+00 : f32
      %374 = vector.broadcast %cst_155 : f32 to vector<4x8x128xf32>
      %375 = arith.subf %374, %373 : vector<4x8x128xf32>
      %cst_156 = arith.constant 0.000000e+00 : f32
      %376 = vector.broadcast %cst_156 : f32 to vector<4x8x128xf32>
      %377 = arith.maximumf %375, %376 : vector<4x8x128xf32>
      %378 = arith.mulf %367, %377 : vector<4x8x128xf32>
      %379 = arith.addf %364, %378 : vector<4x8x128xf32>
      %c7_157 = arith.constant 7 : index
      %c0_158 = arith.constant 0 : index
      %380 = arith.index_cast %19 : i32 to index
      %c0_159 = arith.constant 0 : index
      %381 = vector.load %arg3[%c7_157, %c0_158, %380, %c0_159] : memref<16x4x64x128xf32, #tpu.memory_space<vmem>>, vector<1x4x8x128xf32>
      %382 = vector.shape_cast %381 : vector<1x4x8x128xf32> to vector<4x8x128xf32>
      %383 = arith.subf %382, %272 : vector<4x8x128xf32>
      %384 = math.exp %383 : vector<4x8x128xf32>
      %385 = arith.addf %370, %384 : vector<4x8x128xf32>
      %cst_160 = arith.constant 7.000000e+00 : f32
      %386 = vector.broadcast %cst_160 : f32 to vector<4x8x128xf32>
      %387 = arith.subf %209, %386 : vector<4x8x128xf32>
      %388 = math.absf %387 : vector<4x8x128xf32>
      %cst_161 = arith.constant 1.000000e+00 : f32
      %389 = vector.broadcast %cst_161 : f32 to vector<4x8x128xf32>
      %390 = arith.subf %389, %388 : vector<4x8x128xf32>
      %cst_162 = arith.constant 0.000000e+00 : f32
      %391 = vector.broadcast %cst_162 : f32 to vector<4x8x128xf32>
      %392 = arith.maximumf %390, %391 : vector<4x8x128xf32>
      %393 = arith.mulf %382, %392 : vector<4x8x128xf32>
      %394 = arith.addf %379, %393 : vector<4x8x128xf32>
      %c8_163 = arith.constant 8 : index
      %c0_164 = arith.constant 0 : index
      %395 = arith.index_cast %19 : i32 to index
      %c0_165 = arith.constant 0 : index
      %396 = vector.load %arg3[%c8_163, %c0_164, %395, %c0_165] : memref<16x4x64x128xf32, #tpu.memory_space<vmem>>, vector<1x4x8x128xf32>
      %397 = vector.shape_cast %396 : vector<1x4x8x128xf32> to vector<4x8x128xf32>
      %398 = arith.subf %397, %272 : vector<4x8x128xf32>
      %399 = math.exp %398 : vector<4x8x128xf32>
      %400 = arith.addf %385, %399 : vector<4x8x128xf32>
      %cst_166 = arith.constant 8.000000e+00 : f32
      %401 = vector.broadcast %cst_166 : f32 to vector<4x8x128xf32>
      %402 = arith.subf %209, %401 : vector<4x8x128xf32>
      %403 = math.absf %402 : vector<4x8x128xf32>
      %cst_167 = arith.constant 1.000000e+00 : f32
      %404 = vector.broadcast %cst_167 : f32 to vector<4x8x128xf32>
      %405 = arith.subf %404, %403 : vector<4x8x128xf32>
      %cst_168 = arith.constant 0.000000e+00 : f32
      %406 = vector.broadcast %cst_168 : f32 to vector<4x8x128xf32>
      %407 = arith.maximumf %405, %406 : vector<4x8x128xf32>
      %408 = arith.mulf %397, %407 : vector<4x8x128xf32>
      %409 = arith.addf %394, %408 : vector<4x8x128xf32>
      %c9_169 = arith.constant 9 : index
      %c0_170 = arith.constant 0 : index
      %410 = arith.index_cast %19 : i32 to index
      %c0_171 = arith.constant 0 : index
      %411 = vector.load %arg3[%c9_169, %c0_170, %410, %c0_171] : memref<16x4x64x128xf32, #tpu.memory_space<vmem>>, vector<1x4x8x128xf32>
      %412 = vector.shape_cast %411 : vector<1x4x8x128xf32> to vector<4x8x128xf32>
      %413 = arith.subf %412, %272 : vector<4x8x128xf32>
      %414 = math.exp %413 : vector<4x8x128xf32>
      %415 = arith.addf %400, %414 : vector<4x8x128xf32>
      %cst_172 = arith.constant 9.000000e+00 : f32
      %416 = vector.broadcast %cst_172 : f32 to vector<4x8x128xf32>
      %417 = arith.subf %209, %416 : vector<4x8x128xf32>
      %418 = math.absf %417 : vector<4x8x128xf32>
      %cst_173 = arith.constant 1.000000e+00 : f32
      %419 = vector.broadcast %cst_173 : f32 to vector<4x8x128xf32>
      %420 = arith.subf %419, %418 : vector<4x8x128xf32>
      %cst_174 = arith.constant 0.000000e+00 : f32
      %421 = vector.broadcast %cst_174 : f32 to vector<4x8x128xf32>
      %422 = arith.maximumf %420, %421 : vector<4x8x128xf32>
      %423 = arith.mulf %412, %422 : vector<4x8x128xf32>
      %424 = arith.addf %409, %423 : vector<4x8x128xf32>
      %c10_175 = arith.constant 10 : index
      %c0_176 = arith.constant 0 : index
      %425 = arith.index_cast %19 : i32 to index
      %c0_177 = arith.constant 0 : index
      %426 = vector.load %arg3[%c10_175, %c0_176, %425, %c0_177] : memref<16x4x64x128xf32, #tpu.memory_space<vmem>>, vector<1x4x8x128xf32>
      %427 = vector.shape_cast %426 : vector<1x4x8x128xf32> to vector<4x8x128xf32>
      %428 = arith.subf %427, %272 : vector<4x8x128xf32>
      %429 = math.exp %428 : vector<4x8x128xf32>
      %430 = arith.addf %415, %429 : vector<4x8x128xf32>
      %cst_178 = arith.constant 1.000000e+01 : f32
      %431 = vector.broadcast %cst_178 : f32 to vector<4x8x128xf32>
      %432 = arith.subf %209, %431 : vector<4x8x128xf32>
      %433 = math.absf %432 : vector<4x8x128xf32>
      %cst_179 = arith.constant 1.000000e+00 : f32
      %434 = vector.broadcast %cst_179 : f32 to vector<4x8x128xf32>
      %435 = arith.subf %434, %433 : vector<4x8x128xf32>
      %cst_180 = arith.constant 0.000000e+00 : f32
      %436 = vector.broadcast %cst_180 : f32 to vector<4x8x128xf32>
      %437 = arith.maximumf %435, %436 : vector<4x8x128xf32>
      %438 = arith.mulf %427, %437 : vector<4x8x128xf32>
      %439 = arith.addf %424, %438 : vector<4x8x128xf32>
      %c11_181 = arith.constant 11 : index
      %c0_182 = arith.constant 0 : index
      %440 = arith.index_cast %19 : i32 to index
      %c0_183 = arith.constant 0 : index
      %441 = vector.load %arg3[%c11_181, %c0_182, %440, %c0_183] : memref<16x4x64x128xf32, #tpu.memory_space<vmem>>, vector<1x4x8x128xf32>
      %442 = vector.shape_cast %441 : vector<1x4x8x128xf32> to vector<4x8x128xf32>
      %443 = arith.subf %442, %272 : vector<4x8x128xf32>
      %444 = math.exp %443 : vector<4x8x128xf32>
      %445 = arith.addf %430, %444 : vector<4x8x128xf32>
      %cst_184 = arith.constant 1.100000e+01 : f32
      %446 = vector.broadcast %cst_184 : f32 to vector<4x8x128xf32>
      %447 = arith.subf %209, %446 : vector<4x8x128xf32>
      %448 = math.absf %447 : vector<4x8x128xf32>
      %cst_185 = arith.constant 1.000000e+00 : f32
      %449 = vector.broadcast %cst_185 : f32 to vector<4x8x128xf32>
      %450 = arith.subf %449, %448 : vector<4x8x128xf32>
      %cst_186 = arith.constant 0.000000e+00 : f32
      %451 = vector.broadcast %cst_186 : f32 to vector<4x8x128xf32>
      %452 = arith.maximumf %450, %451 : vector<4x8x128xf32>
      %453 = arith.mulf %442, %452 : vector<4x8x128xf32>
      %454 = arith.addf %439, %453 : vector<4x8x128xf32>
      %c12_187 = arith.constant 12 : index
      %c0_188 = arith.constant 0 : index
      %455 = arith.index_cast %19 : i32 to index
      %c0_189 = arith.constant 0 : index
      %456 = vector.load %arg3[%c12_187, %c0_188, %455, %c0_189] : memref<16x4x64x128xf32, #tpu.memory_space<vmem>>, vector<1x4x8x128xf32>
      %457 = vector.shape_cast %456 : vector<1x4x8x128xf32> to vector<4x8x128xf32>
      %458 = arith.subf %457, %272 : vector<4x8x128xf32>
      %459 = math.exp %458 : vector<4x8x128xf32>
      %460 = arith.addf %445, %459 : vector<4x8x128xf32>
      %cst_190 = arith.constant 1.200000e+01 : f32
      %461 = vector.broadcast %cst_190 : f32 to vector<4x8x128xf32>
      %462 = arith.subf %209, %461 : vector<4x8x128xf32>
      %463 = math.absf %462 : vector<4x8x128xf32>
      %cst_191 = arith.constant 1.000000e+00 : f32
      %464 = vector.broadcast %cst_191 : f32 to vector<4x8x128xf32>
      %465 = arith.subf %464, %463 : vector<4x8x128xf32>
      %cst_192 = arith.constant 0.000000e+00 : f32
      %466 = vector.broadcast %cst_192 : f32 to vector<4x8x128xf32>
      %467 = arith.maximumf %465, %466 : vector<4x8x128xf32>
      %468 = arith.mulf %457, %467 : vector<4x8x128xf32>
      %469 = arith.addf %454, %468 : vector<4x8x128xf32>
      %c13_193 = arith.constant 13 : index
      %c0_194 = arith.constant 0 : index
      %470 = arith.index_cast %19 : i32 to index
      %c0_195 = arith.constant 0 : index
      %471 = vector.load %arg3[%c13_193, %c0_194, %470, %c0_195] : memref<16x4x64x128xf32, #tpu.memory_space<vmem>>, vector<1x4x8x128xf32>
      %472 = vector.shape_cast %471 : vector<1x4x8x128xf32> to vector<4x8x128xf32>
      %473 = arith.subf %472, %272 : vector<4x8x128xf32>
      %474 = math.exp %473 : vector<4x8x128xf32>
      %475 = arith.addf %460, %474 : vector<4x8x128xf32>
      %cst_196 = arith.constant 1.300000e+01 : f32
      %476 = vector.broadcast %cst_196 : f32 to vector<4x8x128xf32>
      %477 = arith.subf %209, %476 : vector<4x8x128xf32>
      %478 = math.absf %477 : vector<4x8x128xf32>
      %cst_197 = arith.constant 1.000000e+00 : f32
      %479 = vector.broadcast %cst_197 : f32 to vector<4x8x128xf32>
      %480 = arith.subf %479, %478 : vector<4x8x128xf32>
      %cst_198 = arith.constant 0.000000e+00 : f32
      %481 = vector.broadcast %cst_198 : f32 to vector<4x8x128xf32>
      %482 = arith.maximumf %480, %481 : vector<4x8x128xf32>
      %483 = arith.mulf %472, %482 : vector<4x8x128xf32>
      %484 = arith.addf %469, %483 : vector<4x8x128xf32>
      %c14_199 = arith.constant 14 : index
      %c0_200 = arith.constant 0 : index
      %485 = arith.index_cast %19 : i32 to index
      %c0_201 = arith.constant 0 : index
      %486 = vector.load %arg3[%c14_199, %c0_200, %485, %c0_201] : memref<16x4x64x128xf32, #tpu.memory_space<vmem>>, vector<1x4x8x128xf32>
      %487 = vector.shape_cast %486 : vector<1x4x8x128xf32> to vector<4x8x128xf32>
      %488 = arith.subf %487, %272 : vector<4x8x128xf32>
      %489 = math.exp %488 : vector<4x8x128xf32>
      %490 = arith.addf %475, %489 : vector<4x8x128xf32>
      %cst_202 = arith.constant 1.400000e+01 : f32
      %491 = vector.broadcast %cst_202 : f32 to vector<4x8x128xf32>
      %492 = arith.subf %209, %491 : vector<4x8x128xf32>
      %493 = math.absf %492 : vector<4x8x128xf32>
      %cst_203 = arith.constant 1.000000e+00 : f32
      %494 = vector.broadcast %cst_203 : f32 to vector<4x8x128xf32>
      %495 = arith.subf %494, %493 : vector<4x8x128xf32>
      %cst_204 = arith.constant 0.000000e+00 : f32
      %496 = vector.broadcast %cst_204 : f32 to vector<4x8x128xf32>
      %497 = arith.maximumf %495, %496 : vector<4x8x128xf32>
      %498 = arith.mulf %487, %497 : vector<4x8x128xf32>
      %499 = arith.addf %484, %498 : vector<4x8x128xf32>
      %c15_205 = arith.constant 15 : index
      %c0_206 = arith.constant 0 : index
      %500 = arith.index_cast %19 : i32 to index
      %c0_207 = arith.constant 0 : index
      %501 = vector.load %arg3[%c15_205, %c0_206, %500, %c0_207] : memref<16x4x64x128xf32, #tpu.memory_space<vmem>>, vector<1x4x8x128xf32>
      %502 = vector.shape_cast %501 : vector<1x4x8x128xf32> to vector<4x8x128xf32>
      %503 = arith.subf %502, %272 : vector<4x8x128xf32>
      %504 = math.exp %503 : vector<4x8x128xf32>
      %505 = arith.addf %490, %504 : vector<4x8x128xf32>
      %cst_208 = arith.constant 1.500000e+01 : f32
      %506 = vector.broadcast %cst_208 : f32 to vector<4x8x128xf32>
      %507 = arith.subf %209, %506 : vector<4x8x128xf32>
      %508 = math.absf %507 : vector<4x8x128xf32>
      %cst_209 = arith.constant 1.000000e+00 : f32
      %509 = vector.broadcast %cst_209 : f32 to vector<4x8x128xf32>
      %510 = arith.subf %509, %508 : vector<4x8x128xf32>
      %cst_210 = arith.constant 0.000000e+00 : f32
      %511 = vector.broadcast %cst_210 : f32 to vector<4x8x128xf32>
      %512 = arith.maximumf %510, %511 : vector<4x8x128xf32>
      %513 = arith.mulf %502, %512 : vector<4x8x128xf32>
      %514 = arith.addf %499, %513 : vector<4x8x128xf32>
      %515 = math.log %505 : vector<4x8x128xf32>
      %516 = arith.addf %515, %272 : vector<4x8x128xf32>
      %517 = arith.subf %516, %514 : vector<4x8x128xf32>
      %518 = vector.extract_strided_slice %517 {offsets = [0, 0, 0], sizes = [1, 8, 128], strides = [1, 1, 1]} : vector<4x8x128xf32> to vector<1x8x128xf32>
      %519 = vector.shape_cast %518 : vector<1x8x128xf32> to vector<8x128xf32>
      %520 = vector.extract_strided_slice %517 {offsets = [1, 0, 0], sizes = [1, 8, 128], strides = [1, 1, 1]} : vector<4x8x128xf32> to vector<1x8x128xf32>
      %521 = vector.shape_cast %520 : vector<1x8x128xf32> to vector<8x128xf32>
      %522 = arith.addf %519, %521 : vector<8x128xf32>
      %523 = vector.extract_strided_slice %517 {offsets = [2, 0, 0], sizes = [1, 8, 128], strides = [1, 1, 1]} : vector<4x8x128xf32> to vector<1x8x128xf32>
      %524 = vector.shape_cast %523 : vector<1x8x128xf32> to vector<8x128xf32>
      %525 = arith.addf %522, %524 : vector<8x128xf32>
      %526 = vector.extract_strided_slice %517 {offsets = [3, 0, 0], sizes = [1, 8, 128], strides = [1, 1, 1]} : vector<4x8x128xf32> to vector<1x8x128xf32>
      %527 = vector.shape_cast %526 : vector<1x8x128xf32> to vector<8x128xf32>
      %528 = arith.addf %525, %527 : vector<8x128xf32>
      %cst_211 = arith.constant 2.500000e-01 : f32
      %529 = vector.broadcast %cst_211 : f32 to vector<8x128xf32>
      %530 = arith.mulf %528, %529 : vector<8x128xf32>
      %c0_212 = arith.constant 0 : index
      %c0_213 = arith.constant 0 : index
      %531 = vector.load %arg7[%c0_212, %c0_213] : memref<8x128xf32, #tpu.memory_space<vmem>>, vector<8x128xf32>
      %532 = arith.mulf %530, %70 : vector<8x128xf32>
      %cst_214 = arith.constant 0.000000e+00 : f32
      %533 = vector.broadcast %cst_214 : f32 to vector<8x128xf32>
      %534 = arith.select %73, %532, %533 : vector<8x128xi1>, vector<8x128xf32>
      %535 = arith.addf %531, %534 : vector<8x128xf32>
      %c0_215 = arith.constant 0 : index
      %c0_216 = arith.constant 0 : index
      %536 = vector.load %arg7[%c0_215, %c0_216] : memref<8x128xf32, #tpu.memory_space<vmem>>, vector<8x128xf32>
      tpu.vector_store %arg7[%c0_215, %c0_216], %535 {strides = array<i32>} : memref<8x128xf32, #tpu.memory_space<vmem>>, vector<8x128xf32>,
    }
    %c8_i32_2 = arith.constant 8 : i32
    %c0 = arith.constant 0 : index
    %c0_3 = arith.constant 0 : index
    %8 = vector.load %arg6[%c0, %c0_3] : memref<8x128xf32, #tpu.memory_space<vmem>>, vector<8x128xf32>
    %c0_4 = arith.constant 0 : index
    %c0_5 = arith.constant 0 : index
    %c0_6 = arith.constant 0 : index
    %9 = vector.load %arg4[%c0_4, %c0_5, %c0_6] : memref<1x8x128xf32, #tpu.memory_space<vmem>>, vector<1x8x128xf32>
    %10 = vector.shape_cast %9 : vector<1x8x128xf32> to vector<8x128xf32>
    %11 = vector.shape_cast %8 : vector<8x128xf32> to vector<1x8x128xf32>
    tpu.vector_store %arg4[%c0_4, %c0_5, %c0_6], %11 {strides = array<i32>} : memref<1x8x128xf32, #tpu.memory_space<vmem>>, vector<1x8x128xf32>,
    %c0_7 = arith.constant 0 : index
    %c0_8 = arith.constant 0 : index
    %12 = vector.load %arg7[%c0_7, %c0_8] : memref<8x128xf32, #tpu.memory_space<vmem>>, vector<8x128xf32>
    %c0_9 = arith.constant 0 : index
    %c0_10 = arith.constant 0 : index
    %c0_11 = arith.constant 0 : index
    %13 = vector.load %arg5[%c0_9, %c0_10, %c0_11] : memref<1x8x128xf32, #tpu.memory_space<vmem>>, vector<1x8x128xf32>
    %14 = vector.shape_cast %13 : vector<1x8x128xf32> to vector<8x128xf32>
    %15 = vector.shape_cast %12 : vector<8x128xf32> to vector<1x8x128xf32>
    tpu.vector_store %arg5[%c0_9, %c0_10, %c0_11], %15 {strides = array<i32>} : memref<1x8x128xf32, #tpu.memory_space<vmem>>, vector<1x8x128xf32>,
    return
  }
  func.func @transform_0(%arg0: i32, %arg1: i32) -> (i32, i32, i32) {
    %c2_i32 = arith.constant 2 : i32
    %0 = arith.muli %arg0, %c2_i32 : i32
    %1 = arith.addi %0, %arg1 : i32
    %c2_i32_0 = arith.constant 2 : i32
    %2 = arith.minsi %1, %c2_i32_0 : i32
    %c0_i32 = arith.constant 0 : i32
    %c0_i32_1 = arith.constant 0 : i32
    %c0_i32_2 = arith.constant 0 : i32
    return %c0_i32, %2, %c0_i32_1 : i32, i32, i32
  }
  func.func @transform_1(%arg0: i32, %arg1: i32) -> (i32, i32, i32, i32) {
    %c2_i32 = arith.constant 2 : i32
    %0 = arith.muli %arg0, %c2_i32 : i32
    %1 = arith.addi %0, %arg1 : i32
    %c2_i32_0 = arith.constant 2 : i32
    %2 = arith.minsi %1, %c2_i32_0 : i32
    %c0_i32 = arith.constant 0 : i32
    %c0_i32_1 = arith.constant 0 : i32
    %c0_i32_2 = arith.constant 0 : i32
    %c0_i32_3 = arith.constant 0 : i32
    return %c0_i32, %c0_i32_1, %2, %c0_i32_2 : i32, i32, i32, i32
  }
  func.func @transform_2(%arg0: i32, %arg1: i32) -> (i32, i32, i32) {
    %c0_i32 = arith.constant 0 : i32
    %c0_i32_0 = arith.constant 0 : i32
    %c0_i32_1 = arith.constant 0 : i32
    return %arg0, %c0_i32, %c0_i32_0 : i32, i32, i32
  }
  func.func @transform_3(%arg0: i32, %arg1: i32) -> (i32, i32, i32) {
    %c0_i32 = arith.constant 0 : i32
    %c0_i32_0 = arith.constant 0 : i32
    %c0_i32_1 = arith.constant 0 : i32
    return %arg0, %c0_i32, %c0_i32_0 : i32, i32, i32
  }
}

</mosaic_0001>

<bundles_post_ra>
// kernel: rotated_bbox_loss_pallas.1
= control target key start
LH: loop header
LB: loop body
LE: loop exit
PB: predicated region body
PF: predicated region fallthrough
CT: control target
= control target key end

     0   :  { %s3037_s12 = smov 0   ;;  %s3039_s13 = smov 0   ;;  %s4336_s0 = inlined_call_operand.vmem [shape: f32[15,144,128], index: 0, kind: input, shape index: {}]   ;;  %s4337_s1 = inlined_call_operand.vmem [shape: f32[16,4,144,128], index: 1, kind: input, shape index: {}]   ;;  %s4338_s2 = inlined_call_operand.vmem [shape: f32[2,8,128], index: 2, kind: output, shape index: {0}]   ;;  %s4339_s3 = inlined_call_operand.vmem [shape: f32[2,8,128], index: 3, kind: output, shape index: {1}]  }
   0x1   :  { %s3041_s14 = smov 0   ;;  %s3043_s15 = smov 0  }
   0x2   :  { %s3045_s16 = smov 0   ;;  %s3047_s17 = smov 0  }
   0x3   :  { %s3049_s18 = smov 0  }
   0x4 LB: > { %s23_s19 = sadd.s32 1, %s2954_s16  ;;  %s26_s20 = sadd.s32 1, %s2958_s17  ;;  %s2962_s18 = sphi %s3049_s18, %s14_s18   ;;  %s2958_s17 = sphi %s3047_s17, %s4459_s17   ;;  %s2954_s16 = sphi %s3045_s16, %s4458_s16   ;;  %s2950_s15 = sphi %s3043_s15, %s4457_s15   ;;  %s2946_s14 = sphi %s3041_s14, %s4456_s14   ;;  %s2942_s13 = sphi %s3039_s13, %s4455_s13   ;;  %s2938_s12 = sphi %s3037_s12, %s4454_s12  }
   0x5   : > { %p24_p0 = scmp.ge.s32.totalorder %s23_s19, 2  ;;  %s2309_s21 = sshll.u32 %s2958_s17, 1 }
   0x6   : > { %s31_s22 = sadd.s32 %s2954_s16, %s2309_s21  ;;  %p48_p2 = scmp.ne.s32.totalorder %s2942_s13, %s2938_s12 }
   0x7   : > { %s4461_s19 = smov (%p24_p0, %s23_s19), 0  ;;  %s4463_s20 = smov (!%p24_p0, %s26_s20), %s2958_s17 }
   0x8   : > { %p32_p1 = scmp.lt.s32.totalorder %s31_s22, 2  ;;  %p28_p3 = scmp.ge.s32.totalorder %s4463_s20, 2 }
   0x9   : > { %p49_p4 = scmp.eq.s32.totalorder %s2962_s18, 0  ;;  %s41_s27 = sadd.s32 1, %s2942_s13 }
   0xa   : > { %s4465_s22 = smov (!%p32_p1, %s31_s22), 2  ;;  %s4467_s20 = smov (%p28_p3, %s4463_s20), 0 }
   0xb   : > { %p3086_p5 = por %p49_p4, %p48_p2  ;;  %s2310_s24 = sshll.u32 %s4467_s20, 1 }
   0xc   : > { %s35_s25 = sadd.s32 %s2310_s24, %s4461_s19  ;;  %p2314_p8 = scmp.ge.s32.totalorder %s2962_s18, 4 }
   0xd   : > { %p36_p6 = scmp.lt.s32.totalorder %s35_s25, 2 }
   0xe   : > { %160 = sbr.rel (%p2314_p8) target bundleno = 170 (0xaa), region = 16 }
   0xf   : > { %s4469_s25 = smov (!%p36_p6, %s35_s25), 2 }
  0x10   : > { %s38_s26 = ssub.s32 %s4465_s22, %s4469_s25 }
  0x11   : > { %p39_p7 = scmp.eq.s32.totalorder %s38_s26, 0 }
  0x13   : > { %s3095_s28 = scalar_select %p39_p7, %s2942_s13, %s41_s27  }
  0x15   : > { %163 = sbr.rel (!%p3086_p5) target bundleno = 119 (0x77), region = 20  ;;  %s165_s29 = sand.u32 (%p3086_p5), 1, %s2942_s13  }
  0x16   : > { %s2316_s30 = sshll.u32 (%p3086_p5), %s4465_s22, 3  ;;  %s2514_s4 = smul.u32 (%p3086_p5), 960, %s165_s29 }
  0x17   : > { %s173_s5 = ssub.s32 (%p3086_p5), 18, %s2316_s30  ;;  %s2509_s6 = sshll.u32 (%p3086_p5), %s4465_s22, 6 }
  0x18   : > { %p174_p9 = scmp.lt.s32.totalorder (%p3086_p5), %s173_s5, 8  ;;  %s3106_s9 = scalar_lea.vmem (%p3086_p5), %s4336_s0, %s2509_s6  }
  0x19   : > { %s3111_s11 = scalar_lea.vmem (%p3086_p5), [#allocation4], %s2514_s4  }
  0x1c   : > { %s4471_s5 = smov (!%p174_p9, %s173_s5), 8 }
  0x1d   : > { %s176_s10 = smul.u32 1920, %s4471_s5 }
  0x1f   : > { %p2319_p10 = scmp.eq.s32.totalorder %s176_s10, 0 }
  0x20   : > { %2678 = sdivrem.u32 (!%p2319_p10), %s4471_s5, 5 }
  0x21   : > { %182 = sbr.rel (%p2319_p10) target bundleno = 119 (0x77), region = 24 }
  0x29   : > { %s3114_s21 = spop.drf %2678 }
  0x2a   : > { %p2320_p11 = scmp.le.s32.totalorder %s3114_s21, 0 }
  0x2b   : > { %s4384_s24 = smov (!%p2320_p11), %s3111_s11  ;;  %s4385_s25 = smov (!%p2320_p11), %s3106_s9 }
  0x2c   : > { %2219 = sbr.rel (%p2320_p11) target bundleno = 90 (0x5a), region = 217  ;;  %s3123_s26 = smov (!%p2320_p11), 0  }
  0x2d   : > { %s3125_s27 = smov (!%p2320_p11), 0  }
  0x33 LB: >> { %v422_v0 = vld [vmem:[%s2970_s25] sm:$0xff]  ;;  %v424_v1 = vld [vmem:[%s2970_s25 + $0x8] sm:$0xff]  ;;  %v426_v2 = vld [vmem:[%s2970_s25 + $0x10] sm:$0xff]  ;;  %s572_s29 = sadd.s32 1, %s2974_s26  ;;  %s416_s27 = sadd.s32 1, %s2978_s27   ;;  %s2978_s27 = sphi %s3125_s27, %s416_s27   ;;  %s2974_s26 = sphi %s3123_s26, %s4388_s26   ;;  %s2970_s25 = sphi %s4385_s25, %s4387_s25   ;;  %s2966_s24 = sphi %s4384_s24, %s4386_s24  }
  0x34   : >> { %423 = vst [vmem:[%s2966_s24] sm:$0xff] %v422_v0  ;;  %425 = vst [vmem:[%s2966_s24 + $0x8] sm:$0xff] %v424_v1  ;;  %v428_v3 = vld [vmem:[%s2970_s25 + $0x18] sm:$0xff]  ;;  %v430_v4 = vld [vmem:[%s2970_s25 + $0x20] sm:$0xff]  ;;  %p573_p12 = scmp.ge.s32.totalorder %s572_s29, %s3114_s21  ;;  %p415_p13 = scmp.ge.s32.totalorder %s416_s27, %s3114_s21 }
  0x35   : >> { %427 = vst [vmem:[%s2966_s24 + $0x10] sm:$0xff] %v426_v2  ;;  %v432_v5 = vld [vmem:[%s2970_s25 + $0x90] sm:$0xff]  ;;  %429 = vst [vmem:[%s2966_s24 + $0x18] sm:$0xff] %v428_v3  ;;  %v434_v6 = vld [vmem:[%s2970_s25 + $0x98] sm:$0xff] }
  0x36   : >> { %431 = vst [vmem:[%s2966_s24 + $0x20] sm:$0xff] %v430_v4  ;;  %433 = vst [vmem:[%s2966_s24 + $0x40] sm:$0xff] %v432_v5  ;;  %v436_v7 = vld [vmem:[%s2970_s25 + $0xa0] sm:$0xff]  ;;  %v438_v8 = vld [vmem:[%s2970_s25 + $0xa8] sm:$0xff]  ;;  %s4473_s29 = smov (%p573_p12, %s572_s29), 0 }
  0x37   : >> { %435 = vst [vmem:[%s2966_s24 + $0x48] sm:$0xff] %v434_v6  ;;  %437 = vst [vmem:[%s2966_s24 + $0x50] sm:$0xff] %v436_v7  ;;  %v440_v9 = vld [vmem:[%s2970_s25 + $0xb0] sm:$0xff]  ;;  %v442_v10 = vld [vmem:[%s2970_s25 + $0x120] sm:$0xff]  ;;  %s575_s30 = smul.u32 40, %s4473_s29  ;;  %s4388_s26 = smov %s4473_s29 }
  0x38   : >> { %439 = vst [vmem:[%s2966_s24 + $0x58] sm:$0xff] %v438_v8  ;;  %v444_v11 = vld [vmem:[%s2970_s25 + $0x128] sm:$0xff]  ;;  %441 = vst [vmem:[%s2966_s24 + $0x60] sm:$0xff] %v440_v9  ;;  %v446_v12 = vld [vmem:[%s2970_s25 + $0x130] sm:$0xff] }
  0x39   : >> { %443 = vst [vmem:[%s2966_s24 + $0x80] sm:$0xff] %v442_v10  ;;  %445 = vst [vmem:[%s2966_s24 + $0x88] sm:$0xff] %v444_v11  ;;  %v448_v13 = vld [vmem:[%s2970_s25 + $0x138] sm:$0xff]  ;;  %v450_v14 = vld [vmem:[%s2970_s25 + $0x140] sm:$0xff]  ;;  %s3187_s4 = scalar_lea.vmem %s3106_s9, %s575_s30   ;;  %s3190_s6 = scalar_lea.vmem %s3111_s11, %s575_s30 [#allocation4]  }
  0x3a   : >> { %447 = vst [vmem:[%s2966_s24 + $0x90] sm:$0xff] %v446_v12  ;;  %449 = vst [vmem:[%s2966_s24 + $0x98] sm:$0xff] %v448_v13  ;;  %v452_v15 = vld [vmem:[%s2970_s25 + $0x1b0] sm:$0xff]  ;;  %v454_v16 = vld [vmem:[%s2970_s25 + $0x1b8] sm:$0xff] }
  0x3b   : >> { %451 = vst [vmem:[%s2966_s24 + $0xa0] sm:$0xff] %v450_v14  ;;  %v456_v17 = vld [vmem:[%s2970_s25 + $0x1c0] sm:$0xff]  ;;  %453 = vst [vmem:[%s2966_s24 + $0xc0] sm:$0xff] %v452_v15  ;;  %v458_v18 = vld [vmem:[%s2970_s25 + $0x1c8] sm:$0xff] }
  0x3c   : >> { %455 = vst [vmem:[%s2966_s24 + $0xc8] sm:$0xff] %v454_v16  ;;  %457 = vst [vmem:[%s2966_s24 + $0xd0] sm:$0xff] %v456_v17  ;;  %v460_v19 = vld [vmem:[%s2970_s25 + $0x1d0] sm:$0xff]  ;;  %v462_v20 = vld [vmem:[%s2970_s25 + $0x240] sm:$0xff] }
  0x3d   : >> { %459 = vst [vmem:[%s2966_s24 + $0xd8] sm:$0xff] %v458_v18  ;;  %461 = vst [vmem:[%s2966_s24 + $0xe0] sm:$0xff] %v460_v19  ;;  %v464_v21 = vld [vmem:[%s2970_s25 + $0x248] sm:$0xff]  ;;  %v466_v22 = vld [vmem:[%s2970_s25 + $0x250] sm:$0xff] }
  0x3e   : >> { %463 = vst [vmem:[%s2966_s24 + $0x100] sm:$0xff] %v462_v20  ;;  %v468_v23 = vld [vmem:[%s2970_s25 + $0x258] sm:$0xff]  ;;  %465 = vst [vmem:[%s2966_s24 + $0x108] sm:$0xff] %v464_v21  ;;  %v470_v24 = vld [vmem:[%s2970_s25 + $0x260] sm:$0xff] }
  0x3f   : >> { %467 = vst [vmem:[%s2966_s24 + $0x110] sm:$0xff] %v466_v22  ;;  %469 = vst [vmem:[%s2966_s24 + $0x118] sm:$0xff] %v468_v23  ;;  %v472_v25 = vld [vmem:[%s2970_s25 + $0x2d0] sm:$0xff]  ;;  %v474_v26 = vld [vmem:[%s2970_s25 + $0x2d8] sm:$0xff] }
  0x40   : >> { %471 = vst [vmem:[%s2966_s24 + $0x120] sm:$0xff] %v470_v24  ;;  %473 = vst [vmem:[%s2966_s24 + $0x140] sm:$0xff] %v472_v25  ;;  %v476_v27 = vld [vmem:[%s2970_s25 + $0x2e0] sm:$0xff]  ;;  %v478_v28 = vld [vmem:[%s2970_s25 + $0x2e8] sm:$0xff] }
  0x41   : >> { %475 = vst [vmem:[%s2966_s24 + $0x148] sm:$0xff] %v474_v26  ;;  %v480_v29 = vld [vmem:[%s2970_s25 + $0x2f0] sm:$0xff]  ;;  %477 = vst [vmem:[%s2966_s24 + $0x150] sm:$0xff] %v476_v27  ;;  %v482_v30 = vld [vmem:[%s2970_s25 + $0x360] sm:$0xff] }
  0x42   : >> { %479 = vst [vmem:[%s2966_s24 + $0x158] sm:$0xff] %v478_v28  ;;  %481 = vst [vmem:[%s2966_s24 + $0x160] sm:$0xff] %v480_v29  ;;  %v484_v31 = vld [vmem:[%s2970_s25 + $0x368] sm:$0xff]  ;;  %v486_v32 = vld [vmem:[%s2970_s25 + $0x370] sm:$0xff] }
  0x43   : >> { %483 = vst [vmem:[%s2966_s24 + $0x180] sm:$0xff] %v482_v30  ;;  %485 = vst [vmem:[%s2966_s24 + $0x188] sm:$0xff] %v484_v31  ;;  %v488_v33 = vld [vmem:[%s2970_s25 + $0x378] sm:$0xff]  ;;  %v490_v34 = vld [vmem:[%s2970_s25 + $0x380] sm:$0xff] }
  0x44   : >> { %487 = vst [vmem:[%s2966_s24 + $0x190] sm:$0xff] %v486_v32  ;;  %v492_v35 = vld [vmem:[%s2970_s25 + $0x3f0] sm:$0xff]  ;;  %489 = vst [vmem:[%s2966_s24 + $0x198] sm:$0xff] %v488_v33  ;;  %v494_v36 = vld [vmem:[%s2970_s25 + $0x3f8] sm:$0xff] }
  0x45   : >> { %491 = vst [vmem:[%s2966_s24 + $0x1a0] sm:$0xff] %v490_v34  ;;  %493 = vst [vmem:[%s2966_s24 + $0x1c0] sm:$0xff] %v492_v35  ;;  %v496_v37 = vld [vmem:[%s2970_s25 + $0x400] sm:$0xff]  ;;  %v498_v38 = vld [vmem:[%s2970_s25 + $0x408] sm:$0xff] }
  0x46   : >> { %495 = vst [vmem:[%s2966_s24 + $0x1c8] sm:$0xff] %v494_v36  ;;  %497 = vst [vmem:[%s2966_s24 + $0x1d0] sm:$0xff] %v496_v37  ;;  %v500_v39 = vld [vmem:[%s2970_s25 + $0x410] sm:$0xff]  ;;  %v502_v40 = vld [vmem:[%s2970_s25 + $0x480] sm:$0xff] }
  0x47   : >> { %499 = vst [vmem:[%s2966_s24 + $0x1d8] sm:$0xff] %v498_v38  ;;  %v504_v41 = vld [vmem:[%s2970_s25 + $0x488] sm:$0xff]  ;;  %501 = vst [vmem:[%s2966_s24 + $0x1e0] sm:$0xff] %v500_v39  ;;  %v506_v42 = vld [vmem:[%s2970_s25 + $0x490] sm:$0xff] }
  0x48   : >> { %503 = vst [vmem:[%s2966_s24 + $0x200] sm:$0xff] %v502_v40  ;;  %505 = vst [vmem:[%s2966_s24 + $0x208] sm:$0xff] %v504_v41  ;;  %v508_v43 = vld [vmem:[%s2970_s25 + $0x498] sm:$0xff]  ;;  %v510_v44 = vld [vmem:[%s2970_s25 + $0x4a0] sm:$0xff] }
  0x49   : >> { %507 = vst [vmem:[%s2966_s24 + $0x210] sm:$0xff] %v506_v42  ;;  %509 = vst [vmem:[%s2966_s24 + $0x218] sm:$0xff] %v508_v43  ;;  %v512_v45 = vld [vmem:[%s2970_s25 + $0x510] sm:$0xff]  ;;  %v514_v46 = vld [vmem:[%s2970_s25 + $0x518] sm:$0xff] }
  0x4a   : >> { %511 = vst [vmem:[%s2966_s24 + $0x220] sm:$0xff] %v510_v44  ;;  %v516_v47 = vld [vmem:[%s2970_s25 + $0x520] sm:$0xff]  ;;  %513 = vst [vmem:[%s2966_s24 + $0x240] sm:$0xff] %v512_v45  ;;  %v518_v48 = vld [vmem:[%s2970_s25 + $0x528] sm:$0xff] }
  0x4b   : >> { %515 = vst [vmem:[%s2966_s24 + $0x248] sm:$0xff] %v514_v46  ;;  %517 = vst [vmem:[%s2966_s24 + $0x250] sm:$0xff] %v516_v47  ;;  %v520_v49 = vld [vmem:[%s2970_s25 + $0x530] sm:$0xff]  ;;  %v522_v50 = vld [vmem:[%s2970_s25 + $0x5a0] sm:$0xff] }
  0x4c   : >> { %519 = vst [vmem:[%s2966_s24 + $0x258] sm:$0xff] %v518_v48  ;;  %521 = vst [vmem:[%s2966_s24 + $0x260] sm:$0xff] %v520_v49  ;;  %v524_v51 = vld [vmem:[%s2970_s25 + $0x5a8] sm:$0xff]  ;;  %v526_v52 = vld [vmem:[%s2970_s25 + $0x5b0] sm:$0xff] }
  0x4d   : >> { %523 = vst [vmem:[%s2966_s24 + $0x280] sm:$0xff] %v522_v50  ;;  %v528_v53 = vld [vmem:[%s2970_s25 + $0x5b8] sm:$0xff]  ;;  %525 = vst [vmem:[%s2966_s24 + $0x288] sm:$0xff] %v524_v51  ;;  %v530_v54 = vld [vmem:[%s2970_s25 + $0x5c0] sm:$0xff] }
  0x4e   : >> { %527 = vst [vmem:[%s2966_s24 + $0x290] sm:$0xff] %v526_v52  ;;  %529 = vst [vmem:[%s2966_s24 + $0x298] sm:$0xff] %v528_v53  ;;  %v532_v55 = vld [vmem:[%s2970_s25 + $0x630] sm:$0xff]  ;;  %v534_v56 = vld [vmem:[%s2970_s25 + $0x638] sm:$0xff] }
  0x4f   : >> { %531 = vst [vmem:[%s2966_s24 + $0x2a0] sm:$0xff] %v530_v54  ;;  %533 = vst [vmem:[%s2966_s24 + $0x2c0] sm:$0xff] %v532_v55  ;;  %v536_v57 = vld [vmem:[%s2970_s25 + $0x640] sm:$0xff]  ;;  %v538_v58 = vld [vmem:[%s2970_s25 + $0x648] sm:$0xff] }
  0x50   : >> { %535 = vst [vmem:[%s2966_s24 + $0x2c8] sm:$0xff] %v534_v56  ;;  %v540_v59 = vld [vmem:[%s2970_s25 + $0x650] sm:$0xff]  ;;  %537 = vst [vmem:[%s2966_s24 + $0x2d0] sm:$0xff] %v536_v57  ;;  %v542_v60 = vld [vmem:[%s2970_s25 + $0x6c0] sm:$0xff] }
  0x51   : >> { %539 = vst [vmem:[%s2966_s24 + $0x2d8] sm:$0xff] %v538_v58  ;;  %541 = vst [vmem:[%s2966_s24 + $0x2e0] sm:$0xff] %v540_v59  ;;  %v544_v61 = vld [vmem:[%s2970_s25 + $0x6c8] sm:$0xff]  ;;  %v546_v62 = vld [vmem:[%s2970_s25 + $0x6d0] sm:$0xff] }
  0x52   : >> { %543 = vst [vmem:[%s2966_s24 + $0x300] sm:$0xff] %v542_v60  ;;  %545 = vst [vmem:[%s2966_s24 + $0x308] sm:$0xff] %v544_v61  ;;  %v548_v63 = vld [vmem:[%s2970_s25 + $0x6d8] sm:$0xff]  ;;  %v550_v0 = vld [vmem:[%s2970_s25 + $0x6e0] sm:$0xff] }
  0x53   : >> { %547 = vst [vmem:[%s2966_s24 + $0x310] sm:$0xff] %v546_v62  ;;  %v552_v1 = vld [vmem:[%s2970_s25 + $0x750] sm:$0xff]  ;;  %549 = vst [vmem:[%s2966_s24 + $0x318] sm:$0xff] %v548_v63  ;;  %v554_v2 = vld [vmem:[%s2970_s25 + $0x758] sm:$0xff]  ;;  %418 = sbr.rel (!%p415_p13) target bundleno = 51 (0x33), region = 223 }
  0x54   : >> { %551 = vst [vmem:[%s2966_s24 + $0x320] sm:$0xff] %v550_v0  ;;  %553 = vst [vmem:[%s2966_s24 + $0x340] sm:$0xff] %v552_v1  ;;  %v556_v3 = vld [vmem:[%s2970_s25 + $0x760] sm:$0xff]  ;;  %v558_v4 = vld [vmem:[%s2970_s25 + $0x768] sm:$0xff] }
  0x55   : >> { %555 = vst [vmem:[%s2966_s24 + $0x348] sm:$0xff] %v554_v2  ;;  %557 = vst [vmem:[%s2966_s24 + $0x350] sm:$0xff] %v556_v3  ;;  %v560_v5 = vld [vmem:[%s2970_s25 + $0x770] sm:$0xff]  ;;  %v562_v6 = vld [vmem:[%s2970_s25 + $0x7e0] sm:$0xff] }
  0x56   : >> { %559 = vst [vmem:[%s2966_s24 + $0x358] sm:$0xff] %v558_v4  ;;  %v564_v7 = vld [vmem:[%s2970_s25 + $0x7e8] sm:$0xff]  ;;  %561 = vst [vmem:[%s2966_s24 + $0x360] sm:$0xff] %v560_v5  ;;  %v566_v8 = vld [vmem:[%s2970_s25 + $0x7f0] sm:$0xff] }
  0x57   : >> { %563 = vst [vmem:[%s2966_s24 + $0x380] sm:$0xff] %v562_v6  ;;  %565 = vst [vmem:[%s2966_s24 + $0x388] sm:$0xff] %v564_v7  ;;  %v568_v9 = vld [vmem:[%s2970_s25 + $0x7f8] sm:$0xff]  ;;  %v570_v10 = vld [vmem:[%s2970_s25 + $0x800] sm:$0xff]  ;;  %s4387_s25 = smov %s3187_s4 }
  0x58   : >> { %567 = vst [vmem:[%s2966_s24 + $0x390] sm:$0xff] %v566_v8  ;;  %569 = vst [vmem:[%s2966_s24 + $0x398] sm:$0xff] %v568_v9 }
  0x59   : >> { %571 = vst [vmem:[%s2966_s24 + $0x3a0] sm:$0xff] %v570_v10  ;;  %s4386_s24 = smov %s3190_s6 }
  0x5a PF: > { %2680 = sdivrem.u32 %s4471_s5, 5 }
  0x5b   : > { %s2321_s7 = smul.u32 40, %s3114_s21 }
  0x5d   : > { %s3313_s8 = scalar_lea.vmem %s3106_s9, %s2321_s7   ;;  %s3316_s10 = scalar_lea.vmem %s3111_s11, %s2321_s7 [#allocation4]  }
  0x63   : > { %s3318_s30 = spop.drf %2680 }
  0x64   : > { %p2323_p0 = scmp.le.s32.totalorder %s3318_s30, 0 }
  0x65   : > { %s4389_s27 = smov (!%p2323_p0), %s3316_s10  ;;  %s4390_s24 = smov (!%p2323_p0), %s3313_s8 }
  0x66   : > { %2233 = sbr.rel (%p2323_p0) target bundleno = 119 (0x77), region = 228  ;;  %s3327_s25 = smov (!%p2323_p0), 0  }
  0x67   : > { %s3329_s26 = smov (!%p2323_p0), 0  }
  0x6d LB: >> { %v595_v11 = vld [vmem:[%s2986_s24] sm:$0xff]  ;;  %v597_v12 = vld [vmem:[%s2986_s24 + $0x90] sm:$0xff]  ;;  %s625_s5 = sadd.s32 1, %s2990_s25  ;;  %s589_s26 = sadd.s32 1, %s2994_s26   ;;  %s2994_s26 = sphi %s3329_s26, %s589_s26   ;;  %s2990_s25 = sphi %s3327_s25, %s4391_s25   ;;  %s2986_s24 = sphi %s4390_s24, %s630_s24   ;;  %s2982_s27 = sphi %s4389_s27, %s631_s27  }
  0x6e   : >> { %v599_v13 = vld [vmem:[%s2986_s24 + $0x120] sm:$0xff]  ;;  %596 = vst [vmem:[%s2982_s27] sm:$0xff] %v595_v11  ;;  %598 = vst [vmem:[%s2982_s27 + $0x40] sm:$0xff] %v597_v12  ;;  %v601_v14 = vld [vmem:[%s2986_s24 + $0x1b0] sm:$0xff]  ;;  %p626_p1 = scmp.ge.s32.totalorder %s625_s5, %s3318_s30  ;;  %p588_p2 = scmp.ge.s32.totalorder %s589_s26, %s3318_s30 }
  0x6f   : >> { %600 = vst [vmem:[%s2982_s27 + $0x80] sm:$0xff] %v599_v13  ;;  %v603_v15 = vld [vmem:[%s2986_s24 + $0x240] sm:$0xff]  ;;  %v605_v16 = vld [vmem:[%s2986_s24 + $0x2d0] sm:$0xff]  ;;  %602 = vst [vmem:[%s2982_s27 + $0xc0] sm:$0xff] %v601_v14 }
  0x70   : >> { %604 = vst [vmem:[%s2982_s27 + $0x100] sm:$0xff] %v603_v15  ;;  %606 = vst [vmem:[%s2982_s27 + $0x140] sm:$0xff] %v605_v16  ;;  %v607_v17 = vld [vmem:[%s2986_s24 + $0x360] sm:$0xff]  ;;  %v609_v18 = vld [vmem:[%s2986_s24 + $0x3f0] sm:$0xff]  ;;  %s4475_s5 = smov (%p626_p1, %s625_s5), 0  ;;  %591 = sbr.rel (!%p588_p2) target bundleno = 109 (0x6d), region = 234 }
  0x71   : >> { %v611_v19 = vld [vmem:[%s2986_s24 + $0x480] sm:$0xff]  ;;  %608 = vst [vmem:[%s2982_s27 + $0x180] sm:$0xff] %v607_v17  ;;  %610 = vst [vmem:[%s2982_s27 + $0x1c0] sm:$0xff] %v609_v18  ;;  %v613_v20 = vld [vmem:[%s2986_s24 + $0x510] sm:$0xff]  ;;  %s2324_s9 = sshll.u32 %s4475_s5, 3  ;;  %s4391_s25 = smov %s4475_s5 }
  0x72   : >> { %612 = vst [vmem:[%s2982_s27 + $0x200] sm:$0xff] %v611_v19  ;;  %v615_v21 = vld [vmem:[%s2986_s24 + $0x5a0] sm:$0xff]  ;;  %v617_v22 = vld [vmem:[%s2986_s24 + $0x630] sm:$0xff]  ;;  %614 = vst [vmem:[%s2982_s27 + $0x240] sm:$0xff] %v613_v20 }
  0x73   : >> { %616 = vst [vmem:[%s2982_s27 + $0x280] sm:$0xff] %v615_v21  ;;  %618 = vst [vmem:[%s2982_s27 + $0x2c0] sm:$0xff] %v617_v22  ;;  %v619_v23 = vld [vmem:[%s2986_s24 + $0x6c0] sm:$0xff]  ;;  %v621_v24 = vld [vmem:[%s2986_s24 + $0x750] sm:$0xff] }
  0x74   : >> { %v623_v25 = vld [vmem:[%s2986_s24 + $0x7e0] sm:$0xff]  ;;  %620 = vst [vmem:[%s2982_s27 + $0x300] sm:$0xff] %v619_v23  ;;  %622 = vst [vmem:[%s2982_s27 + $0x340] sm:$0xff] %v621_v24  ;;  %s630_s24 = scalar_lea.vmem %s3313_s8, %s2324_s9  }
  0x75   : >> { %624 = vst [vmem:[%s2982_s27 + $0x380] sm:$0xff] %v623_v25  ;;  %s631_s27 = scalar_lea.vmem %s3316_s10, %s2324_s9 [#allocation4]  }
  0x77 PF: > { %637 = sbr.rel (!%p3086_p5) target bundleno = 170 (0xaa), region = 72  ;;  %s639_s11 = sand.u32 (%p3086_p5), 1, %s2942_s13  }
  0x78   : > { %s2328_s21 = sshll.u32 (%p3086_p5), %s4465_s22, 3  ;;  %s3388_s29 = sshll.u32 (%p3086_p5), %s639_s11, 12 }
  0x79   : > { %s647_s4 = ssub.s32 (%p3086_p5), 18, %s2328_s21  ;;  %s2510_s6 = sshll.u32 (%p3086_p5), %s4465_s22, 6 }
  0x7a   : > { %p648_p3 = scmp.lt.s32.totalorder (%p3086_p5), %s647_s4, 8  ;;  %s3396_s10 = scalar_lea.vmem (%p3086_p5), %s4337_s1, %s2510_s6  }
  0x7b   : > { %s641_s30 = scalar_lea.vmem (%p3086_p5), [#allocation5], %s3388_s29  }
  0x7e   : > { %s4477_s4 = smov (!%p648_p3, %s647_s4), 8 }
  0x7f   : > { %s2329_s23 = sshll.u32 %s4477_s4, 13 }
  0x80   : > { %p2332_p4 = scmp.eq.s32.totalorder %s2329_s23, 0 }
  0x81   : > { %s4392_s27 = smov (!%p2332_p4), %s641_s30  ;;  %s4393_s24 = smov (!%p2332_p4), %s3396_s10 }
  0x82   : > { %656 = sbr.rel (%p2332_p4) target bundleno = 170 (0xaa), region = 76  ;;  %s3407_s22 = smov (!%p2332_p4), 0  }
  0x83   : > { %s3409_s25 = smov (!%p2332_p4), 0  }
  0x89 LB: >> { %v817_v26 = vld [vmem:[%s3002_s24] sm:$0xff]  ;;  %v819_v27 = vld [vmem:[%s3002_s24 + $0x90] sm:$0xff]  ;;  %s945_s26 = sadd.s32 1, %s3006_s22  ;;  %s811_s25 = sadd.s32 1, %s3010_s25   ;;  %s3010_s25 = sphi %s3409_s25, %s811_s25   ;;  %s3006_s22 = sphi %s3407_s22, %s4396_s22   ;;  %s3002_s24 = sphi %s4393_s24, %s4395_s24   ;;  %s2998_s27 = sphi %s4392_s27, %s4394_s27  }
  0x8a   : >> { %v821_v28 = vld [vmem:[%s3002_s24 + $0x120] sm:$0xff]  ;;  %818 = vst [vmem:[%s2998_s27] sm:$0xff] %v817_v26  ;;  %820 = vst [vmem:[%s2998_s27 + $0x40] sm:$0xff] %v819_v27  ;;  %v823_v29 = vld [vmem:[%s3002_s24 + $0x1b0] sm:$0xff]  ;;  %p946_p5 = scmp.ge.s32.totalorder %s945_s26, %s4477_s4  ;;  %p810_p6 = scmp.ge.s32.totalorder %s811_s25, %s4477_s4 }
  0x8b   : >> { %822 = vst [vmem:[%s2998_s27 + $0x80] sm:$0xff] %v821_v28  ;;  %v825_v30 = vld [vmem:[%s3002_s24 + $0x240] sm:$0xff]  ;;  %v827_v31 = vld [vmem:[%s3002_s24 + $0x2d0] sm:$0xff]  ;;  %824 = vst [vmem:[%s2998_s27 + $0xc0] sm:$0xff] %v823_v29 }
  0x8c   : >> { %826 = vst [vmem:[%s2998_s27 + $0x100] sm:$0xff] %v825_v30  ;;  %828 = vst [vmem:[%s2998_s27 + $0x140] sm:$0xff] %v827_v31  ;;  %v829_v32 = vld [vmem:[%s3002_s24 + $0x360] sm:$0xff]  ;;  %v831_v33 = vld [vmem:[%s3002_s24 + $0x3f0] sm:$0xff]  ;;  %s4479_s26 = smov (%p946_p5, %s945_s26), 0 }
  0x8d   : >> { %v833_v34 = vld [vmem:[%s3002_s24 + $0x480] sm:$0xff]  ;;  %830 = vst [vmem:[%s2998_s27 + $0x180] sm:$0xff] %v829_v32  ;;  %832 = vst [vmem:[%s2998_s27 + $0x1c0] sm:$0xff] %v831_v33  ;;  %v835_v35 = vld [vmem:[%s3002_s24 + $0x510] sm:$0xff]  ;;  %s2334_s5 = sshll.u32 %s4479_s26, 3  ;;  %s4396_s22 = smov %s4479_s26 }
  0x8e   : >> { %834 = vst [vmem:[%s2998_s27 + $0x200] sm:$0xff] %v833_v34  ;;  %v837_v36 = vld [vmem:[%s3002_s24 + $0x5a0] sm:$0xff]  ;;  %v839_v37 = vld [vmem:[%s3002_s24 + $0x630] sm:$0xff]  ;;  %836 = vst [vmem:[%s2998_s27 + $0x240] sm:$0xff] %v835_v35  ;;  %s3465_s9 = scalar_lea.vmem %s3396_s10, %s2334_s5   ;;  %s3469_s11 = scalar_lea.vmem %s641_s30, %s2334_s5 [#allocation5]  }
  0x8f   : >> { %838 = vst [vmem:[%s2998_s27 + $0x280] sm:$0xff] %v837_v36  ;;  %840 = vst [vmem:[%s2998_s27 + $0x2c0] sm:$0xff] %v839_v37  ;;  %v841_v38 = vld [vmem:[%s3002_s24 + $0x6c0] sm:$0xff]  ;;  %v843_v39 = vld [vmem:[%s3002_s24 + $0x750] sm:$0xff] }
  0x90   : >> { %v845_v40 = vld [vmem:[%s3002_s24 + $0x7e0] sm:$0xff]  ;;  %842 = vst [vmem:[%s2998_s27 + $0x300] sm:$0xff] %v841_v38  ;;  %844 = vst [vmem:[%s2998_s27 + $0x340] sm:$0xff] %v843_v39  ;;  %v847_v41 = vld [vmem:[%s3002_s24 + $0x870] sm:$0xff] }
  0x91   : >> { %846 = vst [vmem:[%s2998_s27 + $0x380] sm:$0xff] %v845_v40  ;;  %v849_v42 = vld [vmem:[%s3002_s24 + $0x900] sm:$0xff]  ;;  %v851_v43 = vld [vmem:[%s3002_s24 + $0x990] sm:$0xff]  ;;  %848 = vst [vmem:[%s2998_s27 + $0x3c0] sm:$0xff] %v847_v41 }
  0x92   : >> { %850 = vst [vmem:[%s2998_s27 + $0x400] sm:$0xff] %v849_v42  ;;  %852 = vst [vmem:[%s2998_s27 + $0x440] sm:$0xff] %v851_v43  ;;  %v853_v44 = vld [vmem:[%s3002_s24 + $0xa20] sm:$0xff]  ;;  %v855_v45 = vld [vmem:[%s3002_s24 + $0xab0] sm:$0xff] }
  0x93   : >> { %v857_v46 = vld [vmem:[%s3002_s24 + $0xb40] sm:$0xff]  ;;  %854 = vst [vmem:[%s2998_s27 + $0x480] sm:$0xff] %v853_v44  ;;  %856 = vst [vmem:[%s2998_s27 + $0x4c0] sm:$0xff] %v855_v45  ;;  %v859_v47 = vld [vmem:[%s3002_s24 + $0xbd0] sm:$0xff] }
  0x94   : >> { %858 = vst [vmem:[%s2998_s27 + $0x500] sm:$0xff] %v857_v46  ;;  %v861_v48 = vld [vmem:[%s3002_s24 + $0xc60] sm:$0xff]  ;;  %v863_v49 = vld [vmem:[%s3002_s24 + $0xcf0] sm:$0xff]  ;;  %860 = vst [vmem:[%s2998_s27 + $0x540] sm:$0xff] %v859_v47 }
  0x95   : >> { %862 = vst [vmem:[%s2998_s27 + $0x580] sm:$0xff] %v861_v48  ;;  %864 = vst [vmem:[%s2998_s27 + $0x5c0] sm:$0xff] %v863_v49  ;;  %v865_v50 = vld [vmem:[%s3002_s24 + $0xd80] sm:$0xff]  ;;  %v867_v51 = vld [vmem:[%s3002_s24 + $0xe10] sm:$0xff] }
  0x96   : >> { %v869_v52 = vld [vmem:[%s3002_s24 + $0xea0] sm:$0xff]  ;;  %866 = vst [vmem:[%s2998_s27 + $0x600] sm:$0xff] %v865_v50  ;;  %868 = vst [vmem:[%s2998_s27 + $0x640] sm:$0xff] %v867_v51  ;;  %v871_v53 = vld [vmem:[%s3002_s24 + $0xf30] sm:$0xff] }
  0x97   : >> { %870 = vst [vmem:[%s2998_s27 + $0x680] sm:$0xff] %v869_v52  ;;  %v873_v54 = vld [vmem:[%s3002_s24 + $0xfc0] sm:$0xff]  ;;  %v875_v55 = vld [vmem:[%s3002_s24 + $0x1050] sm:$0xff]  ;;  %872 = vst [vmem:[%s2998_s27 + $0x6c0] sm:$0xff] %v871_v53 }
  0x98   : >> { %874 = vst [vmem:[%s2998_s27 + $0x700] sm:$0xff] %v873_v54  ;;  %876 = vst [vmem:[%s2998_s27 + $0x740] sm:$0xff] %v875_v55  ;;  %v877_v56 = vld [vmem:[%s3002_s24 + $0x10e0] sm:$0xff]  ;;  %v879_v57 = vld [vmem:[%s3002_s24 + $0x1170] sm:$0xff] }
  0x99   : >> { %v881_v58 = vld [vmem:[%s3002_s24 + $0x1200] sm:$0xff]  ;;  %878 = vst [vmem:[%s2998_s27 + $0x780] sm:$0xff] %v877_v56  ;;  %880 = vst [vmem:[%s2998_s27 + $0x7c0] sm:$0xff] %v879_v57  ;;  %v883_v59 = vld [vmem:[%s3002_s24 + $0x1290] sm:$0xff] }
  0x9a   : >> { %882 = vst [vmem:[%s2998_s27 + $0x800] sm:$0xff] %v881_v58  ;;  %v885_v60 = vld [vmem:[%s3002_s24 + $0x1320] sm:$0xff]  ;;  %v887_v61 = vld [vmem:[%s3002_s24 + $0x13b0] sm:$0xff]  ;;  %884 = vst [vmem:[%s2998_s27 + $0x840] sm:$0xff] %v883_v59 }
  0x9b   : >> { %886 = vst [vmem:[%s2998_s27 + $0x880] sm:$0xff] %v885_v60  ;;  %888 = vst [vmem:[%s2998_s27 + $0x8c0] sm:$0xff] %v887_v61  ;;  %v889_v62 = vld [vmem:[%s3002_s24 + $0x1440] sm:$0xff]  ;;  %v891_v63 = vld [vmem:[%s3002_s24 + $0x14d0] sm:$0xff] }
  0x9c   : >> { %v893_v0 = vld [vmem:[%s3002_s24 + $0x1560] sm:$0xff]  ;;  %890 = vst [vmem:[%s2998_s27 + $0x900] sm:$0xff] %v889_v62  ;;  %892 = vst [vmem:[%s2998_s27 + $0x940] sm:$0xff] %v891_v63  ;;  %v895_v1 = vld [vmem:[%s3002_s24 + $0x15f0] sm:$0xff] }
  0x9d   : >> { %894 = vst [vmem:[%s2998_s27 + $0x980] sm:$0xff] %v893_v0  ;;  %v897_v2 = vld [vmem:[%s3002_s24 + $0x1680] sm:$0xff]  ;;  %v899_v3 = vld [vmem:[%s3002_s24 + $0x1710] sm:$0xff]  ;;  %896 = vst [vmem:[%s2998_s27 + $0x9c0] sm:$0xff] %v895_v1 }
  0x9e   : >> { %898 = vst [vmem:[%s2998_s27 + $0xa00] sm:$0xff] %v897_v2  ;;  %900 = vst [vmem:[%s2998_s27 + $0xa40] sm:$0xff] %v899_v3  ;;  %v901_v4 = vld [vmem:[%s3002_s24 + $0x17a0] sm:$0xff]  ;;  %v903_v5 = vld [vmem:[%s3002_s24 + $0x1830] sm:$0xff] }
  0x9f   : >> { %v905_v6 = vld [vmem:[%s3002_s24 + $0x18c0] sm:$0xff]  ;;  %902 = vst [vmem:[%s2998_s27 + $0xa80] sm:$0xff] %v901_v4  ;;  %904 = vst [vmem:[%s2998_s27 + $0xac0] sm:$0xff] %v903_v5  ;;  %v907_v7 = vld [vmem:[%s3002_s24 + $0x1950] sm:$0xff] }
  0xa0   : >> { %906 = vst [vmem:[%s2998_s27 + $0xb00] sm:$0xff] %v905_v6  ;;  %v909_v8 = vld [vmem:[%s3002_s24 + $0x19e0] sm:$0xff]  ;;  %v911_v9 = vld [vmem:[%s3002_s24 + $0x1a70] sm:$0xff]  ;;  %908 = vst [vmem:[%s2998_s27 + $0xb40] sm:$0xff] %v907_v7 }
  0xa1   : >> { %910 = vst [vmem:[%s2998_s27 + $0xb80] sm:$0xff] %v909_v8  ;;  %912 = vst [vmem:[%s2998_s27 + $0xbc0] sm:$0xff] %v911_v9  ;;  %v913_v10 = vld [vmem:[%s3002_s24 + $0x1b00] sm:$0xff]  ;;  %v915_v11 = vld [vmem:[%s3002_s24 + $0x1b90] sm:$0xff] }
  0xa2   : >> { %v917_v12 = vld [vmem:[%s3002_s24 + $0x1c20] sm:$0xff]  ;;  %914 = vst [vmem:[%s2998_s27 + $0xc00] sm:$0xff] %v913_v10  ;;  %916 = vst [vmem:[%s2998_s27 + $0xc40] sm:$0xff] %v915_v11  ;;  %v919_v13 = vld [vmem:[%s3002_s24 + $0x1cb0] sm:$0xff] }
  0xa3   : >> { %918 = vst [vmem:[%s2998_s27 + $0xc80] sm:$0xff] %v917_v12  ;;  %v921_v14 = vld [vmem:[%s3002_s24 + $0x1d40] sm:$0xff]  ;;  %v923_v15 = vld [vmem:[%s3002_s24 + $0x1dd0] sm:$0xff]  ;;  %920 = vst [vmem:[%s2998_s27 + $0xcc0] sm:$0xff] %v919_v13  ;;  %813 = sbr.rel (!%p810_p6) target bundleno = 137 (0x89), region = 245 }
  0xa4   : >> { %922 = vst [vmem:[%s2998_s27 + $0xd00] sm:$0xff] %v921_v14  ;;  %924 = vst [vmem:[%s2998_s27 + $0xd40] sm:$0xff] %v923_v15  ;;  %v925_v16 = vld [vmem:[%s3002_s24 + $0x1e60] sm:$0xff]  ;;  %v927_v17 = vld [vmem:[%s3002_s24 + $0x1ef0] sm:$0xff] }
  0xa5   : >> { %v929_v18 = vld [vmem:[%s3002_s24 + $0x1f80] sm:$0xff]  ;;  %926 = vst [vmem:[%s2998_s27 + $0xd80] sm:$0xff] %v925_v16  ;;  %928 = vst [vmem:[%s2998_s27 + $0xdc0] sm:$0xff] %v927_v17  ;;  %v931_v19 = vld [vmem:[%s3002_s24 + $0x2010] sm:$0xff] }
  0xa6   : >> { %930 = vst [vmem:[%s2998_s27 + $0xe00] sm:$0xff] %v929_v18  ;;  %v933_v20 = vld [vmem:[%s3002_s24 + $0x20a0] sm:$0xff]  ;;  %v935_v21 = vld [vmem:[%s3002_s24 + $0x2130] sm:$0xff]  ;;  %932 = vst [vmem:[%s2998_s27 + $0xe40] sm:$0xff] %v931_v19 }
  0xa7   : >> { %934 = vst [vmem:[%s2998_s27 + $0xe80] sm:$0xff] %v933_v20  ;;  %936 = vst [vmem:[%s2998_s27 + $0xec0] sm:$0xff] %v935_v21  ;;  %v937_v22 = vld [vmem:[%s3002_s24 + $0x21c0] sm:$0xff]  ;;  %v939_v23 = vld [vmem:[%s3002_s24 + $0x2250] sm:$0xff] }
  0xa8   : >> { %v941_v24 = vld [vmem:[%s3002_s24 + $0x22e0] sm:$0xff]  ;;  %938 = vst [vmem:[%s2998_s27 + $0xf00] sm:$0xff] %v937_v22  ;;  %940 = vst [vmem:[%s2998_s27 + $0xf40] sm:$0xff] %v939_v23  ;;  %v943_v25 = vld [vmem:[%s3002_s24 + $0x2370] sm:$0xff]  ;;  %s4395_s24 = smov %s3465_s9 }
  0xa9   : >> { %942 = vst [vmem:[%s2998_s27 + $0xf80] sm:$0xff] %v941_v24  ;;  %944 = vst [vmem:[%s2998_s27 + $0xfc0] sm:$0xff] %v943_v25  ;;  %s4394_s27 = smov %s3469_s11 }
  0xaa PF: > { %p2336_p7 = scmp.ge.s32.totalorder %s2962_s18, 1  ;;  %p956_p8 = scmp.lt.s32.totalorder %s2962_s18, 5 }
  0xac   : > { %p957_p9 = pnand %p2336_p7, %p956_p8 }
  0xae   : > { %960 = sbr.rel (%p957_p9) target bundleno = 471 (0x1d7), region = 110 }
  0xb5   : > { %s963_s21 = sand.u32 1, %s2938_s12   ;;  %p1018_p10 = scmp.lt.s32.totalorder %s2950_s15, 1 }
  0xb6   : > { %s3577_s6 = smul.u32 960, %s963_s21  ;;  %s3579_s7 = sshll.u32 %s963_s21, 12 }
  0xb7   : > { %s1019_s29 = scalar_select %p1018_p10, %s2950_s15, 1 }
  0xb8   : > { %s965_s12 = scalar_lea.vmem [#allocation4], %s3577_s6  ;;  %s972_s22 = scalar_lea.vmem [#allocation5], %s3579_s7 }
  0xb9   : > { %s2338_s4 = sshll.u32 %s1019_s29, 3  ;;  %p2340_p11 = scmp.ne.s32.totalorder %s2946_s14, 0 }
  0xba   : > { %s3585_s23 = scalar_lea.vmem %s4338_s2, %s2338_s4  ;;  %s3590_s24 = scalar_lea.vmem %s4339_s3, %s2338_s4  ;;  %v3016_v26 = vmov (!%p2340_p11), 0.0  }
  0xbb   : > { %1029 = sbr.rel (%p2340_p11) target bundleno = 194 (0xc2), region = 122  ;;  %1030 = vst [vmem:[#allocation2] sm:$0xff] (!%p2340_p11), %v3016_v26  ;;  %1031 = vst [vmem:[#allocation3] sm:$0xff] (!%p2340_p11), %v3016_v26 }
  0xc2 PF: > { %s2341_s25 = sshll.u32 %s2950_s15, 1  ;;  %v1035_v27 = vlaneseq  ;;  %s3602_s9 = smov 0  }
  0xc3   : > { %s3597_s26 = sadd.s32 %s2946_s14, %s2341_s25 }
  0xc4   : > { %s2342_s5 = sshll.u32 %s3597_s26, 6  ;;  %v3600_v28 = vshrl.u32 %v1035_v27, 7 }
  0xc6   : > { %4397 = vst [vmem:[#allocation6_spill] sm:$0xff] %v3600_v28 }
  0xc7 LB: >> { %s3608_s11 = sshll.u32 %s3014_s9, 3  ;;  %s1042_s9 = sadd.s32 1, %s3014_s9   ;;  %s3014_s9 = sphi %s3602_s9, %s1042_s9  }
  0xc8   : >> { %s3613_s15 = scalar_lea.vmem %s965_s12, %s3608_s11 [#allocation4]  ;;  %s3637_s14 = scalar_lea.vmem %s972_s22, %s3608_s11 [#allocation5] }
  0xc9   : >> { %v2347_v29 = vld [vmem:[%s3613_s15 + $0x80] sm:$0xff]  ;;  %s3982_s21 = sadd.s32 %s3608_s11, %s2342_s5  ;;  %p1039_p12 = scmp.ge.s32.totalorder %s1042_s9, 8  }
  0xca   : >> { %v2349_v30 = vld [vmem:[%s3613_s15 + $0xc0] sm:$0xff]  ;;  %v1094_v33 = vmul.f32 %v2347_v29, %v2347_v29 }
  0xcb   : >> { %v2351_v31 = vld [vmem:[%s3613_s15 + $0x100] sm:$0xff]  ;;  %v1096_v36 = vmul.f32 %v2349_v30, %v2349_v30 }
  0xcc   : >> { %v2353_v32 = vld [vmem:[%s3613_s15 + $0x140] sm:$0xff]  ;;  %v1102_v37 = vmul.f32 %v2351_v31, %v2351_v31  ;;  %v1095_v42 = vmul.f32 0.083333336, %v1094_v33 }
  0xcd   : >> { %v1049_v34 = vld [vmem:[%s3613_s15] sm:$0xff]  ;;  %v1103_v38 = vmul.f32 %v2353_v32, %v2353_v32  ;;  %v1097_v46 = vmul.f32 0.083333336, %v1096_v36 }
  0xce   : >> { %v2359_v35 = vld [vmem:[%s3613_s15 + $0x200] sm:$0xff]  ;;  %v1106_v51 = vmul.f32 %v1102_v37, %v1095_v42 }
  0xcf   : >> { %v2361_v39 = vld [vmem:[%s3613_s15 + $0x240] sm:$0xff]  ;;  %v1098_v43 = vmul.f32 %v2359_v35, %v2359_v35  ;;  %v1109_v52 = vmul.f32 %v1103_v38, %v1095_v42  ;;  %v1107_v56 = vmul.f32 %v1103_v38, %v1097_v46  ;;  %v1110_v57 = vmul.f32 %v1102_v37, %v1097_v46 }
  0xd0   : >> { %v2363_v40 = vld [vmem:[%s3613_s15 + $0x280] sm:$0xff]  ;;  %v1100_v47 = vmul.f32 %v2361_v39, %v2361_v39  ;;  %v1112_v58 = vsub.f32 %v1095_v42, %v1097_v46  ;;  %v1191_v4 = vmul.f32 0.5, %v2359_v35  ;;  %v1192_v5 = vmul.f32 0.5, %v2361_v39 }
  0xd1   : >> { %v2365_v41 = vld [vmem:[%s3613_s15 + $0x2c0] sm:$0xff]  ;;  %v1104_v48 = vmul.f32 %v2363_v40, %v2363_v40  ;;  %v1099_v50 = vmul.f32 0.083333336, %v1098_v43  ;;  %v1108_v62 = vadd.f32 %v1107_v56, %v1106_v51  ;;  %v1111_v63 = vadd.f32 %v1110_v57, %v1109_v52 }
  0xd2   : >> { %v2345_v44 = vld [vmem:[%s3613_s15 + $0x40] sm:$0xff]  ;;  %v1105_v49 = vmul.f32 %v2365_v41, %v2365_v41  ;;  %v1101_v55 = vmul.f32 0.083333336, %v1100_v47  ;;  %v1113_v0 = vmul.f32 %v2351_v31, %v1112_v58 }
  0xd3   : >> { %v2355_v45 = vld [vmem:[%s3613_s15 + $0x180] sm:$0xff]  ;;  %v1115_v59 = vmul.f32 %v1104_v48, %v1099_v50  ;;  %v1146_v10 = vmul.f32 %v1111_v63, %v1108_v62 }
  0xd4   : >> { %v3626_v53 = vsub.f32 %v1049_v34, %v2355_v45  ;;  %v2357_v54 = vld [vmem:[%s3613_s15 + $0x1c0] sm:$0xff]  ;;  %v1118_v60 = vmul.f32 %v1105_v49, %v1099_v50  ;;  %v1116_v1 = vmul.f32 %v1105_v49, %v1101_v55  ;;  %v1119_v2 = vmul.f32 %v1104_v48, %v1101_v55 }
  0xd5   : >> { %v3629_v61 = vsub.f32 %v2345_v44, %v2357_v54  ;;  %v1121_v3 = vsub.f32 %v1099_v50, %v1101_v55  ;;  %v2367_v6 = vld [vmem:[%s3613_s15 + $0x300] sm:$0xff]  ;;  %v1114_v7 = vmul.f32 %v2353_v32, %v1113_v0  ;;  %v1193_v14 = vsub.f32 %v2355_v45, %v1191_v4 }
  0xd6   : >> { %v1117_v8 = vadd.f32 %v1116_v1, %v1115_v59  ;;  %v1141_v9 = vsub.f32 0.0, %v3626_v53  ;;  %v2369_v11 = vld [vmem:[%s3613_s15 + $0x340] sm:$0xff]  ;;  %v1120_v12 = vadd.f32 %v1119_v2, %v1118_v60  ;;  %v1194_v15 = vsub.f32 %v2357_v54, %v1192_v5 }
  0xd7   : >> { %v1122_v13 = vmul.f32 %v2363_v40, %v1121_v3  ;;  %v1147_v17 = vmul.f32 %v1114_v7, %v1114_v7  ;;  %v1195_v18 = vadd.f32 %v2355_v45, %v1191_v4  ;;  %v1196_v19 = vadd.f32 %v2357_v54, %v1192_v5  ;;  %v3641_v29 = vld [vmem:[%s3637_s14] sm:$0xff] }
  0xd8   : >> { %v1124_v16 = vadd.f32 %v1117_v8, %v1108_v62  ;;  %v1125_v21 = vadd.f32 %v1120_v12, %v1111_v63  ;;  %v1150_v22 = vmul.f32 %v1120_v12, %v1117_v8  ;;  %v1197_v23 = vsub.f32 %v2367_v6, %v1193_v14  ;;  %v3644_v30 = vld [vmem:[%s3637_s14 + $0x100] sm:$0xff] }
  0xd9   : >> { %v1123_v20 = vmul.f32 %v2365_v41, %v1122_v13  ;;  %v1148_v25 = vsub.f32 %v1146_v10, %v1147_v17  ;;  %v1200_v26 = vsub.f32 %v2369_v11, %v1194_v15  ;;  %v1203_v27 = vsub.f32 %v1195_v18, %v2367_v6  ;;  %v3648_v36 = vld [vmem:[%s3637_s14 + $0x40] sm:$0xff] }
  0xda   : >> { %v1134_v24 = vmul.f32 %v3629_v61, %v1124_v16  ;;  %v1129_v32 = vmul.f32 %v1125_v21, %v1124_v16  ;;  %v1136_v33 = vmul.f32 %v3626_v53, %v1125_v21  ;;  %v1198_v35 = vmax.f32 %v1197_v23, 0.0  ;;  %v3651_v40 = vld [vmem:[%s3637_s14 + $0x80] sm:$0xff] }
  0xdb   : >> { %v1126_v31 = vadd.f32 %v1123_v20, %v1114_v7  ;;  %v1151_v34 = vmul.f32 %v1123_v20, %v1123_v20  ;;  %v1149_v38 = vmax.f32 %v1148_v25, 0.0  ;;  %v3654_v41 = vld [vmem:[%s3637_s14 + $0x140] sm:$0xff]  ;;  %v1219_v43 = vmax.f32 %v3641_v29, %v3644_v30 }
  0xdc   : >> { %v3657_v42 = vld [vmem:[%s3637_s14 + $0x180] sm:$0xff]  ;;  %v1135_v44 = vmul.f32 %v1134_v24, %v3629_v61  ;;  %v1137_v45 = vmul.f32 %v1136_v33, %v3626_v53  ;;  %v1201_v46 = vmax.f32 %v1200_v26, 0.0  ;;  %v1206_v47 = vsub.f32 %v1196_v19, %v2369_v11 }
  0xdd   : >> { %v1130_v37 = vmul.f32 %v1126_v31, %v1126_v31  ;;  %v1152_v39 = vsub.f32 %v1150_v22, %v1151_v34  ;;  %v3664_v48 = vld [vmem:[%s3637_s14 + $0xc0] sm:$0xff]  ;;  %v1142_v52 = vmul.f32 %v1141_v9, %v1126_v31  ;;  %v1204_v55 = vmax.f32 %v1203_v27, 0.0 }
  0xde   : >> { %v3667_v49 = vld [vmem:[%s3637_s14 + $0x1c0] sm:$0xff]  ;;  %v3680_v53 = vmin.f32 %v1198_v35, 14.99  ;;  %v1207_v58 = vmax.f32 %v1206_v47, 0.0  ;;  %v1220_v59 = vmax.f32 %v3648_v36, %v3654_v41  ;;  %v1221_v60 = vmax.f32 %v3651_v40, %v3657_v42 }
  0xdf   : >> { %v3670_v50 = vld [vmem:[%s3637_s14 + $0x200] sm:$0xff]  ;;  %v3672_v51 = vsub.f32 %v1129_v32, %v1130_v37  ;;  %v1153_v54 = vmax.f32 %v1152_v39, 0.0  ;;  %v1222_v0 = vmax.f32 %v3664_v48, %v3667_v49  ;;  %v3701_v5 = vadd.f32 %v1137_v45, %v1135_v44 }
  0xe0   : >> { %v3675_v56 = vld [vmem:[%s3637_s14 + $0x240] sm:$0xff]  ;;  %v1228_v2 = vmax.f32 %v1219_v43, %v3670_v50  ;;  %v3703_v6 = vmin.f32 %v1201_v46, 14.99  ;;  %v3714_v11 = vmul.f32 %v1142_v52, %v3629_v61  ;;  %v3716_v12 = vmin.f32 %v1204_v55, 14.99 }
  0xe1   : >> { %v3678_v57 = vld [vmem:[%s3637_s14 + $0x280] sm:$0xff]  ;;  %v1132_v62 = vadd.f32 1e-07, %v3672_v51  ;;  %v3687_v63 = vmul.f32 %v1153_v54, %v1149_v38  ;;  %v1229_v7 = vmax.f32 %v1220_v59, %v3675_v56  ;;  %v3718_v13 = vmin.f32 %v1207_v58, 14.99 }
  0xe2   : >> { %v3692_v1 = vld [vmem:[%s3637_s14 + $0x2c0] sm:$0xff]  ;;  %v1230_v8 = vmax.f32 %v1221_v60, %v3678_v57  ;;  %v1377_v24 = vand.u32 2147483647, %v3680_v53  ;;  %v3746_v25 = vadd.f32 -1.0, %v3680_v53  ;;  %v1378_v35 = vand.u32 2147483647, %v3703_v6 }
  0xe3   : >> { %v3696_v3 = vld [vmem:[%s3637_s14 + $0x300] sm:$0xff]  ;;  %2682 = vrcp.f32 %v1132_v62  ;;  %v1231_v16 = vmax.f32 %v1222_v0, %v3692_v1  ;;  %vm1157_vm0 = vcmp.eq.f32.partialorder %v3687_v63, inf  ;;  %vm1159_vm1 = vcmp.eq.f32.partialorder %v3687_v63, 0.0 }
  0xe4   : >> { %v3699_v4 = vld [vmem:[%s3637_s14 + $0x340] sm:$0xff]  ;;  %2684 = vrsqrt.f32 %v3687_v63  ;;  %v1237_v17 = vmax.f32 %v1228_v2, %v3696_v3  ;;  %v1379_v39 = vand.u32 2147483647, %v3716_v12  ;;  %v1380_v43 = vand.u32 2147483647, %v3718_v13 }
  0xe5   : >> { %v3708_v9 = vld [vmem:[%s3637_s14 + $0x380] sm:$0xff]  ;;  %v1238_v61 = vmax.f32 %v1229_v7, %v3699_v4  ;;  %v1381_v44 = vsub.f32 1.0, %v1377_v24  ;;  %v1382_v54 = vsub.f32 1.0, %v1378_v35 }
  0xe6   : >> { %v3711_v10 = vld [vmem:[%s3637_s14 + $0x3c0] sm:$0xff]  ;;  %v1239_v21 = vmax.f32 %v1230_v8, %v3708_v9  ;;  %v1383_v62 = vsub.f32 1.0, %v1379_v39  ;;  %v1384_v0 = vsub.f32 1.0, %v1380_v43 }
  0xe7   : >> { %v3721_v14 = vld [vmem:[%s3637_s14 + $0x400] sm:$0xff]  ;;  %v1240_v26 = vmax.f32 %v1231_v16, %v3711_v10  ;;  %v1385_v2 = vmax.f32 %v1381_v44, 0.0 }
  0xe8   : >> { %v3724_v15 = vld [vmem:[%s3637_s14 + $0x440] sm:$0xff]  ;;  %v1247_v27 = vmax.f32 %v1237_v17, %v3721_v14 }
  0xe9   : >> { %v3731_v18 = vld [vmem:[%s3637_s14 + $0x480] sm:$0xff]  ;;  %v1248_v31 = vmax.f32 %v1238_v61, %v3724_v15  ;;  %v1386_v61 = vmax.f32 %v1382_v54, 0.0  ;;  %v3799_v35 = vmul.f32 %v1385_v2, %v3641_v29 }
  0xea   : >> { %v3734_v19 = vld [vmem:[%s3637_s14 + $0x4c0] sm:$0xff]  ;;  %v1249_v37 = vmax.f32 %v1239_v21, %v3731_v18 }
  0xeb   : >> { %v3739_v22 = vld [vmem:[%s3637_s14 + $0x500] sm:$0xff]  ;;  %v1250_v45 = vmax.f32 %v1240_v26, %v3734_v19 }
  0xec   : >> { %v3742_v23 = vld [vmem:[%s3637_s14 + $0x540] sm:$0xff]  ;;  %v1257_v46 = vmax.f32 %v1247_v27, %v3739_v22  ;;  %v1387_v27 = vmax.f32 %v1383_v62, 0.0 }
  0xed   : >> { %v3753_v32 = vld [vmem:[%s3637_s14 + $0x580] sm:$0xff]  ;;  %v1258_v47 = vmax.f32 %v1248_v31, %v3742_v23  ;;  %v1388_v31 = vmax.f32 %v1384_v0, 0.0 }
  0xee   : >> { %4398 = vst [vmem:[#allocation7_spill] sm:$0xff] %v3753_v32  ;;  %v3756_v33 = vld [vmem:[%s3637_s14 + $0x5c0] sm:$0xff]  ;;  %v1259_v55 = vmax.f32 %v1249_v37, %v3753_v32  ;;  %v3821_v0 = vmul.f32 %v1387_v27, %v3651_v40 }
  0xef   : >> { %4399 = vst [vmem:[#allocation8_spill] sm:$0xff] %v3756_v33  ;;  %v3759_v34 = vld [vmem:[%s3637_s14 + $0x600] sm:$0xff]  ;;  %v1260_v7 = vmax.f32 %v1250_v45, %v3756_v33  ;;  %v3824_v2 = vmul.f32 %v1388_v31, %v3664_v48 }
  0xf0   : >> { %4400 = vst [vmem:[#allocation9_spill] sm:$0xff] %v3759_v34  ;;  %v3765_v38 = vld [vmem:[%s3637_s14 + $0x640] sm:$0xff]  ;;  %v1267_v8 = vmax.f32 %v1257_v46, %v3759_v34  ;;  %v3811_v46 = vmul.f32 %v1386_v61, %v3648_v36 }
  0xf1   : >> { %4401 = vst [vmem:[#allocation10_spill] sm:$0xff] %v3765_v38  ;;  %v3773_v52 = vld [vmem:[%s3637_s14 + $0x680] sm:$0xff]  ;;  %v1268_v16 = vmax.f32 %v1258_v47, %v3765_v38  ;;  %v2683_v47 = vpop.eup %2682 }
  0xf2   : >> { %4402 = vst [vmem:[#allocation11_spill] sm:$0xff] %v3773_v52  ;;  %v3777_v58 = vld [vmem:[%s3637_s14 + $0x6c0] sm:$0xff]  ;;  %v1269_v21 = vmax.f32 %v1259_v55, %v3773_v52  ;;  %v1144_v61 = vmul.f32 %v2683_v47, %v3714_v11  ;;  %v2449_v11 = vadd.f32 -1.0, %v3716_v12 }
  0xf3   : >> { %4403 = vst [vmem:[#allocation12_spill] sm:$0xff] %v3777_v58  ;;  %v3780_v59 = vld [vmem:[%s3637_s14 + $0x700] sm:$0xff]  ;;  %v1270_v37 = vmax.f32 %v1260_v7, %v3777_v58  ;;  %v2448_v7 = vadd.f32 -1.0, %v3703_v6 }
  0xf4   : >> { %4404 = vst [vmem:[#allocation13_spill] sm:$0xff] %v3780_v59  ;;  %v3783_v60 = vld [vmem:[%s3637_s14 + $0x740] sm:$0xff]  ;;  %v1277_v39 = vmax.f32 %v1267_v8, %v3780_v59  ;;  %v2685_v8 = vpop.eup %2684 }
  0xf5   : >> { %4405 = vst [vmem:[#allocation14_spill] sm:$0xff] %v3783_v60  ;;  %v3789_v17 = vld [vmem:[%s3637_s14 + $0x780] sm:$0xff]  ;;  %v1278_v43 = vmax.f32 %v1268_v16, %v3783_v60  ;;  %v1139_v16 = vmul.f32 %v2683_v47, %v3701_v5  ;;  %v1156_v31 = vmul.f32 %v2685_v8, %v3687_v63 }
  0xf6   : >> { %4406 = vst [vmem:[#allocation15_spill] sm:$0xff] %v3789_v17  ;;  %v3793_v24 = vld [vmem:[%s3637_s14 + $0x7c0] sm:$0xff]  ;;  %v1279_v54 = vmax.f32 %v1269_v21, %v3789_v17 }
  0xf7   : >> { %4407 = vst [vmem:[#allocation16_spill] sm:$0xff] %v3793_v24  ;;  %v3796_v26 = vld [vmem:[%s3637_s14 + $0x800] sm:$0xff]  ;;  %v1280_v21 = vmax.f32 %v1270_v37, %v3793_v24  ;;  %v3847_v37 = vmul.f32 0.25, %v1139_v16 }
  0xf8   : >> { %4408 = vst [vmem:[#allocation17_spill] sm:$0xff] %v3796_v26  ;;  %v3805_v44 = vld [vmem:[%s3637_s14 + $0x840] sm:$0xff]  ;;  %v1287_v20 = vmax.f32 %v1277_v39, %v3796_v26 }
  0xf9   : >> { %4409 = vst [vmem:[#allocation18_spill] sm:$0xff] %v3805_v44  ;;  %v3808_v45 = vld [vmem:[%s3637_s14 + $0x880] sm:$0xff]  ;;  %v1288_v60 = vmax.f32 %v1278_v43, %v3805_v44  ;;  %v2450_v43 = vadd.f32 -1.0, %v3718_v13  ;;  %v4421_v44 = vand.u32 2147483648, %v3687_v63 }
  0xfa   : >> { %4410 = vst [vmem:[#allocation19_spill] sm:$0xff] %v3808_v45  ;;  %v3815_v55 = vld [vmem:[%s3637_s14 + $0x8c0] sm:$0xff]  ;;  %v1289_v59 = vmax.f32 %v1279_v54, %v3808_v45  ;;  %v1158_v54 = vsel %vm1157_vm0, %v3687_v63, %v1156_v31  ;;  %v1418_v63 = vand.u32 2147483647, %v2448_v7 }
  0xfb   : >> { %4411 = vst [vmem:[#allocation20_spill] sm:$0xff] %v3815_v55  ;;  %v3818_v62 = vld [vmem:[%s3637_s14 + $0x900] sm:$0xff]  ;;  %v1290_v39 = vmax.f32 %v1280_v21, %v3815_v55  ;;  %v1161_v31 = vsel %vm1159_vm1, %v4421_v44, %v1158_v54 }
  0xfc   : >> { %4412 = vst [vmem:[#allocation21_spill] sm:$0xff] %v3818_v62  ;;  %v3832_v17 = vld [vmem:[%s3637_s14 + $0x940] sm:$0xff]  ;;  %v1297_v47 = vmax.f32 %v1287_v20, %v3818_v62  ;;  %v1417_v20 = vand.u32 2147483647, %v3746_v25  ;;  %v3870_v62 = vmul.f32 0.5, %v1144_v61  ;;  %v1422_v34 = vsub.f32 1.0, %v1418_v63 }
  0xfd   : >> { %4413 = vst [vmem:[#allocation22_spill] sm:$0xff] %v3832_v17  ;;  %v3835_v27 = vld [vmem:[%s3637_s14 + $0x980] sm:$0xff]  ;;  %v1298_v16 = vmax.f32 %v1288_v60, %v3832_v17  ;;  %v1162_v17 = vmul.f32 4.0, %v1161_v31 }
  0xfe   : >> { %4414 = vst [vmem:[#allocation23_spill] sm:$0xff] %v3835_v27  ;;  %v3841_v5 = vld [vmem:[%s3637_s14 + $0x9c0] sm:$0xff]  ;;  %v1299_v45 = vmax.f32 %v1289_v59, %v3835_v27  ;;  %v1421_v7 = vsub.f32 1.0, %v1417_v20 }
  0xff   : >> { %4415 = vst [vmem:[#allocation24_spill] sm:$0xff] %v3841_v5  ;;  %v3844_v58 = vld [vmem:[%s3637_s14 + $0xa00] sm:$0xff]  ;;  %v1300_v24 = vmax.f32 %v1290_v39, %v3841_v5  ;;  %v1420_v5 = vand.u32 2147483647, %v2450_v43  ;;  %v1163_v31 = vadd.f32 1e-07, %v1162_v17 }
 0x100   : >> { %4416 = vst [vmem:[#allocation25_spill] sm:$0xff] %v3844_v58  ;;  %v3852_v8 = vld [vmem:[%s3637_s14 + $0xa40] sm:$0xff]  ;;  %v1307_v60 = vmax.f32 %v1297_v47, %v3844_v58  ;;  %v1419_v58 = vand.u32 2147483647, %v2449_v11 }
 0x101   : >> { %4417 = vst [vmem:[#allocation26_spill] sm:$0xff] %v3852_v8  ;;  %v3855_v26 = vld [vmem:[%s3637_s14 + $0xa80] sm:$0xff]  ;;  %v1308_v25 = vmax.f32 %v1298_v16, %v3852_v8  ;;  %2686 = vrcp.f32 %v1163_v31 }
 0x102   : >> { %4418 = vst [vmem:[#allocation27_spill] sm:$0xff] %v3855_v26  ;;  %v3864_v21 = vld [vmem:[%s3637_s14 + $0xac0] sm:$0xff]  ;;  %v1309_v61 = vmax.f32 %v1299_v45, %v3855_v26  ;;  %v1423_v11 = vsub.f32 1.0, %v1419_v58 }
 0x103   : >> { %4419 = vst [vmem:[#allocation28_spill] sm:$0xff] %v3864_v21  ;;  %v3867_v55 = vld [vmem:[%s3637_s14 + $0xb00] sm:$0xff]  ;;  %v1310_v44 = vmax.f32 %v1300_v24, %v3864_v21 }
 0x104   : >> { %4420 = vst [vmem:[#allocation29_spill] sm:$0xff] %v3867_v55  ;;  %v3879_v59 = vld [vmem:[%s3637_s14 + $0xb40] sm:$0xff]  ;;  %v1317_v39 = vmax.f32 %v1307_v60, %v3867_v55  ;;  %v1427_v32 = vmax.f32 %v1423_v11, 0.0 }
 0x105   : >> { %4422 = vst [vmem:[#allocation30_spill] sm:$0xff] %v3879_v59  ;;  %v3882_v27 = vld [vmem:[%s3637_s14 + $0xb80] sm:$0xff]  ;;  %v1318_v16 = vmax.f32 %v1308_v25, %v3879_v59 }
 0x106   : >> { %4423 = vst [vmem:[#allocation31_spill] sm:$0xff] %v3882_v27  ;;  %v3887_v52 = vld [vmem:[%s3637_s14 + $0xbc0] sm:$0xff]  ;;  %v1319_v45 = vmax.f32 %v1309_v61, %v3882_v27  ;;  %v1424_v61 = vsub.f32 1.0, %v1420_v5 }
 0x107   : >> { %4424 = vst [vmem:[#allocation32_spill] sm:$0xff] %v3887_v52  ;;  %v2428_v38 = vld [vmem:[%s3637_s14 + $0xc00] sm:$0xff]  ;;  %v1320_v24 = vmax.f32 %v1310_v44, %v3887_v52  ;;  %v1425_v44 = vmax.f32 %v1421_v7, 0.0  ;;  %v1431_v7 = vmul.f32 %v3657_v42, %v1427_v32 }
 0x108   : >> { %v2429_v47 = vld [vmem:[%s3637_s14 + $0xc40] sm:$0xff]  ;;  %v1327_v21 = vmax.f32 %v1317_v39, %v2428_v38  ;;  %v1426_v38 = vmax.f32 %v1422_v34, 0.0  ;;  %v1428_v31 = vmax.f32 %v1424_v61, 0.0 }
 0x109   : >> { %v2430_v54 = vld [vmem:[%s3637_s14 + $0xc80] sm:$0xff]  ;;  %v1328_v17 = vmax.f32 %v1318_v16, %v2429_v47  ;;  %v1429_v5 = vmul.f32 %v3644_v30, %v1425_v44 }
 0x10a   : >> { %v2431_v26 = vld [vmem:[%s3637_s14 + $0xcc0] sm:$0xff]  ;;  %v1329_v43 = vmax.f32 %v1319_v45, %v2430_v54  ;;  %v1432_v34 = vmul.f32 %v3667_v49, %v1428_v31  ;;  %v2451_v31 = vadd.f32 -2.0, %v3680_v53 }
 0x10b   : >> { %v2433_v8 = vld [vmem:[%s3637_s14 + $0xd00] sm:$0xff]  ;;  %v1330_v27 = vmax.f32 %v1320_v24, %v2431_v26  ;;  %v1430_v26 = vmul.f32 %v3654_v41, %v1426_v38  ;;  %v3917_v11 = vadd.f32 %v1429_v5, %v3799_v35 }
 0x10c   : >> { %v2434_v60 = vld [vmem:[%s3637_s14 + $0xd40] sm:$0xff]  ;;  %v1337_v20 = vmax.f32 %v1327_v21, %v2433_v8  ;;  %v3930_v32 = vadd.f32 %v1432_v34, %v3824_v2 }
 0x10d   : >> { %v2435_v55 = vld [vmem:[%s3637_s14 + $0xd80] sm:$0xff]  ;;  %v1338_v39 = vmax.f32 %v1328_v17, %v2434_v60 }
 0x10e   : >> { %v2436_v25 = vld [vmem:[%s3637_s14 + $0xdc0] sm:$0xff]  ;;  %v1339_v63 = vmax.f32 %v1329_v43, %v2435_v55 }
 0x10f   : >> { %v2438_v59 = vld [vmem:[%s3637_s14 + $0xe00] sm:$0xff]  ;;  %v1340_v47 = vmax.f32 %v1330_v27, %v2436_v25  ;;  %v3920_v27 = vadd.f32 %v1430_v26, %v3811_v46  ;;  %v1457_v26 = vand.u32 2147483647, %v2451_v31 }
 0x110   : >> { %v2439_v28 = vld [vmem:[%s3637_s14 + $0xe40] sm:$0xff]  ;;  %v1347_v54 = vmax.f32 %v1337_v20, %v2438_v59 }
 0x111   : >> { %v2440_v33 = vld [vmem:[%s3637_s14 + $0xe80] sm:$0xff]  ;;  %v1348_v8 = vmax.f32 %v1338_v39, %v2439_v28  ;;  %v3927_v28 = vadd.f32 %v1431_v7, %v3821_v0  ;;  %v1461_v7 = vsub.f32 1.0, %v1457_v26 }
 0x112   : >> { %v2441_v52 = vld [vmem:[%s3637_s14 + $0xec0] sm:$0xff]  ;;  %v1349_v21 = vmax.f32 %v1339_v63, %v2440_v33 }
 0x113   : >> { %v2443_v58 = vld [vmem:[%s3637_s14 + $0xf00] sm:$0xff]  ;;  %v1350_v55 = vmax.f32 %v1340_v47, %v2441_v52  ;;  %v2452_v47 = vadd.f32 -2.0, %v3703_v6 }
 0x114   : >> { %v2444_v16 = vld [vmem:[%s3637_s14 + $0xf40] sm:$0xff]  ;;  %v3914_v60 = vmax.f32 %v1347_v54, %v2443_v58  ;;  %v2453_v54 = vadd.f32 -2.0, %v3716_v12 }
 0x115   : >> { %v2445_v45 = vld [vmem:[%s3637_s14 + $0xf80] sm:$0xff]  ;;  %v3922_v59 = vmax.f32 %v1348_v8, %v2444_v16  ;;  %v2454_v16 = vadd.f32 -2.0, %v3718_v13  ;;  %v1458_v8 = vand.u32 2147483647, %v2452_v47 }
 0x116   : >> { %v2446_v24 = vld [vmem:[%s3637_s14 + $0xfc0] sm:$0xff]  ;;  %v3924_v17 = vmax.f32 %v1349_v21, %v2445_v45  ;;  %v1361_v52 = vsub.f32 %v3641_v29, %v3914_v60  ;;  %v1397_v35 = vsub.f32 %v3644_v30, %v3914_v60  ;;  %v2687_v30 = vpop.eup %2686  ;;  %v1459_v21 = vand.u32 2147483647, %v2453_v54 }
 0x117   : >> { %v3932_v33 = vmax.f32 %v1350_v55, %v2446_v24  ;;  %v1362_v46 = vsub.f32 %v3648_v36, %v3922_v59  ;;  %v1398_v0 = vsub.f32 %v3654_v41, %v3922_v59  ;;  %v3952_v36 = vadd.f32 %v3870_v62, %v3847_v37 }
 0x118   : >> { %v1363_v43 = vsub.f32 %v3651_v40, %v3924_v17  ;;  %v1365_v25 = vmul.f32 1.442695, %v1361_v52  ;;  %v1399_v61 = vsub.f32 %v3657_v42, %v3924_v17  ;;  %v1437_v41 = vsub.f32 %v3670_v50, %v3914_v60 }
 0x119   : >> { %v1364_v2 = vsub.f32 %v3664_v48, %v3932_v33  ;;  %v1400_v29 = vsub.f32 %v3667_v49, %v3932_v33  ;;  %v1367_v20 = vmul.f32 1.442695, %v1362_v46  ;;  %v1165_v44 = vmul.f32 %v2687_v30, %v3672_v51 }
 0x11a   : >> { %v1369_v40 = vmul.f32 1.442695, %v1363_v43  ;;  %2688 = vpow2.f32 %v1365_v25  ;;  %v1401_v38 = vmul.f32 1.442695, %v1397_v35  ;;  %v1403_v42 = vmul.f32 1.442695, %v1398_v0 }
 0x11b   : >> { %v1371_v48 = vmul.f32 1.442695, %v1364_v2  ;;  %2690 = vpow2.f32 %v1367_v20  ;;  %v1438_v49 = vsub.f32 %v3675_v56, %v3922_v59  ;;  %v1439_v39 = vsub.f32 %v3678_v57, %v3924_v17 }
 0x11c   : >> { %v1166_v62 = vadd.f32 1e-07, %v1165_v44  ;;  %2692 = vpow2.f32 %v1369_v40  ;;  %v1405_v37 = vmul.f32 1.442695, %v1399_v61  ;;  %v1407_v63 = vmul.f32 1.442695, %v1400_v29 }
 0x11d   : >> { %2694 = vpow2.f32 %v1371_v48  ;;  %v1440_v58 = vsub.f32 %v3692_v1, %v3932_v33  ;;  %v1441_v51 = vmul.f32 1.442695, %v1437_v41  ;;  %v1443_v45 = vmul.f32 1.442695, %v1438_v49 }
 0x11e   : >> { %2696 = vlog2.f32 %v1166_v62  ;;  %v1445_v5 = vmul.f32 1.442695, %v1439_v39  ;;  %v1460_v24 = vand.u32 2147483647, %v2454_v16  ;;  %v1477_v34 = vsub.f32 %v3696_v3, %v3914_v60 }
 0x11f   : >> { %2698 = vpow2.f32 %v1401_v38  ;;  %v1478_v55 = vsub.f32 %v3699_v4, %v3922_v59  ;;  %v1447_v52 = vmul.f32 1.442695, %v1440_v58  ;;  %v1462_v35 = vsub.f32 1.0, %v1458_v8 }
 0x120   : >> { %2700 = vpow2.f32 %v1403_v42  ;;  %v1463_v46 = vsub.f32 1.0, %v1459_v21  ;;  %v1464_v43 = vsub.f32 1.0, %v1460_v24  ;;  %v1465_v0 = vmax.f32 %v1461_v7, 0.0 }
 0x121   : >> { %2702 = vpow2.f32 %v1405_v37  ;;  %v1479_v2 = vsub.f32 %v3708_v9, %v3924_v17  ;;  %v1480_v25 = vsub.f32 %v3711_v10, %v3932_v33  ;;  %v1466_v29 = vmax.f32 %v1462_v35, 0.0 }
 0x122   : >> { %2704 = vpow2.f32 %v1407_v63  ;;  %v1467_v30 = vmax.f32 %v1463_v46, 0.0  ;;  %v1468_v20 = vmax.f32 %v1464_v43, 0.0  ;;  %v1469_v41 = vmul.f32 %v3670_v50, %v1465_v0 }
 0x123   : >> { %2706 = vpow2.f32 %v1441_v51  ;;  %v1481_v44 = vmul.f32 1.442695, %v1477_v34  ;;  %v1483_v48 = vmul.f32 1.442695, %v1478_v55  ;;  %v1470_v42 = vmul.f32 %v3675_v56, %v1466_v29 }
 0x124   : >> { %v2689_v61 = vpop.eup %2688  ;;  %2708 = vpow2.f32 %v1443_v45  ;;  %v1471_v49 = vmul.f32 %v3678_v57, %v1467_v30  ;;  %v1472_v39 = vmul.f32 %v3692_v1, %v1468_v20  ;;  %v1473_v37 = vadd.f32 %v1469_v41, %v3917_v11 }
 0x125   : >> { %v2691_v40 = vpop.eup %2690  ;;  %2710 = vpow2.f32 %v1445_v5  ;;  %v1485_v63 = vmul.f32 1.442695, %v1479_v2  ;;  %v2455_v50 = vadd.f32 -3.0, %v3680_v53  ;;  %v2456_v58 = vadd.f32 -3.0, %v3703_v6 }
 0x126   : >> { %v2693_v38 = vpop.eup %2692  ;;  %2712 = vpow2.f32 %v1447_v52  ;;  %v1474_v56 = vadd.f32 %v1470_v42, %v3920_v27  ;;  %v1475_v57 = vadd.f32 %v1471_v49, %v3927_v28  ;;  %v1476_v1 = vadd.f32 %v1472_v39, %v3930_v32 }
 0x127   : >> { %v2695_v62 = vpop.eup %2694  ;;  %v1487_v54 = vmul.f32 1.442695, %v1480_v25  ;;  %v2457_v16 = vadd.f32 -3.0, %v3716_v12  ;;  %v2458_v11 = vadd.f32 -3.0, %v3718_v13  ;;  %v1045_v5 = vstv %s3982_s21 }
 0x128   : >> { %v2697_v51 = vpop.eup %2696  ;;  %2714 = vpow2.f32 %v1481_v44  ;;  %v1497_v26 = vand.u32 2147483647, %v2455_v50  ;;  %v1498_v8 = vand.u32 2147483647, %v2456_v58  ;;  %v1518_v49 = vsub.f32 %v3724_v15, %v3922_v59 }
 0x129   : >> { %v2699_v31 = vpop.eup %2698  ;;  %v1168_v47 = vmul.f32 0.6931472, %v2697_v51  ;;  %2716 = vpow2.f32 %v1483_v48  ;;  %v1499_v27 = vand.u32 2147483647, %v2457_v16  ;;  %v1500_v7 = vand.u32 2147483647, %v2458_v11 }
 0x12a   : >> { %v2701_v45 = vpop.eup %2700  ;;  %v1409_v28 = vadd.f32 %v2699_v31, %v2689_v61  ;;  %2718 = vpow2.f32 %v1485_v63  ;;  %v1501_v32 = vsub.f32 1.0, %v1497_v26  ;;  %v1502_v34 = vsub.f32 1.0, %v1498_v8 }
 0x12b   : >> { %v2703_v21 = vpop.eup %2702  ;;  %v1169_v24 = vmul.f32 0.5, %v1168_v47  ;;  %2720 = vpow2.f32 %v1487_v54  ;;  %v1503_v35 = vsub.f32 1.0, %v1499_v27  ;;  %v1504_v46 = vsub.f32 1.0, %v1500_v7 }
 0x12c   : >> { %v2705_v55 = vpop.eup %2704  ;;  %v1410_v0 = vadd.f32 %v2701_v45, %v2691_v40  ;;  %v1411_v2 = vadd.f32 %v2703_v21, %v2693_v38  ;;  %v1505_v25 = vmax.f32 %v1501_v32, 0.0  ;;  %v1506_v29 = vmax.f32 %v1502_v34, 0.0 }
 0x12d   : >> { %v1171_v52 = vadd.f32 %v3952_v36, %v1169_v24  ;;  %v2707_v43 = vpop.eup %2706  ;;  %v1507_v41 = vmax.f32 %v1503_v35, 0.0  ;;  %v1508_v44 = vmax.f32 %v1504_v46, 0.0  ;;  %v1517_v61 = vsub.f32 %v3721_v14, %v3914_v60 }
 0x12e   : >> { %v2709_v30 = vpop.eup %2708  ;;  %v1509_v42 = vmul.f32 %v3696_v3, %v1505_v25  ;;  %v1510_v36 = vmul.f32 %v3699_v4, %v1506_v29  ;;  %v1519_v40 = vsub.f32 %v3731_v18, %v3924_v17  ;;  %v1412_v39 = vadd.f32 %v2705_v55, %v2695_v62 }
 0x12f   : >> { %v1172_v20 = vmax.f32 %v1171_v52, 1e-07  ;;  %v2711_v48 = vpop.eup %2710  ;;  %v1511_v63 = vmul.f32 %v3708_v9, %v1507_v41  ;;  %v1512_v50 = vmul.f32 %v3711_v10, %v1508_v44  ;;  %v1449_v51 = vadd.f32 %v2707_v43, %v1409_v28  ;;  %v4426_v41 = vld [vmem:[#allocation8_spill] sm:$0xff] }
 0x130   : >> { %v2713_v58 = vpop.eup %2712  ;;  %v1513_v31 = vadd.f32 %v1509_v42, %v1473_v37  ;;  %v1514_v47 = vadd.f32 %v1510_v36, %v1474_v56  ;;  %v1520_v3 = vsub.f32 %v3734_v19, %v3932_v33  ;;  %v4006_v54 = vadd.f32 %v2709_v30, %v1410_v0 }
 0x131   : >> { %v1173_v38 = vmin.f32 %v1172_v20, 100.0  ;;  %v1515_v16 = vadd.f32 %v1511_v63, %v1475_v57  ;;  %v1516_v11 = vadd.f32 %v1512_v50, %v1476_v1  ;;  %v4008_v26 = vadd.f32 %v2711_v48, %v1411_v2  ;;  %v4425_v2 = vld [vmem:[#allocation7_spill] sm:$0xff] }
 0x132   : >> { %v2715_v45 = vpop.eup %2714  ;;  %v1521_v62 = vmul.f32 1.442695, %v1517_v61  ;;  %v1523_v8 = vmul.f32 1.442695, %v1518_v49  ;;  %v1525_v9 = vmul.f32 1.442695, %v1519_v40  ;;  %v1452_v24 = vadd.f32 %v2713_v58, %v1412_v39 }
 0x133   : >> { %v1174_v4 = vsub.f32 0.0, %v1173_v38  ;;  %v2717_v21 = vpop.eup %2716  ;;  %v1527_v27 = vmul.f32 1.442695, %v1520_v3  ;;  %v2459_v37 = vadd.f32 -4.0, %v3680_v53  ;;  %v2460_v7 = vadd.f32 -4.0, %v3703_v6 }
 0x134   : >> { %v2719_v56 = vpop.eup %2718  ;;  %2722 = vpow2.f32 %v1521_v62  ;;  %v2461_v28 = vadd.f32 -4.0, %v3716_v12  ;;  %v2462_v57 = vadd.f32 -4.0, %v3718_v13  ;;  %v1557_v34 = vsub.f32 %v3739_v22, %v3914_v60 }
 0x135   : >> { %v1175_v10 = vmul.f32 1.442695, %v1174_v4  ;;  %v2721_v1 = vpop.eup %2720  ;;  %v1537_v32 = vand.u32 2147483647, %v2459_v37  ;;  %v1558_v55 = vsub.f32 %v3742_v23, %v3922_v59  ;;  %v1538_v52 = vand.u32 2147483647, %v2460_v7 }
 0x136   : >> { %v1539_v35 = vand.u32 2147483647, %v2461_v28  ;;  %v1540_v46 = vand.u32 2147483647, %v2462_v57  ;;  %v1489_v43 = vadd.f32 %v2715_v45, %v1449_v51  ;;  %v1559_v25 = vsub.f32 %v4425_v2, %v3924_v17  ;;  %v4427_v7 = vld [vmem:[#allocation6_spill] sm:$0xff] }
 0x137   : >> { %2724 = vpow2.f32 %v1175_v10  ;;  %v1541_v0 = vsub.f32 1.0, %v1537_v32  ;;  %v1542_v29 = vsub.f32 1.0, %v1538_v52  ;;  %v1560_v44 = vsub.f32 %v4426_v41, %v3932_v33 }
 0x138   : >> { %2726 = vpow2.f32 %v1523_v8  ;;  %v1543_v30 = vsub.f32 1.0, %v1539_v35  ;;  %v1544_v20 = vsub.f32 1.0, %v1540_v46  ;;  %v1561_v48 = vmul.f32 1.442695, %v1557_v34 }
 0x139   : >> { %2728 = vpow2.f32 %v1525_v9  ;;  %v1545_v61 = vmax.f32 %v1541_v0, 0.0  ;;  %v1563_v42 = vmul.f32 1.442695, %v1558_v55  ;;  %v1546_v36 = vmax.f32 %v1542_v29, 0.0 }
 0x13a   : >> { %2730 = vpow2.f32 %v1527_v27  ;;  %v1547_v49 = vmax.f32 %v1543_v30, 0.0  ;;  %v1548_v40 = vmax.f32 %v1544_v20, 0.0  ;;  %v1565_v38 = vmul.f32 1.442695, %v1559_v25 }
 0x13b   : >> { %v1549_v39 = vmul.f32 %v3721_v14, %v1545_v61  ;;  %2732 = vpow2.f32 %v1561_v48  ;;  %v2463_v63 = vadd.f32 -5.0, %v3680_v53  ;;  %v2464_v50 = vadd.f32 -5.0, %v3703_v6 }
 0x13c   : >> { %v1550_v58 = vmul.f32 %v3724_v15, %v1546_v36  ;;  %v1551_v51 = vmul.f32 %v3731_v18, %v1547_v49  ;;  %v1552_v3 = vmul.f32 %v3734_v19, %v1548_v40  ;;  %2734 = vpow2.f32 %v1563_v42 }
 0x13d   : >> { %v1553_v4 = vadd.f32 %v1549_v39, %v1513_v31  ;;  %2736 = vpow2.f32 %v1565_v38  ;;  %v2465_v45 = vadd.f32 -5.0, %v3716_v12  ;;  %v2466_v62 = vadd.f32 -5.0, %v3718_v13  ;;  %v4430_v38 = vld [vmem:[#allocation11_spill] sm:$0xff] }
 0x13e   : >> { %v2723_v14 = vpop.eup %2722  ;;  %v1554_v8 = vadd.f32 %v1550_v58, %v1514_v47  ;;  %v1555_v9 = vadd.f32 %v1551_v51, %v1515_v16  ;;  %v1556_v10 = vadd.f32 %v1552_v3, %v1516_v11  ;;  %v1567_v27 = vmul.f32 1.442695, %v1560_v44 }
 0x13f   : >> { %v4033_v15 = vadd.s32 %v1045_v5, %v4427_v7  ;;  %v1577_v18 = vand.u32 2147483647, %v2463_v63  ;;  %v1578_v28 = vand.u32 2147483647, %v2464_v50  ;;  %v1579_v19 = vand.u32 2147483647, %v2465_v45 }
 0x140   : >> { %v1490_v32 = vadd.f32 %v2717_v21, %v4006_v54  ;;  %v1491_v34 = vadd.f32 %v2719_v56, %v4008_v26  ;;  %v1580_v55 = vand.u32 2147483647, %v2466_v62  ;;  %v1492_v16 = vadd.f32 %v2721_v1, %v1452_v24  ;;  %v4428_v54 = vld [vmem:[#allocation9_spill] sm:$0xff]  ;;  %v4042_v26 = vld [vmem:[%s3613_s15 + $0x380] sm:$0xff]  ;;  %v4429_v1 = vld [vmem:[#allocation10_spill] sm:$0xff] }
 0x141   : >> { %v2725_v37 = vpop.eup %2724  ;;  %v1581_v11 = vsub.f32 1.0, %v1577_v18  ;;  %v1582_v52 = vsub.f32 1.0, %v1578_v28  ;;  %v1583_v35 = vsub.f32 1.0, %v1579_v19  ;;  %v1529_v5 = vadd.f32 %v2723_v14, %v1489_v43  ;;  %v4431_v63 = vld [vmem:[#allocation12_spill] sm:$0xff] }
 0x142   : >> { %v2727_v57 = vpop.eup %2726  ;;  %v1177_v31 = vsub.f32 1.0, %v2725_v37  ;;  %2738 = vpow2.f32 %v1567_v27  ;;  %v1584_v0 = vsub.f32 1.0, %v1580_v55  ;;  %v1597_v21 = vsub.f32 %v4428_v54, %v3914_v60 }
 0x143   : >> { %v2729_v47 = vpop.eup %2728  ;;  %v1585_v29 = vmax.f32 %v1581_v11, 0.0  ;;  %v1586_v30 = vmax.f32 %v1582_v52, 0.0  ;;  %v1587_v20 = vmax.f32 %v1583_v35, 0.0  ;;  %v1530_v24 = vadd.f32 %v2727_v57, %v1490_v32  ;;  %v4434_v11 = vld [vmem:[#allocation15_spill] sm:$0xff] }
 0x144   : >> { %v4037_v46 = vadd.f32 1e-07, %v1177_v31  ;;  %v2731_v25 = vpop.eup %2730  ;;  %v1531_v56 = vadd.f32 %v2729_v47, %v1491_v34  ;;  %v1598_v44 = vsub.f32 %v4429_v1, %v3922_v59  ;;  %v1588_v43 = vmax.f32 %v1584_v0, 0.0  ;;  %v4433_v47 = vld [vmem:[#allocation14_spill] sm:$0xff] }
 0x145   : >> { %v2733_v61 = vpop.eup %2732  ;;  %v1589_v48 = vmul.f32 %v3739_v22, %v1585_v29  ;;  %v1590_v42 = vmul.f32 %v3742_v23, %v1586_v30  ;;  %v1591_v36 = vmul.f32 %v4425_v2, %v1587_v20  ;;  %v1532_v40 = vadd.f32 %v2731_v25, %v1492_v16 }
 0x146   : >> { %2740 = vrsqrt.f32 %v4037_v46  ;;  %v2735_v49 = vpop.eup %2734  ;;  %vm1181_vm2 = vcmp.eq.f32.partialorder %v4037_v46, inf  ;;  %v1599_v39 = vsub.f32 %v4430_v38, %v3924_v17  ;;  %v1600_v50 = vsub.f32 %v4431_v63, %v3932_v33 }
 0x147   : >> { %v2737_v58 = vpop.eup %2736  ;;  %vm1047_vm3 = vcmp.lt.s32.totalorder %v4033_v15, 144  ;;  %vm1092_vm4 = vcmp.gt.f32.partialorder %v4042_v26, 0.0  ;;  %v1592_v22 = vmul.f32 %v4426_v41, %v1588_v43  ;;  %v1593_v23 = vadd.f32 %v1589_v48, %v1553_v4 }
 0x148   : >> { %v1594_v51 = vadd.f32 %v1590_v42, %v1554_v8  ;;  %v1601_v2 = vmul.f32 1.442695, %v1597_v21  ;;  %vm1183_vm5 = vcmp.eq.f32.partialorder %v4037_v46, 0.0  ;;  %v1184_v3 = vand.u32 2147483648, %v4037_v46  ;;  %v4435_v21 = vld [vmem:[#allocation16_spill] sm:$0xff]  ;;  %vm4086_vm6 = vmand %vm1047_vm3, %vm1092_vm4 }
 0x149   : >> { %v1595_v45 = vadd.f32 %v1591_v36, %v1555_v9  ;;  %v1603_v62 = vmul.f32 1.442695, %v1598_v44  ;;  %v4060_v14 = vadd.f32 %v2733_v61, %v1529_v5  ;;  %v4062_v27 = vadd.f32 %v2735_v49, %v1530_v24  ;;  %v4432_v9 = vld [vmem:[#allocation13_spill] sm:$0xff] }
 0x14a   : >> { %v4064_v37 = vadd.f32 %v2737_v58, %v1531_v56  ;;  %v1596_v7 = vadd.f32 %v1592_v22, %v1556_v10  ;;  %v1605_v18 = vmul.f32 1.442695, %v1599_v39  ;;  %v2467_v28 = vadd.f32 -6.0, %v3680_v53 }
 0x14b   : >> { %v2468_v41 = vadd.f32 -6.0, %v3703_v6  ;;  %v2469_v4 = vadd.f32 -6.0, %v3716_v12  ;;  %2742 = vpow2.f32 %v1601_v2  ;;  %v1607_v8 = vmul.f32 1.442695, %v1600_v50  ;;  %v1186_v2 = vld [vmem:[#allocation2] sm:$0xff] }
 0x14c   : >> { %v2470_v19 = vadd.f32 -6.0, %v3718_v13  ;;  %v1637_v57 = vsub.f32 %v4432_v9, %v3914_v60  ;;  %v2739_v31 = vpop.eup %2738  ;;  %2744 = vpow2.f32 %v1603_v62  ;;  %v1617_v32 = vand.u32 2147483647, %v2467_v28 }
 0x14d   : >> { %v1618_v34 = vand.u32 2147483647, %v2468_v41  ;;  %v1619_v55 = vand.u32 2147483647, %v2469_v4  ;;  %v1638_v16 = vsub.f32 %v4433_v47, %v3922_v59  ;;  %v1639_v52 = vsub.f32 %v4434_v11, %v3924_v17 }
 0x14e   : >> { %v1620_v10 = vand.u32 2147483647, %v2470_v19  ;;  %v1641_v35 = vmul.f32 1.442695, %v1637_v57  ;;  %2746 = vpow2.f32 %v1605_v18  ;;  %v1621_v0 = vsub.f32 1.0, %v1617_v32  ;;  %v4439_v32 = vld [vmem:[#allocation18_spill] sm:$0xff] }
 0x14f   : >> { %v1622_v25 = vsub.f32 1.0, %v1618_v34  ;;  %v1623_v29 = vsub.f32 1.0, %v1619_v55  ;;  %2748 = vpow2.f32 %v1607_v8  ;;  %v1640_v24 = vsub.f32 %v4435_v21, %v3932_v33 }
 0x150   : >> { %v2741_v5 = vpop.eup %2740  ;;  %v1624_v20 = vsub.f32 1.0, %v1620_v10  ;;  %v1625_v56 = vmax.f32 %v1621_v0, 0.0  ;;  %2750 = vpow2.f32 %v1641_v35  ;;  %v1643_v42 = vmul.f32 1.442695, %v1638_v16  ;;  %v4440_v0 = vld [vmem:[#allocation19_spill] sm:$0xff] }
 0x151   : >> { %v1180_v30 = vmul.f32 %v2741_v5, %v4037_v46  ;;  %v1626_v44 = vmax.f32 %v1622_v25, 0.0  ;;  %v1627_v61 = vmax.f32 %v1623_v29, 0.0  ;;  %v1645_v36 = vmul.f32 1.442695, %v1639_v52 }
 0x152   : >> { %v1628_v48 = vmax.f32 %v1624_v20, 0.0  ;;  %v1629_v50 = vmul.f32 %v4428_v54, %v1625_v56  ;;  %v1572_v18 = vadd.f32 %v2739_v31, %v1532_v40  ;;  %v2471_v15 = vadd.f32 -7.0, %v3680_v53 }
 0x153   : >> { %v1182_v43 = vsel %vm1181_vm2, %v4037_v46, %v1180_v30  ;;  %v1630_v58 = vmul.f32 %v4429_v1, %v1626_v44  ;;  %v1631_v22 = vmul.f32 %v4430_v38, %v1627_v61  ;;  %v1647_v19 = vmul.f32 1.442695, %v1640_v24  ;;  %v4441_v44 = vld [vmem:[#allocation20_spill] sm:$0xff] }
 0x154   : >> { %v1185_v39 = vsel %vm1183_vm5, %v1184_v3, %v1182_v43  ;;  %v1632_v28 = vmul.f32 %v4431_v63, %v1628_v48  ;;  %v1633_v41 = vadd.f32 %v1629_v50, %v1593_v23  ;;  %2752 = vpow2.f32 %v1643_v42 }
 0x155   : >> { %v1187_v62 = vmul.f32 %v4042_v26, %v1185_v39  ;;  %v1634_v4 = vadd.f32 %v1630_v58, %v1594_v51  ;;  %v1635_v8 = vadd.f32 %v1631_v22, %v1595_v45  ;;  %v2743_v46 = vpop.eup %2742  ;;  %v2472_v1 = vadd.f32 -7.0, %v3703_v6  ;;  %v4438_v51 = vld [vmem:[#allocation17_spill] sm:$0xff] }
 0x156   : >> { %v1636_v3 = vadd.f32 %v1632_v28, %v1596_v7  ;;  %v2745_v38 = vpop.eup %2744  ;;  %2754 = vpow2.f32 %v1645_v36  ;;  %v2473_v40 = vadd.f32 -7.0, %v3716_v12  ;;  %v2474_v63 = vadd.f32 -7.0, %v3718_v13 }
 0x157   : >> { %v1188_v54 = vsel %vm4086_vm6, %v1187_v62, 0.0  ;;  %v1657_v31 = vand.u32 2147483647, %v2471_v15  ;;  %v1658_v23 = vand.u32 2147483647, %v2472_v1  ;;  %v1677_v45 = vsub.f32 %v4438_v51, %v3914_v60 }
 0x158   : >> { %v1189_v57 = vadd.f32 %v1188_v54, %v1186_v2  ;;  %v1678_v34 = vsub.f32 %v4439_v32, %v3922_v59  ;;  %v2747_v55 = vpop.eup %2746  ;;  %v1609_v7 = vadd.f32 %v2743_v46, %v4060_v14  ;;  %2756 = vpow2.f32 %v1647_v19 }
 0x159   : >> { %v1659_v10 = vand.u32 2147483647, %v2473_v40  ;;  %v1660_v16 = vand.u32 2147483647, %v2474_v63  ;;  %v2749_v52 = vpop.eup %2748  ;;  %v1661_v35 = vsub.f32 1.0, %v1657_v31  ;;  %v1662_v5 = vsub.f32 1.0, %v1658_v23 }
 0x15a   : >> { %1190 = vst [vmem:[#allocation2] sm:$0xff] %v1189_v57  ;;  %v1679_v25 = vsub.f32 %v4440_v0, %v3924_v17  ;;  %v1681_v29 = vmul.f32 1.442695, %v1677_v45  ;;  %v2751_v30 = vpop.eup %2750  ;;  %v1610_v20 = vadd.f32 %v2745_v38, %v4062_v27  ;;  %v1680_v61 = vsub.f32 %v4441_v44, %v3932_v33  ;;  %v4443_v23 = vld [vmem:[#allocation22_spill] sm:$0xff] }
 0x15b   : >> { %v1663_v24 = vsub.f32 1.0, %v1659_v10  ;;  %v1664_v56 = vsub.f32 1.0, %v1660_v16  ;;  %v1665_v43 = vmax.f32 %v1661_v35, 0.0  ;;  %v1666_v14 = vmax.f32 %v1662_v5, 0.0  ;;  %v4445_v35 = vld [vmem:[#allocation24_spill] sm:$0xff] }
 0x15c   : >> { %2758 = vpow2.f32 %v1681_v29  ;;  %v1683_v48 = vmul.f32 1.442695, %v1678_v34  ;;  %v1611_v42 = vadd.f32 %v2747_v55, %v4064_v37  ;;  %v1612_v36 = vadd.f32 %v2749_v52, %v1572_v18 }
 0x15d   : >> { %v1667_v39 = vmax.f32 %v1663_v24, 0.0  ;;  %v1668_v50 = vmax.f32 %v1664_v56, 0.0  ;;  %v1649_v58 = vadd.f32 %v2751_v30, %v1609_v7  ;;  %v1669_v22 = vmul.f32 %v4432_v9, %v1665_v43 }
 0x15e   : >> { %v1670_v2 = vmul.f32 %v4433_v47, %v1666_v14  ;;  %v1685_v27 = vmul.f32 1.442695, %v1679_v25  ;;  %v1687_v15 = vmul.f32 1.442695, %v1680_v61  ;;  %v2475_v19 = vadd.f32 -8.0, %v3680_v53  ;;  %v2753_v46 = vpop.eup %2752 }
 0x15f   : >> { %v1671_v62 = vmul.f32 %v4434_v11, %v1667_v39  ;;  %v1672_v28 = vmul.f32 %v4435_v21, %v1668_v50  ;;  %v1673_v54 = vadd.f32 %v1669_v22, %v1633_v41  ;;  %2760 = vpow2.f32 %v1683_v48  ;;  %v4442_v21 = vld [vmem:[#allocation21_spill] sm:$0xff] }
 0x160   : >> { %v1674_v1 = vadd.f32 %v1670_v2, %v1634_v4  ;;  %v2476_v37 = vadd.f32 -8.0, %v3703_v6  ;;  %v2755_v18 = vpop.eup %2754  ;;  %v2477_v9 = vadd.f32 -8.0, %v3716_v12  ;;  %v2478_v47 = vadd.f32 -8.0, %v3718_v13 }
 0x161   : >> { %v1675_v38 = vadd.f32 %v1671_v62, %v1635_v8  ;;  %v1676_v57 = vadd.f32 %v1672_v28, %v1636_v3  ;;  %2762 = vpow2.f32 %v1685_v27  ;;  %v1697_v11 = vand.u32 2147483647, %v2475_v19  ;;  %v4444_v3 = vld [vmem:[#allocation23_spill] sm:$0xff] }
 0x162   : >> { %v1698_v40 = vand.u32 2147483647, %v2476_v37  ;;  %v1717_v63 = vsub.f32 %v4442_v21, %v3914_v60  ;;  %v2757_v31 = vpop.eup %2756  ;;  %2764 = vpow2.f32 %v1687_v15  ;;  %v1699_v41 = vand.u32 2147483647, %v2477_v9  ;;  %v4448_v21 = vld [vmem:[#allocation27_spill] sm:$0xff] }
 0x163   : >> { %v1700_v4 = vand.u32 2147483647, %v2478_v47  ;;  %v1718_v45 = vsub.f32 %v4443_v23, %v3922_v59  ;;  %v1701_v34 = vsub.f32 1.0, %v1697_v11  ;;  %v1719_v55 = vsub.f32 %v4444_v3, %v3924_v17 }
 0x164   : >> { %v1702_v8 = vsub.f32 1.0, %v1698_v40  ;;  %v1721_v7 = vmul.f32 1.442695, %v1717_v63  ;;  %v1650_v10 = vadd.f32 %v2753_v46, %v1610_v20  ;;  %v1703_v16 = vsub.f32 1.0, %v1699_v41 }
 0x165   : >> { %v1704_v52 = vsub.f32 1.0, %v1700_v4  ;;  %v1720_v5 = vsub.f32 %v4445_v35, %v3932_v33  ;;  %v1651_v29 = vadd.f32 %v2755_v18, %v1611_v42  ;;  %v1705_v30 = vmax.f32 %v1701_v34, 0.0 }
 0x166   : >> { %v2759_v25 = vpop.eup %2758  ;;  %v1706_v24 = vmax.f32 %v1702_v8, 0.0  ;;  %2766 = vpow2.f32 %v1721_v7  ;;  %v1652_v56 = vadd.f32 %v2757_v31, %v1612_v36  ;;  %v1707_v61 = vmax.f32 %v1703_v16, 0.0 }
 0x167   : >> { %v1708_v43 = vmax.f32 %v1704_v52, 0.0  ;;  %v1723_v14 = vmul.f32 1.442695, %v1718_v45  ;;  %v1709_v48 = vmul.f32 %v4438_v51, %v1705_v30  ;;  %v1725_v50 = vmul.f32 1.442695, %v1719_v55 }
 0x168   : >> { %v1710_v39 = vmul.f32 %v4439_v32, %v1706_v24  ;;  %v2479_v20 = vadd.f32 -9.0, %v3680_v53  ;;  %v1689_v22 = vadd.f32 %v2759_v25, %v1649_v58  ;;  %v1711_v2 = vmul.f32 %v4440_v0, %v1707_v61  ;;  %v4446_v0 = vld [vmem:[#allocation25_spill] sm:$0xff]  ;;  %v2830_v24 = vld [vmem:[%s3637_s14 + $0x900] sm:$0xff] }
 0x169   : >> { %v1712_v27 = vmul.f32 %v4441_v44, %v1708_v43  ;;  %v1727_v42 = vmul.f32 1.442695, %v1720_v5  ;;  %v2761_v62 = vpop.eup %2760  ;;  %v1713_v28 = vadd.f32 %v1709_v48, %v1673_v54  ;;  %v2480_v36 = vadd.f32 -9.0, %v3703_v6  ;;  %v4449_v5 = vld [vmem:[#allocation28_spill] sm:$0xff] }
 0x16a   : >> { %v1714_v15 = vadd.f32 %v1710_v39, %v1674_v1  ;;  %v2481_v19 = vadd.f32 -9.0, %v3716_v12  ;;  %v1715_v46 = vadd.f32 %v1711_v2, %v1675_v38  ;;  %2768 = vpow2.f32 %v1723_v14  ;;  %v4447_v1 = vld [vmem:[#allocation26_spill] sm:$0xff] }
 0x16b   : >> { %v1716_v51 = vadd.f32 %v1712_v27, %v1676_v57  ;;  %v2482_v32 = vadd.f32 -9.0, %v3718_v13  ;;  %v2763_v37 = vpop.eup %2762  ;;  %v1737_v18 = vand.u32 2147483647, %v2479_v20  ;;  %v1738_v58 = vand.u32 2147483647, %v2480_v36 }
 0x16c   : >> { %v1739_v9 = vand.u32 2147483647, %v2481_v19  ;;  %v1757_v44 = vsub.f32 %v4446_v0, %v3914_v60  ;;  %v2765_v47 = vpop.eup %2764  ;;  %v1690_v11 = vadd.f32 %v2761_v62, %v1650_v10  ;;  %v1758_v40 = vsub.f32 %v4447_v1, %v3922_v59  ;;  %v4453_v0 = vld [vmem:[#allocation32_spill] sm:$0xff] }
 0x16d   : >> { %v1740_v54 = vand.u32 2147483647, %v2482_v32  ;;  %v1759_v38 = vsub.f32 %v4448_v21, %v3924_v17  ;;  %2770 = vpow2.f32 %v1725_v50  ;;  %v1741_v57 = vsub.f32 1.0, %v1737_v18 }
 0x16e   : >> { %v1742_v63 = vsub.f32 1.0, %v1738_v58  ;;  %v1743_v31 = vsub.f32 1.0, %v1739_v9  ;;  %v1691_v41 = vadd.f32 %v2763_v37, %v1651_v29  ;;  %2772 = vpow2.f32 %v1727_v42 }
 0x16f   : >> { %v1744_v4 = vsub.f32 1.0, %v1740_v54  ;;  %v1761_v45 = vmul.f32 1.442695, %v1757_v44  ;;  %v1745_v8 = vmax.f32 %v1741_v57, 0.0  ;;  %v1763_v10 = vmul.f32 1.442695, %v1758_v40 }
 0x170   : >> { %v2767_v34 = vpop.eup %2766  ;;  %v1746_v55 = vmax.f32 %v1742_v63, 0.0  ;;  %v1747_v7 = vmax.f32 %v1743_v31, 0.0  ;;  %v4144_v16 = vadd.f32 %v2765_v47, %v1652_v56  ;;  %v1760_v25 = vsub.f32 %v4449_v5, %v3932_v33 }
 0x171   : >> { %v1748_v52 = vmax.f32 %v1744_v4, 0.0  ;;  %v1765_v30 = vmul.f32 1.442695, %v1759_v38  ;;  %v1749_v61 = vmul.f32 %v2830_v24, %v1745_v8  ;;  %v2483_v14 = vadd.f32 -10.0, %v3680_v53 }
 0x172   : >> { %v1750_v43 = vmul.f32 %v4443_v23, %v1746_v55  ;;  %v1751_v29 = vmul.f32 %v4444_v3, %v1747_v7  ;;  %v4152_v48 = vadd.f32 %v2767_v34, %v1689_v22  ;;  %2774 = vpow2.f32 %v1761_v45  ;;  %v4450_v22 = vld [vmem:[#allocation29_spill] sm:$0xff]  ;;  %v2831_v55 = vld [vmem:[%s3637_s14 + $0xa00] sm:$0xff] }
 0x173   : >> { %v1752_v39 = vmul.f32 %v4445_v35, %v1748_v52  ;;  %v2484_v56 = vadd.f32 -10.0, %v3703_v6  ;;  %v1753_v50 = vadd.f32 %v1749_v61, %v1713_v28  ;;  %2776 = vpow2.f32 %v1763_v10  ;;  %v4451_v35 = vld [vmem:[#allocation30_spill] sm:$0xff]  ;;  %v2832_v10 = vld [vmem:[%s3637_s14 + $0xa40] sm:$0xff] }
 0x174   : >> { %v1754_v20 = vadd.f32 %v1750_v43, %v1714_v15  ;;  %v1755_v2 = vadd.f32 %v1751_v29, %v1715_v46  ;;  %v2769_v27 = vpop.eup %2768  ;;  %v1767_v62 = vmul.f32 1.442695, %v1760_v25  ;;  %v2485_v23 = vadd.f32 -10.0, %v3716_v12  ;;  %v4452_v46 = vld [vmem:[#allocation31_spill] sm:$0xff]  ;;  %v2834_v61 = vld [vmem:[%s3637_s14 + $0xac0] sm:$0xff] }
 0x175   : >> { %v1756_v42 = vadd.f32 %v1752_v39, %v1716_v51  ;;  %v2486_v3 = vadd.f32 -10.0, %v3718_v13  ;;  %v1777_v36 = vand.u32 2147483647, %v2483_v14  ;;  %v1778_v19 = vand.u32 2147483647, %v2484_v56 }
 0x176   : >> { %v1797_v32 = vsub.f32 %v4450_v22, %v3914_v60  ;;  %v1798_v37 = vsub.f32 %v4451_v35, %v3922_v59  ;;  %2778 = vpow2.f32 %v1765_v30  ;;  %v1779_v28 = vand.u32 2147483647, %v2485_v23  ;;  %v2833_v30 = vld [vmem:[%s3637_s14 + $0xa80] sm:$0xff] }
 0x177   : >> { %v1780_v15 = vand.u32 2147483647, %v2486_v3  ;;  %v1799_v18 = vsub.f32 %v4452_v46, %v3924_v17  ;;  %v2771_v51 = vpop.eup %2770  ;;  %v1781_v58 = vsub.f32 1.0, %v1777_v36  ;;  %v1782_v9 = vsub.f32 1.0, %v1778_v19  ;;  %v4176_v22 = vld [vmem:[%s3637_s14 + $0xc00] sm:$0xff] }
 0x178   : >> { %v1800_v44 = vsub.f32 %v4453_v0, %v3932_v33  ;;  %v1801_v47 = vmul.f32 1.442695, %v1797_v32  ;;  %v2773_v54 = vpop.eup %2772  ;;  %2780 = vpow2.f32 %v1767_v62  ;;  %v1783_v1 = vsub.f32 1.0, %v1779_v28  ;;  %v4192_v0 = vld [vmem:[%s3637_s14 + $0xcc0] sm:$0xff] }
 0x179   : >> { %v1784_v40 = vsub.f32 1.0, %v1780_v15  ;;  %v1803_v21 = vmul.f32 1.442695, %v1798_v37  ;;  %v1785_v38 = vmax.f32 %v1781_v58, 0.0  ;;  %v1786_v57 = vmax.f32 %v1782_v9, 0.0 }
 0x17a   : >> { %2782 = vpow2.f32 %v1801_v47  ;;  %v1805_v63 = vmul.f32 1.442695, %v1799_v18  ;;  %v1730_v31 = vadd.f32 %v2769_v27, %v1690_v11  ;;  %v1787_v4 = vmax.f32 %v1783_v1, 0.0 }
 0x17b   : >> { %v1788_v45 = vmax.f32 %v1784_v40, 0.0  ;;  %v2487_v34 = vadd.f32 -11.0, %v3680_v53  ;;  %v1731_v8 = vadd.f32 %v2771_v51, %v1691_v41  ;;  %v1789_v7 = vmul.f32 %v2831_v55, %v1785_v38  ;;  %v2841_v55 = vld [vmem:[%s3637_s14 + $0xb80] sm:$0xff] }
 0x17c   : >> { %v1790_v52 = vmul.f32 %v2832_v10, %v1786_v57  ;;  %v1807_v5 = vmul.f32 1.442695, %v1800_v44  ;;  %v2775_v25 = vpop.eup %2774  ;;  %v1791_v24 = vmul.f32 %v2833_v30, %v1787_v4  ;;  %2784 = vpow2.f32 %v1803_v21 }
 0x17d   : >> { %v1792_v43 = vmul.f32 %v2834_v61, %v1788_v45  ;;  %v2488_v29 = vadd.f32 -11.0, %v3703_v6  ;;  %v2777_v11 = vpop.eup %2776  ;;  %v1793_v14 = vadd.f32 %v1789_v7, %v1753_v50  ;;  %2786 = vpow2.f32 %v1805_v63  ;;  %v2839_v63 = vld [vmem:[%s3637_s14 + $0xb00] sm:$0xff] }
 0x17e   : >> { %v1794_v39 = vadd.f32 %v1790_v52, %v1754_v20  ;;  %v2489_v41 = vadd.f32 -11.0, %v3716_v12  ;;  %v1795_v56 = vadd.f32 %v1791_v24, %v1755_v2  ;;  %v2490_v62 = vadd.f32 -11.0, %v3718_v13  ;;  %v4181_v2 = vld [vmem:[%s3637_s14 + $0xc40] sm:$0xff] }
 0x17f   : >> { %v1796_v27 = vadd.f32 %v1792_v43, %v1756_v42  ;;  %v1817_v23 = vand.u32 2147483647, %v2487_v34  ;;  %v1732_v3 = vadd.f32 %v2773_v54, %v4144_v16  ;;  %v1818_v36 = vand.u32 2147483647, %v2488_v29  ;;  %v4186_v16 = vld [vmem:[%s3637_s14 + $0xc80] sm:$0xff] }
 0x180   : >> { %v1819_v19 = vand.u32 2147483647, %v2489_v41  ;;  %v1837_v50 = vsub.f32 %v4176_v22, %v3914_v60  ;;  %v2779_v20 = vpop.eup %2778  ;;  %2788 = vpow2.f32 %v1807_v5  ;;  %v1820_v32 = vand.u32 2147483647, %v2490_v62  ;;  %v2840_v45 = vld [vmem:[%s3637_s14 + $0xb40] sm:$0xff] }
 0x181   : >> { %v1821_v35 = vsub.f32 1.0, %v1817_v23  ;;  %v1838_v42 = vsub.f32 %v4181_v2, %v3922_v59  ;;  %v1822_v37 = vsub.f32 1.0, %v1818_v36  ;;  %v1839_v15 = vsub.f32 %v4186_v16, %v3924_v17 }
 0x182   : >> { %v1823_v28 = vsub.f32 1.0, %v1819_v19  ;;  %v1841_v46 = vmul.f32 1.442695, %v1837_v50  ;;  %v2781_v18 = vpop.eup %2780  ;;  %v1769_v51 = vadd.f32 %v2775_v25, %v4152_v48  ;;  %v1824_v58 = vsub.f32 1.0, %v1820_v32  ;;  %v2842_v25 = vld [vmem:[%s3637_s14 + $0xbc0] sm:$0xff] }
 0x183   : >> { %v1825_v9 = vmax.f32 %v1821_v35, 0.0  ;;  %v1840_v44 = vsub.f32 %v4192_v0, %v3932_v33  ;;  %v1770_v54 = vadd.f32 %v2777_v11, %v1730_v31  ;;  %v1826_v1 = vmax.f32 %v1822_v37, 0.0  ;;  %v4207_v19 = vld [vmem:[%s3637_s14 + $0xd00] sm:$0xff] }
 0x184   : >> { %v2783_v47 = vpop.eup %2782  ;;  %v1827_v40 = vmax.f32 %v1823_v28, 0.0  ;;  %v1843_v21 = vmul.f32 1.442695, %v1838_v42  ;;  %v1771_v38 = vadd.f32 %v2779_v20, %v1731_v8  ;;  %v1828_v57 = vmax.f32 %v1824_v58, 0.0  ;;  %v4219_v37 = vld [vmem:[%s3637_s14 + $0xd80] sm:$0xff] }
 0x185   : >> { %v1829_v4 = vmul.f32 %v2839_v63, %v1825_v9  ;;  %2790 = vpow2.f32 %v1841_v46  ;;  %v1772_v48 = vadd.f32 %v2781_v18, %v1732_v3  ;;  %v1830_v34 = vmul.f32 %v2840_v45, %v1826_v1 }
 0x186   : >> { %v1831_v7 = vmul.f32 %v2841_v55, %v1827_v40  ;;  %v1845_v10 = vmul.f32 1.442695, %v1839_v15  ;;  %v2785_v52 = vpop.eup %2784  ;;  %v1809_v5 = vadd.f32 %v2783_v47, %v1769_v51  ;;  %v1832_v31 = vmul.f32 %v2842_v25, %v1828_v57 }
 0x187   : >> { %v1833_v30 = vadd.f32 %v1829_v4, %v1793_v14  ;;  %v1847_v24 = vmul.f32 1.442695, %v1840_v44  ;;  %v2787_v61 = vpop.eup %2786  ;;  %v1834_v8 = vadd.f32 %v1830_v34, %v1794_v39  ;;  %2792 = vpow2.f32 %v1843_v21  ;;  %v4212_v39 = vld [vmem:[%s3637_s14 + $0xd40] sm:$0xff] }
 0x188   : >> { %v1835_v43 = vadd.f32 %v1831_v7, %v1795_v56  ;;  %v2491_v29 = vadd.f32 -12.0, %v3680_v53  ;;  %v1836_v11 = vadd.f32 %v1832_v31, %v1796_v27  ;;  %v2492_v41 = vadd.f32 -12.0, %v3703_v6  ;;  %v2846_v44 = vld [vmem:[%s3637_s14 + $0xdc0] sm:$0xff] }
 0x189   : >> { %v2493_v62 = vadd.f32 -12.0, %v3716_v12  ;;  %v2494_v23 = vadd.f32 -12.0, %v3718_v13  ;;  %v4204_v3 = vadd.f32 %v2785_v52, %v1770_v54  ;;  %v1877_v14 = vsub.f32 %v4207_v19, %v3914_v60 }
 0x18a   : >> { %v1857_v36 = vand.u32 2147483647, %v2491_v29  ;;  %v1878_v56 = vsub.f32 %v4212_v39, %v3922_v59  ;;  %v2789_v27 = vpop.eup %2788  ;;  %2794 = vpow2.f32 %v1845_v10  ;;  %v1858_v50 = vand.u32 2147483647, %v2492_v41 }
 0x18b   : >> { %v1859_v20 = vand.u32 2147483647, %v2493_v62  ;;  %v1860_v32 = vand.u32 2147483647, %v2494_v23  ;;  %v4216_v35 = vadd.f32 %v2787_v61, %v1771_v38  ;;  %2796 = vpow2.f32 %v1847_v24  ;;  %v4238_v62 = vld [vmem:[%s3637_s14 + $0xe00] sm:$0xff] }
 0x18c   : >> { %v1861_v42 = vsub.f32 1.0, %v1857_v36  ;;  %v1879_v28 = vsub.f32 %v4219_v37, %v3924_v17  ;;  %v1862_v15 = vsub.f32 1.0, %v1858_v50  ;;  %v1881_v51 = vmul.f32 1.442695, %v1877_v14  ;;  %v4248_v14 = vld [vmem:[%s3637_s14 + $0xe80] sm:$0xff] }
 0x18d   : >> { %v1863_v46 = vsub.f32 1.0, %v1859_v20  ;;  %v1864_v18 = vsub.f32 1.0, %v1860_v32  ;;  %v4223_v58 = vadd.f32 %v2789_v27, %v1772_v48  ;;  %v1880_v47 = vsub.f32 %v2846_v44, %v3932_v33 }
 0x18e   : >> { %v1865_v9 = vmax.f32 %v1861_v42, 0.0  ;;  %v1883_v54 = vmul.f32 1.442695, %v1878_v56  ;;  %v1866_v40 = vmax.f32 %v1862_v15, 0.0  ;;  %v2495_v57 = vadd.f32 -13.0, %v3680_v53 }
 0x18f   : >> { %v2791_v1 = vpop.eup %2790  ;;  %v1867_v21 = vmax.f32 %v1863_v46, 0.0  ;;  %v1868_v38 = vmax.f32 %v1864_v18, 0.0  ;;  %v1885_v4 = vmul.f32 1.442695, %v1879_v28  ;;  %v2496_v45 = vadd.f32 -13.0, %v3703_v6 }
 0x190   : >> { %v1869_v63 = vmul.f32 %v4176_v22, %v1865_v9  ;;  %v2497_v34 = vadd.f32 -13.0, %v3716_v12  ;;  %v1870_v48 = vmul.f32 %v4181_v2, %v1866_v40  ;;  %2798 = vpow2.f32 %v1881_v51 }
 0x191   : >> { %v1871_v55 = vmul.f32 %v4186_v16, %v1867_v21  ;;  %v1872_v7 = vmul.f32 %v4192_v0, %v1868_v38  ;;  %v2793_v10 = vpop.eup %2792  ;;  %v4234_v52 = vadd.f32 %v2791_v1, %v1809_v5  ;;  %v1887_v22 = vmul.f32 1.442695, %v1880_v47 }
 0x192   : >> { %v1873_v25 = vadd.f32 %v1869_v63, %v1833_v30  ;;  %v2498_v31 = vadd.f32 -13.0, %v3718_v13  ;;  %v1874_v24 = vadd.f32 %v1870_v48, %v1834_v8  ;;  %2800 = vpow2.f32 %v1883_v54  ;;  %v4243_v30 = vld [vmem:[%s3637_s14 + $0xe40] sm:$0xff] }
 0x193   : >> { %v1875_v61 = vadd.f32 %v1871_v55, %v1835_v43  ;;  %v1876_v29 = vadd.f32 %v1872_v7, %v1836_v11  ;;  %v1897_v2 = vand.u32 2147483647, %v2495_v57  ;;  %v1898_v41 = vand.u32 2147483647, %v2496_v45  ;;  %v4253_v43 = vld [vmem:[%s3637_s14 + $0xec0] sm:$0xff] }
 0x194   : >> { %v1899_v16 = vand.u32 2147483647, %v2497_v34  ;;  %v1917_v0 = vsub.f32 %v4238_v62, %v3914_v60  ;;  %v2795_v5 = vpop.eup %2794  ;;  %v1900_v23 = vand.u32 2147483647, %v2498_v31  ;;  %v1918_v36 = vsub.f32 %v4243_v30, %v3922_v59 }
 0x195   : >> { %v1919_v8 = vsub.f32 %v4248_v14, %v3924_v17  ;;  %v1920_v11 = vsub.f32 %v4253_v43, %v3932_v33  ;;  %v2797_v56 = vpop.eup %2796  ;;  %v1901_v27 = vsub.f32 1.0, %v1897_v2  ;;  %v1902_v50 = vsub.f32 1.0, %v1898_v41 }
 0x196   : >> { %v1903_v20 = vsub.f32 1.0, %v1899_v16  ;;  %v1921_v32 = vmul.f32 1.442695, %v1917_v0  ;;  %v4258_v42 = vadd.f32 %v2793_v10, %v4204_v3  ;;  %2802 = vpow2.f32 %v1885_v4  ;;  %v4269_v10 = vld [vmem:[%s3637_s14 + $0xf00] sm:$0xff] }
 0x197   : >> { %v1904_v28 = vsub.f32 1.0, %v1900_v23  ;;  %v1923_v15 = vmul.f32 1.442695, %v1918_v36  ;;  %2804 = vpow2.f32 %v1887_v22  ;;  %v1905_v46 = vmax.f32 %v1901_v27, 0.0  ;;  %v4284_v0 = vld [vmem:[%s3637_s14 + $0xfc0] sm:$0xff] }
 0x198   : >> { %v1906_v18 = vmax.f32 %v1902_v50, 0.0  ;;  %v1907_v51 = vmax.f32 %v1903_v20, 0.0  ;;  %2806 = vpow2.f32 %v1921_v32  ;;  %v1925_v47 = vmul.f32 1.442695, %v1919_v8 }
 0x199   : >> { %v1908_v9 = vmax.f32 %v1904_v28, 0.0  ;;  %v2499_v54 = vadd.f32 -14.0, %v3680_v53  ;;  %v1909_v1 = vmul.f32 %v4207_v19, %v1905_v46  ;;  %v1927_v3 = vmul.f32 1.442695, %v1920_v11 }
 0x19a   : >> { %v1910_v40 = vmul.f32 %v4212_v39, %v1906_v18  ;;  %v1911_v21 = vmul.f32 %v4219_v37, %v1907_v51  ;;  %v2799_v38 = vpop.eup %2798  ;;  %v1851_v57 = vadd.f32 %v2795_v5, %v4216_v35  ;;  %2808 = vpow2.f32 %v1923_v15 }
 0x19b   : >> { %v1912_v63 = vmul.f32 %v2846_v44, %v1908_v9  ;;  %v2500_v4 = vadd.f32 -14.0, %v3703_v6  ;;  %v1913_v45 = vadd.f32 %v1909_v1, %v1873_v25  ;;  %v2501_v19 = vadd.f32 -14.0, %v3716_v12 }
 0x19c   : >> { %v1914_v34 = vadd.f32 %v1910_v40, %v1874_v24  ;;  %v1915_v48 = vadd.f32 %v1911_v21, %v1875_v61  ;;  %v2801_v55 = vpop.eup %2800  ;;  %2810 = vpow2.f32 %v1925_v47  ;;  %v2502_v37 = vadd.f32 -14.0, %v3718_v13  ;;  %v4274_v24 = vld [vmem:[%s3637_s14 + $0xf40] sm:$0xff] }
 0x19d   : >> { %v1916_v39 = vadd.f32 %v1912_v63, %v1876_v29  ;;  %v1937_v7 = vand.u32 2147483647, %v2499_v54  ;;  %2812 = vpow2.f32 %v1927_v3  ;;  %v1938_v35 = vand.u32 2147483647, %v2500_v4  ;;  %v4279_v29 = vld [vmem:[%s3637_s14 + $0xf80] sm:$0xff] }
 0x19e   : >> { %v1939_v44 = vand.u32 2147483647, %v2501_v19  ;;  %v1957_v25 = vsub.f32 %v4269_v10, %v3914_v60  ;;  %v1940_v22 = vand.u32 2147483647, %v2502_v37  ;;  %v1958_v61 = vsub.f32 %v4274_v24, %v3922_v59 }
 0x19f   : >> { %v1941_v31 = vsub.f32 1.0, %v1937_v7  ;;  %v1959_v2 = vsub.f32 %v4279_v29, %v3924_v17  ;;  %v1942_v41 = vsub.f32 1.0, %v1938_v35  ;;  %v1960_v5 = vsub.f32 %v4284_v0, %v3932_v33 }
 0x1a0   : >> { %v1943_v16 = vsub.f32 1.0, %v1939_v44  ;;  %v1961_v23 = vmul.f32 1.442695, %v1957_v25  ;;  %v2803_v36 = vpop.eup %2802  ;;  %v1944_v8 = vsub.f32 1.0, %v1940_v22  ;;  %v1963_v27 = vmul.f32 1.442695, %v1958_v61 }
 0x1a1   : >> { %v1945_v11 = vmax.f32 %v1941_v31, 0.0  ;;  %v1965_v50 = vmul.f32 1.442695, %v1959_v2  ;;  %v2805_v20 = vpop.eup %2804  ;;  %v1946_v32 = vmax.f32 %v1942_v41, 0.0  ;;  %v1967_v15 = vmul.f32 1.442695, %v1960_v5 }
 0x1a2   : >> { %v1947_v28 = vmax.f32 %v1943_v16, 0.0  ;;  %2814 = vpow2.f32 %v1961_v23  ;;  %v2807_v46 = vpop.eup %2806  ;;  %v1852_v18 = vadd.f32 %v2797_v56, %v4223_v58  ;;  %v1948_v51 = vmax.f32 %v1944_v8, 0.0 }
 0x1a3   : >> { %v1949_v9 = vmul.f32 %v4238_v62, %v1945_v11  ;;  %2816 = vpow2.f32 %v1963_v27  ;;  %v1889_v47 = vadd.f32 %v2799_v38, %v4234_v52  ;;  %v1950_v54 = vmul.f32 %v4243_v30, %v1946_v32 }
 0x1a4   : >> { %v1951_v1 = vmul.f32 %v4248_v14, %v1947_v28  ;;  %2818 = vpow2.f32 %v1965_v50  ;;  %v2809_v40 = vpop.eup %2808  ;;  %v1890_v21 = vadd.f32 %v2801_v55, %v4258_v42  ;;  %v1952_v3 = vmul.f32 %v4253_v43, %v1948_v51 }
 0x1a5   : >> { %v1953_v63 = vadd.f32 %v1949_v9, %v1913_v45  ;;  %2820 = vpow2.f32 %v1967_v15  ;;  %v1891_v4 = vadd.f32 %v2803_v36, %v1851_v57  ;;  %v1954_v58 = vadd.f32 %v1950_v54, %v1914_v34 }
 0x1a6   : >> { %v1955_v56 = vadd.f32 %v1951_v1, %v1915_v48  ;;  %v2503_v62 = vadd.f32 -15.0, %v3680_v53  ;;  %v2811_v19 = vpop.eup %2810  ;;  %v1956_v37 = vadd.f32 %v1952_v3, %v1916_v39  ;;  %v2504_v52 = vadd.f32 -15.0, %v3703_v6 }
 0x1a7   : >> { %v2505_v30 = vadd.f32 -15.0, %v3716_v12  ;;  %v2506_v14 = vadd.f32 -15.0, %v3718_v13  ;;  %v2813_v38 = vpop.eup %2812  ;;  %v1892_v7 = vadd.f32 %v2805_v20, %v1852_v18  ;;  %v1929_v55 = vadd.f32 %v2807_v46, %v1889_v47 }
 0x1a8   : >> { %v1977_v42 = vand.u32 2147483647, %v2503_v62  ;;  %v1978_v43 = vand.u32 2147483647, %v2504_v52  ;;  %v1930_v57 = vadd.f32 %v2809_v40, %v1890_v21  ;;  %v1931_v48 = vadd.f32 %v2811_v19, %v1891_v4 }
 0x1a9   : >> { %v1979_v45 = vand.u32 2147483647, %v2505_v30  ;;  %v1980_v35 = vand.u32 2147483647, %v2506_v14  ;;  %v1932_v22 = vadd.f32 %v2813_v38, %v1892_v7 }
 0x1aa   : >> { %v1981_v34 = vsub.f32 1.0, %v1977_v42  ;;  %v1982_v44 = vsub.f32 1.0, %v1978_v43 }
 0x1ab   : >> { %v1983_v53 = vsub.f32 1.0, %v1979_v45  ;;  %v1984_v25 = vsub.f32 1.0, %v1980_v35 }
 0x1ac   : >> { %v2815_v39 = vpop.eup %2814  ;;  %v1985_v6 = vmax.f32 %v1981_v34, 0.0  ;;  %v1986_v61 = vmax.f32 %v1982_v44, 0.0 }
 0x1ad   : >> { %v2817_v31 = vpop.eup %2816  ;;  %v1969_v12 = vadd.f32 %v2815_v39, %v1929_v55  ;;  %v1987_v13 = vmax.f32 %v1983_v53, 0.0  ;;  %v1988_v2 = vmax.f32 %v1984_v25, 0.0 }
 0x1ae   : >> { %v2819_v41 = vpop.eup %2818  ;;  %v1970_v16 = vadd.f32 %v2817_v31, %v1930_v57  ;;  %v1989_v5 = vmul.f32 %v4269_v10, %v1985_v6  ;;  %v1990_v8 = vmul.f32 %v4274_v24, %v1986_v61 }
 0x1af   : >> { %v2821_v23 = vpop.eup %2820  ;;  %v1971_v36 = vadd.f32 %v2819_v41, %v1931_v48  ;;  %v1991_v11 = vmul.f32 %v4279_v29, %v1987_v13  ;;  %v1992_v27 = vmul.f32 %v4284_v0, %v1988_v2  ;;  %2822 = vlog2.f32 %v1969_v12 }
 0x1b0   : >> { %v1972_v50 = vadd.f32 %v2821_v23, %v1932_v22  ;;  %v1993_v20 = vadd.f32 %v1989_v5, %v1953_v63  ;;  %v1994_v32 = vadd.f32 %v1990_v8, %v1954_v58  ;;  %2824 = vlog2.f32 %v1970_v16 }
 0x1b1   : >> { %v1995_v28 = vadd.f32 %v1991_v11, %v1955_v56  ;;  %v1996_v15 = vadd.f32 %v1992_v27, %v1956_v37  ;;  %2826 = vlog2.f32 %v1971_v36  ;;  %v2017_v37 = vld [vmem:[#allocation3] sm:$0xff] }
 0x1b2   : >> { %2828 = vlog2.f32 %v1972_v50 }
 0x1b9   : >> { %v2823_v46 = vpop.eup %2822 }
 0x1ba   : >> { %v2825_v18 = vpop.eup %2824  ;;  %v1998_v10 = vmul.f32 0.6931472, %v2823_v46 }
 0x1bb   : >> { %v2827_v51 = vpop.eup %2826  ;;  %v2000_v9 = vmul.f32 0.6931472, %v2825_v18 }
 0x1bc   : >> { %v2829_v47 = vpop.eup %2828  ;;  %v2002_v24 = vmul.f32 0.6931472, %v2827_v51  ;;  %v2005_v29 = vadd.f32 %v1998_v10, %v3914_v60 }
 0x1bd   : >> { %v2004_v54 = vmul.f32 0.6931472, %v2829_v47  ;;  %v2006_v0 = vadd.f32 %v2000_v9, %v3922_v59  ;;  %v2022_v59 = vld [vmem:[#allocation2] sm:$0xff] (%p1039_p12) }
 0x1be   : >> { %v2007_v1 = vadd.f32 %v2002_v24, %v3924_v17  ;;  %v2009_v40 = vsub.f32 %v2005_v29, %v1993_v20  ;;  %2023 = vst [vmem:[%s3585_s23] sm:$0xff] (%p1039_p12), %v2022_v59 }
 0x1bf   : >> { %v2008_v21 = vadd.f32 %v2004_v54, %v3932_v33  ;;  %v2010_v3 = vsub.f32 %v2006_v0, %v1994_v32 }
 0x1c0   : >> { %v2011_v63 = vsub.f32 %v2007_v1, %v1995_v28 }
 0x1c1   : >> { %v2012_v4 = vsub.f32 %v2008_v21, %v1996_v15  ;;  %v2013_v58 = vadd.f32 %v2010_v3, %v2009_v40 }
 0x1c3   : >> { %v2014_v56 = vadd.f32 %v2013_v58, %v2011_v63 }
 0x1c5   : >> { %v2015_v62 = vadd.f32 %v2014_v56, %v2012_v4 }
 0x1c7   : >> { %v2016_v19 = vmul.f32 0.25, %v2015_v62 }
 0x1c8   : > { %1041 = sbr.rel (!%p1039_p12) target bundleno = 199 (0xc7), region = 256 }
 0x1c9   : >> { %v2018_v52 = vmul.f32 %v4042_v26, %v2016_v19 }
 0x1cb   : >> { %v2019_v60 = vsel %vm4086_vm6, %v2018_v52, 0.0 }
 0x1cc   : >> { %v2020_v30 = vadd.f32 %v2019_v60, %v2017_v37 }
 0x1ce   : >> { %2021 = vst [vmem:[#allocation3] sm:$0xff] %v2020_v30 }
 0x1d5   : > { %v2024_v17 = vld [vmem:[#allocation3] sm:$0xff] }
 0x1d6   : > { %2025 = vst [vmem:[%s3590_s24] sm:$0xff] %v2024_v17 }
 0x1d7 PF: > { %s14_s18 = sadd.s32 1, %s2962_s18   ;;  %s4454_s12 = smov %s2942_s13 }
 0x1d8   : > { %p11_p13 = scmp.ge.s32.totalorder %s14_s18, 6   ;;  %s4455_s13 = smov %s3095_s28 }
 0x1d9   : > { %s4456_s14 = smov %s2954_s16  ;;  %s4457_s15 = smov %s2958_s17 }
 0x1da   : > { %s4458_s16 = smov %s4461_s19  ;;  %s4459_s17 = smov %s4467_s20 }
 0x1db   :  { %13 = sbr.rel (!%p11_p13) target bundleno = 4 (0x4), region = 267 }

</bundles_post_ra>
